<compile_context>
chip_gen: v7x
topology: tpu7x:2x2x1
jax: 0.10.0
libtpu: 0.0.40
codegen_flags: <defaults>
</compile_context>

<pallas_src>
import functools

import jax
import jax.numpy as jnp
from jax.experimental import pallas as pl
from jax.experimental.pallas import tpu as pltpu

NUM_CLASS = 15        # ScanObjectNN
REPSURF_CH = 10
FEAT_DIM = 1024
PAD_CLASS = 128       # lane-dense padded class dimension
FUSE_CH = 16          # 3 (xyz copy) + 10 (repsurf) + 3 zero pad


# --------------------------------------------------------------------------- #
# Single fused kernel: point MLP -> per-batch max-pool -> classifier head
# --------------------------------------------------------------------------- #
def fused_kernel(c_ref,                         # (B*N, 3)  xyz, channels-last
                 wcat_ref, bcat_ref,            # (3, 16), (1, 16)  fused xyz||repsurf
                 w1_ref, b1_ref,                # (16, 64) bf16, (1, 64)
                 w2_ref, b2_ref,                # (64, 256) bf16, (1, 256)
                 w3_ref, b3_ref,                # (256, 1024) bf16, (1, 1024)
                 hw1_ref, hb1_ref,              # (1024, 512) bf16, (1, 512)  BN folded
                 hw2_ref, hb2_ref,              # (512, 256) bf16, (1, 256)   BN folded
                 hw3_ref, hb3_ref,              # (256, 128), (1, 128)  class-padded
                 out_ref,                       # (B, 128)  log-probs (padded)
                 feat_ref,                      # VMEM scratch (B, 1024)
                 *, batch, npoint):
    slope = 0.2                                  # nn.LeakyReLU(negative_slope=0.2)

    c = c_ref[...]                               # (M, 3), M = B*N

    # Fused layer: one 3->16 dot produces [xyz copy (3) || repsurf (10) || pad(3)].
    # ReLU is applied only to the repsurf channels (xyz must stay signed).
    # TODO(synk): the real UmbrellaSurfaceConstructor builds kNN umbrella
    # triangles (azimuth-sorted neighbors, cross-product normals/centers); its
    # definition is not in the provided source, so a pointwise 3->10 projection
    # stands in for the 10-channel repsurf feature.
    x16 = jnp.dot(c, wcat_ref[...], preferred_element_type=jnp.float32) + bcat_ref[...]
    col = jax.lax.broadcasted_iota(jnp.int32, x16.shape, 1)
    x16 = jnp.where(col < 3, x16, jnp.maximum(x16, 0.0))            # (M, 16)

    # TODO(synk): KeepHighResolutionModule(3, 64, 64, 64, 64) is not provided;
    # stand-in is a pointwise MLP over [xyz || repsurf] + global max-pool.
    h = jnp.dot(x16.astype(jnp.bfloat16), w1_ref[...],
                preferred_element_type=jnp.float32) + b1_ref[...]
    h = jnp.maximum(h, 0.0)                                          # (M, 64)
    h = jnp.dot(h.astype(jnp.bfloat16), w2_ref[...],
                preferred_element_type=jnp.float32) + b2_ref[...]
    h = jnp.maximum(h, 0.0)                                          # (M, 256)
    h = jnp.dot(h.astype(jnp.bfloat16), w3_ref[...],
                preferred_element_type=jnp.float32) + b3_ref[...]
    h = jnp.maximum(h, 0.0)                                          # (M, 1024)

    # Per-batch global max-pool via static row slices into VMEM scratch.
    # TODO(synk): for real ScanObjectNN point counts (N=1024..2048) add an
    # N-tile grid axis with a running-max accumulator instead of materializing
    # the full (B*N, 1024) intermediate (v7x 64 MiB VMEM budget).
    for b in range(batch):
        feat_ref[pl.ds(b, 1), :] = jnp.max(
            h[b * npoint:(b + 1) * npoint, :], axis=0, keepdims=True)
    feat = feat_ref[...]                                             # (B, 1024)

    # Classifier head. BN1/BN2 (eval) already folded into hw1/hb1, hw2/hb2;
    # Dropout is identity in eval.
    y = jnp.dot(feat.astype(jnp.bfloat16), hw1_ref[...],
                preferred_element_type=jnp.float32) + hb1_ref[...]
    y = jnp.where(y > 0, y, slope * y)                               # (B, 512)
    y = jnp.dot(y.astype(jnp.bfloat16), hw2_ref[...],
                preferred_element_type=jnp.float32) + hb2_ref[...]
    y = jnp.where(y > 0, y, slope * y)                               # (B, 256)

    # fc3 into a lane-dense (B, 128) buffer; padded classes carry -1e9 bias.
    logits = jnp.dot(y, hw3_ref[...],
                     preferred_element_type=jnp.float32) + hb3_ref[...]
    z = logits - jnp.max(logits, axis=-1, keepdims=True)
    out_ref[...] = z - jnp.log(jnp.sum(jnp.exp(z), axis=-1, keepdims=True))


def model_forward(points, p):
    B = points.shape[0]
    N = points.shape[2]
    # Slice xyz + transpose to channels-last + flatten batch, once, outside the
    # kernel (fused by XLA with the input slice).
    c_flat = jnp.transpose(points[:, :3, :], (0, 2, 1)).reshape(B * N, 3)

    kernel = functools.partial(fused_kernel, batch=B, npoint=N)
    logp_pad = pl.pallas_call(
        kernel,
        out_shape=jax.ShapeDtypeStruct((B, PAD_CLASS), jnp.float32),
        scratch_shapes=[pltpu.VMEM((B, FEAT_DIM), jnp.float32)],
    )(c_flat,
      p["wcat"], p["bcat"],
      p["w1"], p["b1"], p["w2"], p["b2"], p["w3"], p["b3"],
      p["hw1"], p["hb1"], p["hw2"], p["hb2"], p["hw3"], p["hb3"])
    return logp_pad[:, :NUM_CLASS]


# --------------------------------------------------------------------------- #
# Deterministic parameter initialization (synthetic — not a checkpoint load)
# --------------------------------------------------------------------------- #
def init_raw_params(key):
    ks = iter(jax.random.split(key, 32))

    def lin(fin, fout):
        w = jax.random.normal(next(ks), (fin, fout), jnp.float32) / jnp.sqrt(float(fin))
        b = 0.01 * jax.random.normal(next(ks), (1, fout), jnp.float32)
        return w, b

    def bn(c):
        g = 1.0 + 0.1 * jax.random.normal(next(ks), (1, c), jnp.float32)
        be = 0.1 * jax.random.normal(next(ks), (1, c), jnp.float32)
        m = 0.1 * jax.random.normal(next(ks), (1, c), jnp.float32)
        v = 1.0 + 0.1 * jnp.abs(jax.random.normal(next(ks), (1, c), jnp.float32))
        return g, be, m, v

    wn, bnb = lin(3, REPSURF_CH)
    w1c, b1 = lin(3, 64)
    w1n, _ = lin(REPSURF_CH, 64)       # single fused bias for the first layer
    w2, b2 = lin(64, 256)
    w3, b3 = lin(256, FEAT_DIM)

    w1h, b1h = lin(FEAT_DIM, 512)
    g1, be1, m1, v1 = bn(512)
    w2h, b2h = lin(512, 256)
    g2, be2, m2, v2 = bn(256)
    w3h, b3h = lin(256, NUM_CLASS)

    return dict(wn=wn, bn=bnb, w1c=w1c, w1n=w1n, b1=b1, w2=w2, b2=b2, w3=w3, b3=b3,
                w1h=w1h, b1h=b1h, g1=g1, be1=be1, m1=m1, v1=v1,
                w2h=w2h, b2h=b2h, g2=g2, be2=be2, m2=m2, v2=v2,
                w3h=w3h, b3h=b3h)


def prepare_kernel_params(raw):
    """Host-side folding: fused xyz||repsurf layer, BN-folded head, class pad."""
    eps = 1e-5
    f32 = jnp.float32

    # Fused 3->16 layer: cols 0..2 copy xyz, cols 3..12 repsurf projection.
    wcat = jnp.concatenate(
        [jnp.eye(3, dtype=f32), raw["wn"], jnp.zeros((3, 3), f32)], axis=1)    # (3, 16)
    bcat = jnp.concatenate(
        [jnp.zeros((1, 3), f32), raw["bn"], jnp.zeros((1, 3), f32)], axis=1)   # (1, 16)

    # Packed first MLP weight over [xyz || repsurf || pad].
    w1 = jnp.concatenate(
        [raw["w1c"], raw["w1n"], jnp.zeros((3, 64), f32)], axis=0)             # (16, 64)

    # Fold eval-mode BatchNorm into the head linears.
    s1 = raw["g1"] * jax.lax.rsqrt(raw["v1"] + eps)                            # (1, 512)
    hw1 = raw["w1h"] * s1
    hb1 = (raw["b1h"] - raw["m1"]) * s1 + raw["be1"]
    s2 = raw["g2"] * jax.lax.rsqrt(raw["v2"] + eps)                            # (1, 256)
    hw2 = raw["w2h"] * s2
    hb2 = (raw["b2h"] - raw["m2"]) * s2 + raw["be2"]

    # Lane-dense fc3: pad 15 classes to 128 (zero weights, -1e9 bias).
    hw3 = jnp.concatenate(
        [raw["w3h"], jnp.zeros((256, PAD_CLASS - NUM_CLASS), f32)], axis=1)    # (256, 128)
    hb3 = jnp.concatenate(
        [raw["b3h"], jnp.full((1, PAD_CLASS - NUM_CLASS), -1e9, f32)], axis=1) # (1, 128)

    bf16 = jnp.bfloat16
    return dict(
        wcat=wcat, bcat=bcat,
        w1=w1.astype(bf16), b1=raw["b1"],
        w2=raw["w2"].astype(bf16), b2=raw["b2"],
        w3=raw["w3"].astype(bf16), b3=raw["b3"],
        hw1=hw1.astype(bf16), hb1=hb1,
        hw2=hw2.astype(bf16), hb2=hb2,
        hw3=hw3, hb3=hb3,
    )


if __name__ == "__main__":
    key = jax.random.PRNGKey(0)
    kp, kx = jax.random.split(key)

    B, C_IN, N = 2, 6, 128                      # small shapes
    points = jax.random.normal(kx, (B, C_IN, N), jnp.float32)

    raw = init_raw_params(kp)
    params = prepare_kernel_params(raw)

    fwd = jax.jit(model_forward)
    logp = fwd(points, params)
    jax.block_until_ready(logp)

    assert logp.shape == (B, NUM_CLASS)
    assert bool(jnp.all(jnp.isfinite(logp)))
    # log_softmax rows must (approximately) sum to 1 in prob space
    assert bool(jnp.allclose(jnp.sum(jnp.exp(logp), axis=-1), 1.0, atol=1e-4))
    print("KERNEL_OK")
</pallas_src>

<mosaic_0001>
module attributes {stable_mosaic.version = 11 : i64} {
  func.func @fused_kernel(%arg0: memref<256x3xf32, #tpu.memory_space<vmem>>, %arg1: memref<3x16xf32, #tpu.memory_space<vmem>>, %arg2: memref<1x16xf32, #tpu.memory_space<vmem>>, %arg3: memref<16x64xbf16, #tpu.memory_space<vmem>>, %arg4: memref<1x64xf32, #tpu.memory_space<vmem>>, %arg5: memref<64x256xbf16, #tpu.memory_space<vmem>>, %arg6: memref<1x256xf32, #tpu.memory_space<vmem>>, %arg7: memref<256x1024xbf16, #tpu.memory_space<vmem>>, %arg8: memref<1x1024xf32, #tpu.memory_space<vmem>>, %arg9: memref<1024x512xbf16, #tpu.memory_space<vmem>>, %arg10: memref<1x512xf32, #tpu.memory_space<vmem>>, %arg11: memref<512x256xbf16, #tpu.memory_space<vmem>>, %arg12: memref<1x256xf32, #tpu.memory_space<vmem>>, %arg13: memref<256x128xf32, #tpu.memory_space<vmem>>, %arg14: memref<1x128xf32, #tpu.memory_space<vmem>>, %arg15: memref<2x128xf32, #tpu.memory_space<vmem>>, %arg16: memref<2x1024xf32, #tpu.memory_space<vmem>>) attributes {dimension_semantics = [], scalar_prefetch = 0 : i64, scratch_operands = 1 : i64, tpu.core_type = #tpu.core_type<tc>} {
    %c0 = arith.constant 0 : index
    %c0_0 = arith.constant 0 : index
    %0 = vector.load %arg0[%c0, %c0_0] : memref<256x3xf32, #tpu.memory_space<vmem>>, vector<256x3xf32>
    %c0_1 = arith.constant 0 : index
    %c0_2 = arith.constant 0 : index
    %1 = vector.load %arg1[%c0_1, %c0_2] : memref<3x16xf32, #tpu.memory_space<vmem>>, vector<3x16xf32>
    %cst = arith.constant dense<0.000000e+00> : vector<256x16xf32>
    %2 = tpu.matmul %0, %1, %cst {dimension_numbers = #tpu.dot_dimension_numbers<[1], [0], [0], [1], [0, 0, 1, 1], [], []>} : vector<256x3xf32>, vector<3x16xf32>, vector<256x16xf32> -> vector<256x16xf32>
    %c0_3 = arith.constant 0 : index
    %c0_4 = arith.constant 0 : index
    %3 = vector.load %arg2[%c0_3, %c0_4] : memref<1x16xf32, #tpu.memory_space<vmem>>, vector<1x16xf32>
    %4 = vector.broadcast %3 : vector<1x16xf32> to vector<256x16xf32>
    %5 = arith.addf %2, %4 : vector<256x16xf32>
    %6 = tpu.iota {dimensions = array<i32: 1>} : vector<256x16xi32>
    %c3_i32 = arith.constant 3 : i32
    %7 = vector.broadcast %c3_i32 : i32 to vector<256x16xi32>
    %8 = arith.cmpi slt, %6, %7 : vector<256x16xi32>
    %cst_5 = arith.constant 0.000000e+00 : f32
    %9 = vector.broadcast %cst_5 : f32 to vector<256x16xf32>
    %10 = arith.maximumf %5, %9 : vector<256x16xf32>
    %11 = arith.select %8, %5, %10 : vector<256x16xi1>, vector<256x16xf32>
    %12 = arith.truncf %11 : vector<256x16xf32> to vector<256x16xbf16>
    %c0_6 = arith.constant 0 : index
    %c0_7 = arith.constant 0 : index
    %13 = vector.load %arg3[%c0_6, %c0_7] : memref<16x64xbf16, #tpu.memory_space<vmem>>, vector<16x64xbf16>
    %cst_8 = arith.constant dense<0.000000e+00> : vector<256x64xf32>
    %14 = tpu.matmul %12, %13, %cst_8 {dimension_numbers = #tpu.dot_dimension_numbers<[1], [0], [0], [1], [0, 0, 1, 1], [], []>} : vector<256x16xbf16>, vector<16x64xbf16>, vector<256x64xf32> -> vector<256x64xf32>
    %c0_9 = arith.constant 0 : index
    %c0_10 = arith.constant 0 : index
    %15 = vector.load %arg4[%c0_9, %c0_10] : memref<1x64xf32, #tpu.memory_space<vmem>>, vector<1x64xf32>
    %16 = vector.broadcast %15 : vector<1x64xf32> to vector<256x64xf32>
    %17 = arith.addf %14, %16 : vector<256x64xf32>
    %cst_11 = arith.constant 0.000000e+00 : f32
    %18 = vector.broadcast %cst_11 : f32 to vector<256x64xf32>
    %19 = arith.maximumf %17, %18 : vector<256x64xf32>
    %20 = arith.truncf %19 : vector<256x64xf32> to vector<256x64xbf16>
    %c0_12 = arith.constant 0 : index
    %c0_13 = arith.constant 0 : index
    %21 = vector.load %arg5[%c0_12, %c0_13] : memref<64x256xbf16, #tpu.memory_space<vmem>>, vector<64x256xbf16>
    %cst_14 = arith.constant dense<0.000000e+00> : vector<256x256xf32>
    %22 = tpu.matmul %20, %21, %cst_14 {dimension_numbers = #tpu.dot_dimension_numbers<[1], [0], [0], [1], [0, 0, 1, 1], [], []>} : vector<256x64xbf16>, vector<64x256xbf16>, vector<256x256xf32> -> vector<256x256xf32>
    %c0_15 = arith.constant 0 : index
    %c0_16 = arith.constant 0 : index
    %23 = vector.load %arg6[%c0_15, %c0_16] : memref<1x256xf32, #tpu.memory_space<vmem>>, vector<1x256xf32>
    %24 = vector.broadcast %23 : vector<1x256xf32> to vector<256x256xf32>
    %25 = arith.addf %22, %24 : vector<256x256xf32>
    %cst_17 = arith.constant 0.000000e+00 : f32
    %26 = vector.broadcast %cst_17 : f32 to vector<256x256xf32>
    %27 = arith.maximumf %25, %26 : vector<256x256xf32>
    %28 = arith.truncf %27 : vector<256x256xf32> to vector<256x256xbf16>
    %c0_18 = arith.constant 0 : index
    %c0_19 = arith.constant 0 : index
    %29 = vector.load %arg7[%c0_18, %c0_19] : memref<256x1024xbf16, #tpu.memory_space<vmem>>, vector<256x1024xbf16>
    %cst_20 = arith.constant dense<0.000000e+00> : vector<256x1024xf32>
    %30 = tpu.matmul %28, %29, %cst_20 {dimension_numbers = #tpu.dot_dimension_numbers<[1], [0], [0], [1], [0, 0, 1, 1], [], []>} : vector<256x256xbf16>, vector<256x1024xbf16>, vector<256x1024xf32> -> vector<256x1024xf32>
    %c0_21 = arith.constant 0 : index
    %c0_22 = arith.constant 0 : index
    %31 = vector.load %arg8[%c0_21, %c0_22] : memref<1x1024xf32, #tpu.memory_space<vmem>>, vector<1x1024xf32>
    %32 = vector.broadcast %31 : vector<1x1024xf32> to vector<256x1024xf32>
    %33 = arith.addf %30, %32 : vector<256x1024xf32>
    %cst_23 = arith.constant 0.000000e+00 : f32
    %34 = vector.broadcast %cst_23 : f32 to vector<256x1024xf32>
    %35 = arith.maximumf %33, %34 : vector<256x1024xf32>
    %36 = vector.extract_strided_slice %35 {offsets = [0, 0], sizes = [128, 1024], strides = [1, 1]} : vector<256x1024xf32> to vector<128x1024xf32>
    %cst_24 = arith.constant dense<0xFF800000> : vector<1024xf32>
    %37 = vector.multi_reduction <maximumf>, %36, %cst_24 [0] : vector<128x1024xf32> to vector<1024xf32>
    %38 = vector.shape_cast %37 : vector<1024xf32> to vector<1x1024xf32>
    %c0_25 = arith.constant 0 : index
    %c0_26 = arith.constant 0 : index
    %39 = vector.load %arg16[%c0_25, %c0_26] : memref<2x1024xf32, #tpu.memory_space<vmem>>, vector<1x1024xf32>
    tpu.vector_store %arg16[%c0_25, %c0_26], %38 {strides = array<i32>} : memref<2x1024xf32, #tpu.memory_space<vmem>>, vector<1x1024xf32>,
    %40 = vector.extract_strided_slice %35 {offsets = [128, 0], sizes = [128, 1024], strides = [1, 1]} : vector<256x1024xf32> to vector<128x1024xf32>
    %cst_27 = arith.constant dense<0xFF800000> : vector<1024xf32>
    %41 = vector.multi_reduction <maximumf>, %40, %cst_27 [0] : vector<128x1024xf32> to vector<1024xf32>
    %42 = vector.shape_cast %41 : vector<1024xf32> to vector<1x1024xf32>
    %c1 = arith.constant 1 : index
    %c0_28 = arith.constant 0 : index
    %43 = vector.load %arg16[%c1, %c0_28] : memref<2x1024xf32, #tpu.memory_space<vmem>>, vector<1x1024xf32>
    tpu.vector_store %arg16[%c1, %c0_28], %42 {strides = array<i32>} : memref<2x1024xf32, #tpu.memory_space<vmem>>, vector<1x1024xf32>,
    %c0_29 = arith.constant 0 : index
    %c0_30 = arith.constant 0 : index
    %44 = vector.load %arg16[%c0_29, %c0_30] : memref<2x1024xf32, #tpu.memory_space<vmem>>, vector<2x1024xf32>
    %45 = arith.truncf %44 : vector<2x1024xf32> to vector<2x1024xbf16>
    %c0_31 = arith.constant 0 : index
    %c0_32 = arith.constant 0 : index
    %46 = vector.load %arg9[%c0_31, %c0_32] : memref<1024x512xbf16, #tpu.memory_space<vmem>>, vector<1024x512xbf16>
    %cst_33 = arith.constant dense<0.000000e+00> : vector<2x512xf32>
    %47 = tpu.matmul %45, %46, %cst_33 {dimension_numbers = #tpu.dot_dimension_numbers<[1], [0], [0], [1], [0, 0, 1, 1], [], []>} : vector<2x1024xbf16>, vector<1024x512xbf16>, vector<2x512xf32> -> vector<2x512xf32>
    %c0_34 = arith.constant 0 : index
    %c0_35 = arith.constant 0 : index
    %48 = vector.load %arg10[%c0_34, %c0_35] : memref<1x512xf32, #tpu.memory_space<vmem>>, vector<1x512xf32>
    %49 = vector.broadcast %48 : vector<1x512xf32> to vector<2x512xf32>
    %50 = arith.addf %47, %49 : vector<2x512xf32>
    %cst_36 = arith.constant 0.000000e+00 : f32
    %51 = vector.broadcast %cst_36 : f32 to vector<2x512xf32>
    %52 = arith.cmpf ogt, %50, %51 : vector<2x512xf32>
    %cst_37 = arith.constant 2.000000e-01 : f32
    %53 = vector.broadcast %cst_37 : f32 to vector<2x512xf32>
    %54 = arith.mulf %53, %50 : vector<2x512xf32>
    %55 = arith.select %52, %50, %54 : vector<2x512xi1>, vector<2x512xf32>
    %56 = arith.truncf %55 : vector<2x512xf32> to vector<2x512xbf16>
    %c0_38 = arith.constant 0 : index
    %c0_39 = arith.constant 0 : index
    %57 = vector.load %arg11[%c0_38, %c0_39] : memref<512x256xbf16, #tpu.memory_space<vmem>>, vector<512x256xbf16>
    %cst_40 = arith.constant dense<0.000000e+00> : vector<2x256xf32>
    %58 = tpu.matmul %56, %57, %cst_40 {dimension_numbers = #tpu.dot_dimension_numbers<[1], [0], [0], [1], [0, 0, 1, 1], [], []>} : vector<2x512xbf16>, vector<512x256xbf16>, vector<2x256xf32> -> vector<2x256xf32>
    %c0_41 = arith.constant 0 : index
    %c0_42 = arith.constant 0 : index
    %59 = vector.load %arg12[%c0_41, %c0_42] : memref<1x256xf32, #tpu.memory_space<vmem>>, vector<1x256xf32>
    %60 = vector.broadcast %59 : vector<1x256xf32> to vector<2x256xf32>
    %61 = arith.addf %58, %60 : vector<2x256xf32>
    %cst_43 = arith.constant 0.000000e+00 : f32
    %62 = vector.broadcast %cst_43 : f32 to vector<2x256xf32>
    %63 = arith.cmpf ogt, %61, %62 : vector<2x256xf32>
    %cst_44 = arith.constant 2.000000e-01 : f32
    %64 = vector.broadcast %cst_44 : f32 to vector<2x256xf32>
    %65 = arith.mulf %64, %61 : vector<2x256xf32>
    %66 = arith.select %63, %61, %65 : vector<2x256xi1>, vector<2x256xf32>
    %c0_45 = arith.constant 0 : index
    %c0_46 = arith.constant 0 : index
    %67 = vector.load %arg13[%c0_45, %c0_46] : memref<256x128xf32, #tpu.memory_space<vmem>>, vector<256x128xf32>
    %cst_47 = arith.constant dense<0.000000e+00> : vector<2x128xf32>
    %68 = tpu.matmul %66, %67, %cst_47 {dimension_numbers = #tpu.dot_dimension_numbers<[1], [0], [0], [1], [0, 0, 1, 1], [], []>} : vector<2x256xf32>, vector<256x128xf32>, vector<2x128xf32> -> vector<2x128xf32>
    %c0_48 = arith.constant 0 : index
    %c0_49 = arith.constant 0 : index
    %69 = vector.load %arg14[%c0_48, %c0_49] : memref<1x128xf32, #tpu.memory_space<vmem>>, vector<1x128xf32>
    %70 = vector.broadcast %69 : vector<1x128xf32> to vector<2x128xf32>
    %71 = arith.addf %68, %70 : vector<2x128xf32>
    %cst_50 = arith.constant dense<0xFF800000> : vector<2xf32>
    %72 = vector.multi_reduction <maximumf>, %71, %cst_50 [1] : vector<2x128xf32> to vector<2xf32>
    %73 = vector.shape_cast %72 : vector<2xf32> to vector<2x1xf32>
    %74 = vector.broadcast %73 : vector<2x1xf32> to vector<2x128xf32>
    %75 = arith.subf %71, %74 : vector<2x128xf32>
    %76 = math.exp %75 : vector<2x128xf32>
    %cst_51 = arith.constant dense<0.000000e+00> : vector<2xf32>
    %77 = vector.multi_reduction <add>, %76, %cst_51 [1] : vector<2x128xf32> to vector<2xf32>
    %78 = vector.shape_cast %77 : vector<2xf32> to vector<2x1xf32>
    %79 = math.log %78 : vector<2x1xf32>
    %80 = vector.broadcast %79 : vector<2x1xf32> to vector<2x128xf32>
    %81 = arith.subf %75, %80 : vector<2x128xf32>
    %c0_52 = arith.constant 0 : index
    %c0_53 = arith.constant 0 : index
    %82 = vector.load %arg15[%c0_52, %c0_53] : memref<2x128xf32, #tpu.memory_space<vmem>>, vector<2x128xf32>
    tpu.vector_store %arg15[%c0_52, %c0_53], %81 {strides = array<i32>} : memref<2x128xf32, #tpu.memory_space<vmem>>, vector<2x128xf32>,
    return
  }
}

</mosaic_0001>

<bundles_post_ra>
// kernel: model_forward.1
= control target key start
LH: loop header
LB: loop body
LE: loop exit
PB: predicated region body
PF: predicated region fallthrough
CT: control target
= control target key end

     0   :  { %20 = vsyncpa [#allocation4], 0  ;;  %s9031_s0 = inlined_call_operand.vmem [shape: f32[256,3], index: 0, kind: input, shape index: {}]   ;;  %s9032_s1 = inlined_call_operand.vmem [shape: f32[3,16], index: 1, kind: input, shape index: {}]   ;;  %s9033_s2 = inlined_call_operand.vmem [shape: f32[1,16], index: 2, kind: input, shape index: {}]   ;;  %s9034_s3 = inlined_call_operand.hbm [shape: bf16[16,64], index: 3, kind: input, shape index: {}]   ;;  %s9035_s4 = inlined_call_operand.hbm [shape: f32[1,64], index: 4, kind: input, shape index: {}]   ;;  %s9036_s5 = inlined_call_operand.vmem [shape: bf16[64,256], index: 5, kind: input, shape index: {}]   ;;  %s9037_s6 = inlined_call_operand.vmem [shape: f32[1,256], index: 6, kind: input, shape index: {}]   ;;  %s9038_s7 = inlined_call_operand.hbm [shape: bf16[256,1024], index: 7, kind: input, shape index: {}]   ;;  %s9039_s8 = inlined_call_operand.hbm [shape: f32[1,1024], index: 8, kind: input, shape index: {}]   ;;  %s9040_s9 = inlined_call_operand.hbm [shape: bf16[1024,512], index: 9, kind: input, shape index: {}]   ;;  %s9041_s10 = inlined_call_operand.hbm [shape: f32[1,512], index: 10, kind: input, shape index: {}]   ;;  %s9042_s11 = inlined_call_operand.hbm [shape: bf16[512,256], index: 11, kind: input, shape index: {}]   ;;  %s9043_s12 = inlined_call_operand.hbm [shape: f32[1,256], index: 12, kind: input, shape index: {}]   ;;  %s9044_s13 = inlined_call_operand.vmem [shape: f32[256,128], index: 13, kind: input, shape index: {}]   ;;  %s9045_s14 = inlined_call_operand.hbm [shape: f32[1,128], index: 14, kind: input, shape index: {}]   ;;  %s9046_s15 = inlined_call_operand.hbm [shape: f32[2,128], index: 15, kind: output, shape index: {}]  }
   0x1   :  { %21 = vsyncpa [#allocation7], 0 }
   0x2   :  { %22 = vsyncpa [#allocation10], 0 }
   0x3   :  { %23 = vsyncpa [#allocation13], 0 }
   0x4   :  { %24 = vsyncpa [#allocation16], 0 }
   0x5   :  { %25 = vsyncpa [#allocation5], 0  ;;  %s7674_s18 = smov [#allocation6]   ;;  %s7675_s20 = smov [#allocation9]  }
   0x6   :  { %s50_s19 = sshll.u32 %s7674_s18, 4  ;;  %s76_s21 = sshll.u32 %s7675_s20, 4  ;;  %s51_s19 = int_to_ptr.vmem [resolvable:$true] %s50_s19  ;;  %s77_s21 = int_to_ptr.vmem [resolvable:$true] %s76_s21 }
   0x7   :  { %s7442_s24 = scalar_lea.hbm %s9035_s4, 16 }
   0x8   :  { %p7443_p0 = scmp.ne.s32.totalorder %s9035_s4, %s7442_s24  ;;  %p7446_p1 = scmp.lt.u32.totalorder %s7442_s24, %s9035_s4 }
   0xa   :  { %p7448_p2 = pnand %p7446_p1, %p7443_p0 }
   0xc   :  { %7451 = shalt.err (!%p7448_p2)
}
   0xd   :  { %s7452_s29 = scalar_lea.vmem %s51_s19, 16  ;;  %s7456_s30 = scalar_lea.vmem %s51_s19, 32 }
   0xe   :  { %p7453_p3 = scmp.ne.s32.totalorder %s51_s19, %s7452_s29  ;;  %p7457_p4 = scmp.lt.s32.totalorder %s51_s19, %s51_s19 }
   0xf   :  { %p7458_p5 = scmp.lt.s32.totalorder %s7456_s30, %s7452_s29 }
  0x11   :  { %p7459_p6 = por %p7458_p5, %p7457_p4 }
  0x13   :  { %p7460_p7 = pnand %p7459_p6, %p7453_p3 }
  0x15   :  { %7463 = shalt.err (!%p7460_p7)
}
  0x16   :  { %53 = dma.hbm_to_vmem [thread:$0]  %s9035_s4, 16, %s51_s19, [#allocation7]  }
  0x17   :  { %s7464_s22 = scalar_lea.hbm %s9039_s8, 128 }
  0x18   :  { %p7465_p8 = scmp.ne.s32.totalorder %s9039_s8, %s7464_s22  ;;  %p7468_p9 = scmp.lt.u32.totalorder %s7464_s22, %s9039_s8 }
  0x1a   :  { %p7470_p10 = pnand %p7468_p9, %p7465_p8 }
  0x1c   :  { %7473 = shalt.err (!%p7470_p10)
}
  0x1d   :  { %s7474_s27 = scalar_lea.vmem %s77_s21, 128  ;;  %p7479_p12 = scmp.lt.s32.totalorder %s77_s21, %s77_s21 }
  0x1e   :  { %p7475_p11 = scmp.ne.s32.totalorder %s77_s21, %s7474_s27  ;;  %p7480_p13 = scmp.lt.s32.totalorder %s7474_s27, %s7474_s27 }
  0x20   :  { %p7481_p0 = por %p7480_p13, %p7479_p12 }
  0x22   :  { %p7482_p1 = pnand %p7481_p0, %p7475_p11 }
  0x24   :  { %7485 = shalt.err (!%p7482_p1)
}
  0x25   :  { %79 = dma.hbm_to_vmem [thread:$0]  %s9039_s8, 128, %s77_s21, [#allocation10]  }
  0x26   :  { %s7676_s28 = smov [#allocation12]   ;;  %s7677_s30 = smov [#allocation15]  }
  0x27   :  { %s98_s29 = sshll.u32 %s7676_s28, 4  ;;  %s120_s16 = sshll.u32 %s7677_s30, 4  ;;  %s99_s29 = int_to_ptr.vmem [resolvable:$true] %s98_s29  ;;  %s121_s16 = int_to_ptr.vmem [resolvable:$true] %s120_s16 }
  0x28   :  { %s7486_s20 = scalar_lea.hbm %s9041_s10, 64 }
  0x29   :  { %p7487_p2 = scmp.ne.s32.totalorder %s9041_s10, %s7486_s20  ;;  %p7490_p3 = scmp.lt.u32.totalorder %s7486_s20, %s9041_s10 }
  0x2b   :  { %p7492_p4 = pnand %p7490_p3, %p7487_p2 }
  0x2d   :  { %7495 = shalt.err (!%p7492_p4)
}
  0x2e   :  { %s7496_s8 = scalar_lea.vmem %s99_s29, 64  ;;  %p7501_p6 = scmp.lt.s32.totalorder %s99_s29, %s99_s29 }
  0x2f   :  { %p7497_p5 = scmp.ne.s32.totalorder %s99_s29, %s7496_s8  ;;  %p7502_p7 = scmp.lt.s32.totalorder %s7496_s8, %s7496_s8 }
  0x31   :  { %p7503_p8 = por %p7502_p7, %p7501_p6 }
  0x33   :  { %p7504_p9 = pnand %p7503_p8, %p7497_p5 }
  0x35   :  { %7507 = shalt.err (!%p7504_p9)
}
  0x36   :  { %101 = dma.hbm_to_vmem [thread:$0]  %s9041_s10, 64, %s99_s29, [#allocation13]  }
  0x37   :  { %s7508_s19 = scalar_lea.hbm %s9043_s12, 32 }
  0x38   :  { %p7509_p10 = scmp.ne.s32.totalorder %s9043_s12, %s7508_s19  ;;  %p7512_p11 = scmp.lt.u32.totalorder %s7508_s19, %s9043_s12 }
  0x3a   :  { %p7514_p12 = pnand %p7512_p11, %p7509_p10 }
  0x3c   :  { %7517 = shalt.err (!%p7514_p12)
}
  0x3d   :  { %s7518_s20 = scalar_lea.vmem %s121_s16, 32  ;;  %p7523_p0 = scmp.lt.s32.totalorder %s121_s16, %s121_s16 }
  0x3e   :  { %p7519_p13 = scmp.ne.s32.totalorder %s121_s16, %s7518_s20  ;;  %p7524_p1 = scmp.lt.s32.totalorder %s7518_s20, %s7518_s20 }
  0x40   :  { %p7525_p2 = por %p7524_p1, %p7523_p0 }
  0x42   :  { %p7526_p3 = pnand %p7525_p2, %p7519_p13 }
  0x44   :  { %7529 = shalt.err (!%p7526_p3)
}
  0x45   :  { %123 = dma.hbm_to_vmem [thread:$0]  %s9043_s12, 32, %s121_s16, [#allocation16]  }
  0x46   :  { %s7678_s22 = smov [#allocation3]   ;;  %s7530_s8 = scalar_lea.hbm %s9034_s3, 128 }
  0x47   :  { %s37_s23 = sshll.u32 %s7678_s22, 4  ;;  %p7531_p4 = scmp.ne.s32.totalorder %s9034_s3, %s7530_s8  ;;  %s38_s23 = int_to_ptr.vmem [resolvable:$true] %s37_s23 }
  0x48   :  { %p7534_p5 = scmp.lt.u32.totalorder %s7530_s8, %s9034_s3 }
  0x4a   :  { %p7536_p6 = pnand %p7534_p5, %p7531_p4 }
  0x4c   :  { %7539 = shalt.err (!%p7536_p6)
}
  0x4d   :  { %s7540_s19 = scalar_lea.vmem %s38_s23, 128  ;;  %p7545_p8 = scmp.lt.s32.totalorder %s38_s23, %s38_s23 }
  0x4e   :  { %p7541_p7 = scmp.ne.s32.totalorder %s38_s23, %s7540_s19  ;;  %p7546_p9 = scmp.lt.s32.totalorder %s7540_s19, %s7540_s19 }
  0x50   :  { %p7547_p10 = por %p7546_p9, %p7545_p8 }
  0x52   :  { %p7548_p11 = pnand %p7547_p10, %p7541_p7 }
  0x54   :  { %7551 = shalt.err (!%p7548_p11)
}
  0x55   :  { %s7679_s12 = smov 64   ;;  %s7680_s16 = smov 4  }
  0x56   :  { %43 = dma.hbm_to_vmem [thread:$0]  %s9034_s3, 128, %s38_s23, [#allocation4], %s7679_s12, %s7679_s12, %s7680_s16  }
  0x57   :  { %s7681_s17 = smov [#allocation8]   ;;  %s7552_s29 = scalar_lea.hbm %s9038_s7, 16384 }
  0x58   :  { %s63_s18 = sshll.u32 %s7681_s17, 4  ;;  %p7553_p12 = scmp.ne.s32.totalorder %s9038_s7, %s7552_s29  ;;  %s64_s18 = int_to_ptr.vmem [resolvable:$true] %s63_s18 }
  0x59   :  { %p7556_p13 = scmp.lt.u32.totalorder %s7552_s29, %s9038_s7 }
  0x5b   :  { %p7558_p0 = pnand %p7556_p13, %p7553_p12 }
  0x5d   :  { %7561 = shalt.err (!%p7558_p0)
}
  0x5e   :  { %s7562_s21 = scalar_lea.vmem %s64_s18, 16384  ;;  %p7567_p2 = scmp.lt.s32.totalorder %s64_s18, %s64_s18 }
  0x5f   :  { %p7563_p1 = scmp.ne.s32.totalorder %s64_s18, %s7562_s21  ;;  %p7568_p3 = scmp.lt.s32.totalorder %s7562_s21, %s7562_s21 }
  0x61   :  { %p7569_p4 = por %p7568_p3, %p7567_p2 }
  0x63   :  { %p7570_p5 = pnand %p7569_p4, %p7563_p1 }
  0x65   :  { %7573 = shalt.err (!%p7570_p5)
}
  0x66   :  { %s7682_s3 = smov 512   ;;  %s7683_s23 = smov 32  }
  0x67   :  { %69 = dma.hbm_to_vmem [thread:$0]  %s9038_s7, 16384, %s64_s18, [#allocation7], %s7682_s3, %s7682_s3, %s7683_s23  }
  0x68   :  { %s7684_s4 = smov [#allocation11]   ;;  %s7574_s28 = scalar_lea.hbm %s9040_s9, 32768 }
  0x69   :  { %s85_s19 = sshll.u32 %s7684_s4, 4  ;;  %p7575_p6 = scmp.ne.s32.totalorder %s9040_s9, %s7574_s28  ;;  %s86_s19 = int_to_ptr.vmem [resolvable:$true] %s85_s19 }
  0x6a   :  { %p7578_p7 = scmp.lt.u32.totalorder %s7574_s28, %s9040_s9 }
  0x6c   :  { %p7580_p8 = pnand %p7578_p7, %p7575_p6 }
  0x6e   :  { %7583 = shalt.err (!%p7580_p8)
}
  0x6f   :  { %s7584_s29 = scalar_lea.vmem %s86_s19, 32768  ;;  %p7589_p10 = scmp.lt.s32.totalorder %s86_s19, %s86_s19 }
  0x70   :  { %p7585_p9 = scmp.ne.s32.totalorder %s86_s19, %s7584_s29  ;;  %p7590_p11 = scmp.lt.s32.totalorder %s7584_s29, %s7584_s29 }
  0x72   :  { %p7591_p12 = por %p7590_p11, %p7589_p10 }
  0x74   :  { %p7592_p13 = pnand %p7591_p12, %p7585_p9 }
  0x76   :  { %7595 = shalt.err (!%p7592_p13)
}
  0x77   :  { %s7685_s7 = smov 256   ;;  %s7686_s18 = smov 16  }
  0x78   :  { %91 = dma.hbm_to_vmem [thread:$0]  %s9040_s9, 32768, %s86_s19, [#allocation10], %s7685_s7, %s7685_s7, %s7686_s18  }
  0x79   :  { %s7687_s25 = smov [#allocation14]   ;;  %s7596_s23 = scalar_lea.hbm %s9042_s11, 8192 }
  0x7a   :  { %s107_s8 = sshll.u32 %s7687_s25, 4  ;;  %p7597_p0 = scmp.ne.s32.totalorder %s9042_s11, %s7596_s23  ;;  %s108_s8 = int_to_ptr.vmem [resolvable:$true] %s107_s8 }
  0x7b   :  { %p7600_p1 = scmp.lt.u32.totalorder %s7596_s23, %s9042_s11 }
  0x7d   :  { %p7602_p2 = pnand %p7600_p1, %p7597_p0 }
  0x7f   :  { %7605 = shalt.err (!%p7602_p2)
}
  0x80   :  { %s7606_s16 = scalar_lea.vmem %s108_s8, 8192  ;;  %p7611_p4 = scmp.lt.s32.totalorder %s108_s8, %s108_s8 }
  0x81   :  { %p7607_p3 = scmp.ne.s32.totalorder %s108_s8, %s7606_s16  ;;  %p7612_p5 = scmp.lt.s32.totalorder %s7606_s16, %s7606_s16 }
  0x83   :  { %p7613_p6 = por %p7612_p5, %p7611_p4 }
  0x85   :  { %p7614_p7 = pnand %p7613_p6, %p7607_p3 }
  0x87   :  { %7617 = shalt.err (!%p7614_p7)
}
  0x88   :  { %s7688_s9 = smov 128   ;;  %s7689_s19 = smov 8  }
  0x89   :  { %113 = dma.hbm_to_vmem [thread:$0]  %s9042_s11, 8192, %s108_s8, [#allocation13], %s7688_s9, %s7688_s9, %s7689_s19  }
  0x8a   :  { %s7690_s17 = smov [#allocation17]   ;;  %s7618_s7 = scalar_lea.hbm %s9045_s14, 16 }
  0x8b   :  { %s132_s20 = sshll.u32 %s7690_s17, 4  ;;  %p7619_p8 = scmp.ne.s32.totalorder %s9045_s14, %s7618_s7  ;;  %s133_s20 = int_to_ptr.vmem [resolvable:$true] %s132_s20 }
  0x8c   :  { %p7622_p9 = scmp.lt.u32.totalorder %s7618_s7, %s9045_s14 }
  0x8e   :  { %p7624_p10 = pnand %p7622_p9, %p7619_p8 }
  0x90   :  { %7627 = shalt.err (!%p7624_p10)
}
  0x91   :  { %s7628_s21 = scalar_lea.vmem %s133_s20, 16  ;;  %s7632_s11 = scalar_lea.vmem %s133_s20, 32 }
  0x92   :  { %p7629_p11 = scmp.ne.s32.totalorder %s133_s20, %s7628_s21  ;;  %p7633_p12 = scmp.lt.s32.totalorder %s133_s20, %s133_s20 }
  0x93   :  { %p7634_p13 = scmp.lt.s32.totalorder %s7632_s11, %s7628_s21 }
  0x95   :  { %p7635_p0 = por %p7634_p13, %p7633_p12 }
  0x97   :  { %p7636_p1 = pnand %p7635_p0, %p7629_p11 }
  0x99   :  { %7639 = shalt.err (!%p7636_p1)
}
  0x9a   :  { %135 = dma.hbm_to_vmem [thread:$0]  %s9045_s14, 16, %s133_s20, [#allocation16]  }
  0x9b   :  { %7662 = dma.done.wait [#allocation4], 128  }
  0x9c   :  { %7663 = vsyncadd [#allocation4], 4294967168 }
  0x9d   :  { %7664 = dma.done.wait [#allocation7], 16400  }
  0x9e   :  { %7665 = vsyncadd [#allocation7], 4294950896 }
  0x9f   :  { %7666 = dma.done.wait [#allocation10], 32896  }
  0xa0   :  { %7667 = vsyncadd [#allocation10], 4294934400 }
  0xa1   :  { %7668 = dma.done.wait [#allocation13], 8256  }
  0xa2   :  { %7669 = vsyncadd [#allocation13], 4294959040 }
  0xa3   :  { %7670 = dma.done.wait [#allocation16], 48  }
  0xa4   :  { %7671 = vsyncadd [#allocation16], 4294967248  ;;  %vm301_vm0 = vcmask 1042432   ;;  %vm204_vm1 = vcmask 23552   ;;  %v196_v0 = vld [vmem:[%s9032_s1] sm:$0x7]  ;;  %v530_v42 = vlaneseq }
  0xa5   :  { %v164_v1 = vld [vmem:[%s9031_s0] sm:$0xff]  ;;  %v165_v2 = vld [vmem:[%s9031_s0 + $0x8] sm:$0xff]  ;;  %6769 = vmatprep.subr.msk.mxu0 %vm301_vm0, %v196_v0  ;;  %v166_v3 = vld [vmem:[%s9031_s0 + $0x10] sm:$0xff]  ;;  %6885 = vmatprep.subr.msk.mxu1 %vm301_vm0, %v196_v0  ;;  %vm628_vm3 = vcmask 130048   ;;  %vm946_vm4 = vcmask 523264   ;;  %vm6126_vm11 = vcmask 1041408  }
  0xa6   :  { %6771 = vmatprep.mubr.msk.f32.mxu0 %vm204_vm1, %v164_v1  ;;  %6770 = vmatpush3.msk.msra.mxu0 %vm301_vm0, %v196_v0  ;;  %v167_v4 = vld [vmem:[%s9031_s0 + $0x18] sm:$0xff]  ;;  %v168_v5 = vld [vmem:[%s9031_s0 + $0x20] sm:$0xff]  ;;  %v169_v6 = vld [vmem:[%s9031_s0 + $0x28] sm:$0xff]  ;;  %v8044_v44 = vand.u32 127, %v530_v42 }
  0xa7   :  { %6772 = vmatmul.mubr.msk.f32.vlgmr.msra.gmra.mrb[0].mxu0 %vm204_vm1, %v165_v2  ;;  %6886 = vmatpush3.msk.msra.mxu1 %vm301_vm0, %v196_v0  ;;  %v170_v7 = vld [vmem:[%s9031_s0 + $0x30] sm:$0xff]  ;;  %v191_v9 = vld [vmem:[%s9031_s0 + $0xd8] sm:$0xff]  ;;  %v192_v10 = vld [vmem:[%s9031_s0 + $0xe0] sm:$0xff] }
  0xa8   :  { %6774 = vmatprep.mubr.msk.f32.mxu0 %vm204_vm1, %v166_v3  ;;  %v190_v8 = vld [vmem:[%s9031_s0 + $0xd0] sm:$0xff]  ;;  %v171_v11 = vld [vmem:[%s9031_s0 + $0x38] sm:$0xff]  ;;  %v193_v12 = vld [vmem:[%s9031_s0 + $0xe8] sm:$0xff]  ;;  %vm532_vm2 = vcmp.lt.s32.totalorder %v8044_v44, 3 }
  0xa9   :  { %6810 = vmatprep.mubr.msk.f32.mxu1 %vm204_vm1, %v190_v8  ;;  %v172_v13 = vld [vmem:[%s9031_s0 + $0x40] sm:$0xff]  ;;  %v194_v14 = vld [vmem:[%s9031_s0 + $0xf0] sm:$0xff]  ;;  %v173_v15 = vld [vmem:[%s9031_s0 + $0x48] sm:$0xff] }
  0xaa   :  { %6811 = vmatmul.mubr.msk.f32.vlgmr.msra.gmra.mrb[0].mxu1 %vm204_vm1, %v191_v9  ;;  %v195_v16 = vld [vmem:[%s9031_s0 + $0xf8] sm:$0xff]  ;;  %v174_v17 = vld [vmem:[%s9031_s0 + $0x50] sm:$0xff]  ;;  %v176_v19 = vld [vmem:[%s9031_s0 + $0x60] sm:$0xff] }
  0xab   :  { %6775 = vmatmul.mubr.msk.f32.gmra.mrb[2].mxu0 %vm204_vm1, %v167_v4  ;;  %6813 = vmatprep.mubr.msk.f32.mxu1 %vm204_vm1, %v192_v10  ;;  %v175_v18 = vld [vmem:[%s9031_s0 + $0x58] sm:$0xff]  ;;  %v177_v20 = vld [vmem:[%s9031_s0 + $0x68] sm:$0xff]  ;;  %v178_v21 = vld [vmem:[%s9031_s0 + $0x70] sm:$0xff] }
  0xac   :  { %6777 = vmatprep.mubr.msk.f32.mxu0 %vm204_vm1, %v168_v5  ;;  %v179_v22 = vld [vmem:[%s9031_s0 + $0x78] sm:$0xff]  ;;  %v180_v23 = vld [vmem:[%s9031_s0 + $0x80] sm:$0xff]  ;;  %v181_v24 = vld [vmem:[%s9031_s0 + $0x88] sm:$0xff] }
  0xad   :  { %v182_v25 = vld [vmem:[%s9031_s0 + $0x90] sm:$0xff]  ;;  %v183_v26 = vld [vmem:[%s9031_s0 + $0x98] sm:$0xff]  ;;  %v184_v27 = vld [vmem:[%s9031_s0 + $0xa0] sm:$0xff] }
  0xae   :  { %6814 = vmatmul.mubr.msk.f32.gmra.mrb[2].mxu1 %vm204_vm1, %v193_v12  ;;  %v185_v28 = vld [vmem:[%s9031_s0 + $0xa8] sm:$0xff]  ;;  %v186_v29 = vld [vmem:[%s9031_s0 + $0xb0] sm:$0xff]  ;;  %v187_v30 = vld [vmem:[%s9031_s0 + $0xb8] sm:$0xff] }
  0xaf   :  { %6778 = vmatmul.mubr.msk.f32.gmra.mrb[4].mxu0 %vm204_vm1, %v169_v6  ;;  %6816 = vmatprep.mubr.msk.f32.mxu1 %vm204_vm1, %v194_v14  ;;  %v188_v31 = vld [vmem:[%s9031_s0 + $0xc0] sm:$0xff]  ;;  %v189_v32 = vld [vmem:[%s9031_s0 + $0xc8] sm:$0xff]  ;;  %v6942_v33 = vld [vmem:[#allocation3] sm:$0xff]  }
  0xb0   :  { %6780 = vmatprep.mubr.msk.f32.mxu0 %vm204_vm1, %v170_v7  ;;  %6819 = vmatprep.subr.bf16.mxu1 %v6942_v33  ;;  %v6943_v34 = vld [vmem:[%s9036_s5] ss:$8 sps:$4 sm:$0xff]   ;;  %v6945_v35 = vld [vmem:[%s9036_s5 + $0x4] ss:$8 sps:$4 sm:$0xff]   ;;  %v6948_v36 = vld [vmem:[%s9036_s5 + $0x14] ss:$8 sps:$4 sm:$0xff]  }
  0xb1   :  { %6820 = vmatpush3.bf16.msra.mxu1 %v6942_v33  ;;  %995 = vmatprep.subr.bf16.mxu0 %v6945_v35  ;;  %v6946_v37 = vld [vmem:[%s9036_s5 + $0x10] ss:$8 sps:$4 sm:$0xff]   ;;  %v6951_v38 = vld [vmem:[%s9036_s5 + $0x24] ss:$8 sps:$4 sm:$0xff]   ;;  %v6949_v39 = vld [vmem:[%s9036_s5 + $0x20] ss:$8 sps:$4 sm:$0xff]  }
  0xb2   :  { %6817 = vmatmul.mubr.msk.f32.gmra.mrb[4].mxu1 %vm204_vm1, %v195_v16  ;;  %996 = vmatpush1.bf16.msra.mxu0 %v6943_v34  ;;  %v6954_v40 = vld [vmem:[%s9036_s5 + $0x34] ss:$8 sps:$4 sm:$0xff]   ;;  %v6952_v41 = vld [vmem:[%s9036_s5 + $0x30] ss:$8 sps:$4 sm:$0xff]   ;;  %v8041_v43 = vld [vmem:[%s9033_s2] ss:$0 sm:$0xff] }
  0xb3   :  { %6781 = vmatmul.mubr.msk.f32.gmra.mrb[6].mxu0 %vm204_vm1, %v171_v11  ;;  %997 = vmatprep.subr.bf16.mxu0 %v6948_v36  ;;  %v1285_v44 = vld [vmem:[#allocation8 + $0x8] sm:$0xff] }
  0xb4   :  { %6783 = vmatprep.mubr.msk.f32.mxu0 %vm204_vm1, %v172_v13 }
  0xb6   :  { %998 = vmatpush1.bf16.msra.mxu0 %v6946_v37 }
  0xb7   :  { %6784 = vmatmul.mubr.msk.f32.gmra.mrb[8].mxu0 %vm204_vm1, %v173_v15  ;;  %999 = vmatprep.subr.bf16.mxu0 %v6951_v38 }
  0xb8   :  { %6786 = vmatprep.mubr.msk.f32.mxu0 %vm204_vm1, %v174_v17 }
  0xba   :  { %1000 = vmatpush1.bf16.msra.mxu0 %v6949_v39 }
  0xbb   :  { %6787 = vmatmul.mubr.msk.f32.gmra.mrb[10].mxu0 %vm204_vm1, %v175_v18  ;;  %1001 = vmatprep.subr.bf16.mxu0 %v6954_v40 }
  0xbc   :  { %6789 = vmatprep.mubr.msk.f32.mxu0 %vm204_vm1, %v176_v19 }
  0xbe   :  { %1002 = vmatpush1.bf16.msra.mxu0 %v6952_v41 }
  0xbf   :  { %6790 = vmatmul.mubr.msk.f32.gmra.mrb[12].mxu0 %vm204_vm1, %v177_v20 }
  0xc0   :  { %6792 = vmatprep.mubr.msk.f32.mxu0 %vm204_vm1, %v178_v21 }
  0xc3   :  { %6793 = vmatmul.mubr.msk.f32.gmra.mrb[14].mxu0 %vm204_vm1, %v179_v22 }
  0xc4   :  { %6795 = vmatprep.mubr.msk.f32.mxu0 %vm204_vm1, %v180_v23 }
  0xc7   :  { %6796 = vmatmul.mubr.msk.f32.gmra.mrb[16].mxu0 %vm204_vm1, %v181_v24 }
  0xc8   :  { %6798 = vmatprep.mubr.msk.f32.mxu0 %vm204_vm1, %v182_v25 }
  0xcb   :  { %6799 = vmatmul.mubr.msk.f32.gmra.mrb[18].mxu0 %vm204_vm1, %v183_v26 }
  0xcc   :  { %6801 = vmatprep.mubr.msk.f32.mxu0 %vm204_vm1, %v184_v27 }
  0xcf   :  { %6802 = vmatmul.mubr.msk.f32.gmra.mrb[20].mxu0 %vm204_vm1, %v185_v28 }
  0xd0   :  { %6804 = vmatprep.mubr.msk.f32.mxu0 %vm204_vm1, %v186_v29 }
  0xd3   :  { %6805 = vmatmul.mubr.msk.f32.gmra.mrb[22].mxu0 %vm204_vm1, %v187_v30 }
  0xd4   :  { %6807 = vmatprep.mubr.msk.f32.mxu0 %vm204_vm1, %v188_v31 }
  0xd7   :  { %6808 = vmatmul.mubr.msk.f32.gmra.mrb[24].mxu0 %vm204_vm1, %v189_v32 }
 0x17a   :  { %v6773_v45 = vpop.f32.mrb[0].mxu0 }
 0x17b   :  { %v377_v46 = vadd.f32 %v6773_v45, %v8041_v43  ;;  %v371_v47 = vpop.f32.mrb[1].mxu0 }
 0x17c   :  { %v372_v48 = vadd.f32 %v8041_v43, %v371_v47 }
 0x17d   :  { %v534_v49 = vmax.f32 %v377_v46, 0.0  ;;  %v6812_v61 = vpop.f32.mrb[0].mxu1 }
 0x17e   :  { %v533_v50 = vmax.f32 %v372_v48, 0.0  ;;  %v6776_v51 = vpop.f32.mrb[2].mxu0  ;;  %v507_v1 = vadd.f32 %v6812_v61, %v8041_v43  ;;  %v501_v2 = vpop.f32.mrb[1].mxu1 }
 0x17f   :  { %v566_v52 = vsel %vm532_vm2, %v377_v46, %v534_v49  ;;  %v387_v53 = vadd.f32 %v6776_v51, %v8041_v43  ;;  %v381_v54 = vpop.f32.mrb[3].mxu0  ;;  %v502_v5 = vadd.f32 %v8041_v43, %v501_v2 }
 0x180   :  { %v565_v55 = vsel %vm532_vm2, %v372_v48, %v533_v50  ;;  %v382_v56 = vadd.f32 %v8041_v43, %v381_v54  ;;  %v560_v8 = vmax.f32 %v507_v1, 0.0 }
 0x181   :  { %v597_v57 = vpack.c.bf16 %v566_v52, %v565_v55  ;;  %v536_v58 = vmax.f32 %v387_v53, 0.0  ;;  %v559_v11 = vmax.f32 %v502_v5, 0.0  ;;  %v6815_v12 = vpop.f32.mrb[2].mxu1 }
 0x182   :  { %v535_v59 = vmax.f32 %v382_v56, 0.0  ;;  %v6779_v60 = vpop.f32.mrb[4].mxu0  ;;  %v8070_v16 = vsel %vm532_vm2, %v507_v1, %v560_v8  ;;  %v517_v17 = vadd.f32 %v6815_v12, %v8041_v43  ;;  %v511_v18 = vpop.f32.mrb[3].mxu1 }
 0x183   :  { %v568_v62 = vsel %vm532_vm2, %v387_v53, %v536_v58  ;;  %6821 = vmatprep.mubr.msk.bf16.mxu1 %vm628_vm3, %v597_v57  ;;  %v397_v63 = vadd.f32 %v6779_v60, %v8041_v43  ;;  %v391_v0 = vpop.f32.mrb[5].mxu0  ;;  %v8078_v21 = vsel %vm532_vm2, %v502_v5, %v559_v11  ;;  %v512_v22 = vadd.f32 %v8041_v43, %v511_v18 }
 0x184   :  { %v567_v3 = vsel %vm532_vm2, %v382_v56, %v535_v59  ;;  %v392_v4 = vadd.f32 %v8041_v43, %v391_v0  ;;  %v610_v25 = vpack.c.bf16 %v8070_v16, %v8078_v21  ;;  %v562_v26 = vmax.f32 %v517_v17, 0.0  ;;  %v8187_v16 = vld [vmem:[#allocation6] ss:$0 sm:$0xff] }
 0x185   :  { %v598_v6 = vpack.c.bf16 %v568_v62, %v567_v3  ;;  %v538_v7 = vmax.f32 %v397_v63, 0.0  ;;  %v561_v29 = vmax.f32 %v512_v22, 0.0  ;;  %v6818_v30 = vpop.f32.mrb[4].mxu1 }
 0x186   :  { %v537_v9 = vmax.f32 %v392_v4, 0.0  ;;  %v6782_v10 = vpop.f32.mrb[6].mxu0  ;;  %v8089_v34 = vsel %vm532_vm2, %v517_v17, %v562_v26  ;;  %v527_v35 = vadd.f32 %v6818_v30, %v8041_v43  ;;  %v521_v36 = vpop.f32.mrb[5].mxu1 }
 0x187   :  { %v570_v13 = vsel %vm532_vm2, %v397_v63, %v538_v7  ;;  %6822 = vmatmul.mubr.msk.bf16.vlgmr.msra.gmra.mrb[8].mxu1 %vm628_vm3, %v598_v6  ;;  %v407_v14 = vadd.f32 %v6782_v10, %v8041_v43  ;;  %v401_v15 = vpop.f32.mrb[7].mxu0  ;;  %v8097_v39 = vsel %vm532_vm2, %v512_v22, %v561_v29  ;;  %v522_v40 = vadd.f32 %v8041_v43, %v521_v36 }
 0x188   :  { %v569_v19 = vsel %vm532_vm2, %v392_v4, %v537_v9  ;;  %v402_v20 = vadd.f32 %v8041_v43, %v401_v15  ;;  %v611_v46 = vpack.c.bf16 %v8089_v34, %v8097_v39  ;;  %v564_v47 = vmax.f32 %v527_v35, 0.0 }
 0x189   :  { %v599_v23 = vpack.c.bf16 %v570_v13, %v569_v19  ;;  %v540_v24 = vmax.f32 %v407_v14, 0.0  ;;  %v563_v50 = vmax.f32 %v522_v40, 0.0 }
 0x18a   :  { %v539_v27 = vmax.f32 %v402_v20, 0.0  ;;  %v6785_v28 = vpop.f32.mrb[8].mxu0  ;;  %v8108_v54 = vsel %vm532_vm2, %v527_v35, %v564_v47 }
 0x18b   :  { %v572_v31 = vsel %vm532_vm2, %v407_v14, %v540_v24  ;;  %6825 = vmatprep.mubr.msk.bf16.mxu1 %vm628_vm3, %v599_v23  ;;  %v417_v32 = vadd.f32 %v6785_v28, %v8041_v43  ;;  %v411_v33 = vpop.f32.mrb[9].mxu0  ;;  %v8115_v57 = vsel %vm532_vm2, %v522_v40, %v563_v50 }
 0x18c   :  { %v571_v37 = vsel %vm532_vm2, %v402_v20, %v539_v27  ;;  %v412_v38 = vadd.f32 %v8041_v43, %v411_v33  ;;  %v612_v60 = vpack.c.bf16 %v8108_v54, %v8115_v57 }
 0x18d   :  { %v600_v41 = vpack.c.bf16 %v572_v31, %v571_v37  ;;  %v542_v45 = vmax.f32 %v417_v32, 0.0 }
 0x18e   :  { %v541_v48 = vmax.f32 %v412_v38, 0.0  ;;  %v6788_v49 = vpop.f32.mrb[10].mxu0 }
 0x18f   :  { %6826 = vmatmul.mubr.msk.bf16.gmra.mrb[12].mxu1 %vm628_vm3, %v600_v41  ;;  %v574_v51 = vsel %vm532_vm2, %v417_v32, %v542_v45  ;;  %v427_v52 = vadd.f32 %v6788_v49, %v8041_v43  ;;  %v421_v53 = vpop.f32.mrb[11].mxu0 }
 0x190   :  { %v573_v55 = vsel %vm532_vm2, %v412_v38, %v541_v48  ;;  %v422_v56 = vadd.f32 %v8041_v43, %v421_v53 }
 0x191   :  { %v601_v58 = vpack.c.bf16 %v574_v51, %v573_v55  ;;  %v544_v59 = vmax.f32 %v427_v52, 0.0 }
 0x192   :  { %v543_v61 = vmax.f32 %v422_v56, 0.0  ;;  %v6791_v62 = vpop.f32.mrb[12].mxu0 }
 0x193   :  { %v576_v63 = vsel %vm532_vm2, %v427_v52, %v544_v59  ;;  %6829 = vmatprep.mubr.msk.bf16.mxu1 %vm628_vm3, %v601_v58  ;;  %v437_v0 = vadd.f32 %v6791_v62, %v8041_v43  ;;  %v431_v1 = vpop.f32.mrb[13].mxu0 }
 0x194   :  { %v575_v2 = vsel %vm532_vm2, %v422_v56, %v543_v61  ;;  %v432_v3 = vadd.f32 %v8041_v43, %v431_v1 }
 0x195   :  { %v602_v4 = vpack.c.bf16 %v576_v63, %v575_v2  ;;  %v546_v5 = vmax.f32 %v437_v0, 0.0 }
 0x196   :  { %v545_v6 = vmax.f32 %v432_v3, 0.0  ;;  %v6794_v7 = vpop.f32.mrb[14].mxu0 }
 0x197   :  { %6830 = vmatmul.mubr.msk.bf16.gmra.mrb[16].mxu1 %vm628_vm3, %v602_v4  ;;  %v578_v8 = vsel %vm532_vm2, %v437_v0, %v546_v5  ;;  %v447_v9 = vadd.f32 %v6794_v7, %v8041_v43  ;;  %v441_v10 = vpop.f32.mrb[15].mxu0 }
 0x198   :  { %v577_v11 = vsel %vm532_vm2, %v432_v3, %v545_v6  ;;  %v442_v12 = vadd.f32 %v8041_v43, %v441_v10 }
 0x199   :  { %v603_v13 = vpack.c.bf16 %v578_v8, %v577_v11  ;;  %v548_v14 = vmax.f32 %v447_v9, 0.0 }
 0x19a   :  { %v547_v15 = vmax.f32 %v442_v12, 0.0  ;;  %v6797_v17 = vpop.f32.mrb[16].mxu0 }
 0x19b   :  { %v580_v18 = vsel %vm532_vm2, %v447_v9, %v548_v14  ;;  %6833 = vmatprep.mubr.msk.bf16.mxu1 %vm628_vm3, %v603_v13  ;;  %v457_v19 = vadd.f32 %v6797_v17, %v8041_v43  ;;  %v451_v20 = vpop.f32.mrb[17].mxu0  ;;  %v1284_v14 = vld [vmem:[#allocation8] sm:$0xff] }
 0x19c   :  { %v579_v22 = vsel %vm532_vm2, %v442_v12, %v547_v15  ;;  %v452_v23 = vadd.f32 %v8041_v43, %v451_v20  ;;  %v1289_v12 = vld [vmem:[#allocation8 + $0x28] sm:$0xff]  ;;  %v1288_v20 = vld [vmem:[#allocation8 + $0x20] sm:$0xff] }
 0x19d   :  { %v604_v24 = vpack.c.bf16 %v580_v18, %v579_v22  ;;  %v550_v26 = vmax.f32 %v457_v19, 0.0  ;;  %v6238_v13 = vcombine.high %v1285_v44, %v1289_v12  ;;  %v1293_v18 = vld [vmem:[#allocation8 + $0x48] sm:$0xff] }
 0x19e   :  { %v549_v27 = vmax.f32 %v452_v23, 0.0  ;;  %v6800_v28 = vpop.f32.mrb[18].mxu0 }
 0x19f   :  { %6834 = vmatmul.mubr.msk.bf16.gmra.mrb[20].mxu1 %vm628_vm3, %v604_v24  ;;  %v582_v29 = vsel %vm532_vm2, %v457_v19, %v550_v26  ;;  %v467_v30 = vadd.f32 %v6800_v28, %v8041_v43  ;;  %v461_v31 = vpop.f32.mrb[19].mxu0  ;;  %2287 = vmatprep.subr.bf16.mxu0 %v6238_v13  ;;  %v1297_v19 = vld [vmem:[#allocation8 + $0x68] sm:$0xff]  ;;  %v6235_v24 = vcombine.low %v1284_v14, %v1288_v20  ;;  %v1296_v28 = vld [vmem:[#allocation8 + $0x60] sm:$0xff] }
 0x1a0   :  { %v581_v32 = vsel %vm532_vm2, %v452_v23, %v549_v27  ;;  %v462_v33 = vadd.f32 %v8041_v43, %v461_v31  ;;  %v6236_v26 = vcombine.high %v1284_v14, %v1288_v20  ;;  %v1292_v27 = vld [vmem:[#allocation8 + $0x40] sm:$0xff]  ;;  %v1317_v13 = vld [vmem:[#allocation8 + $0x108] sm:$0xff] }
 0x1a1   :  { %v605_v35 = vpack.c.bf16 %v582_v29, %v581_v32  ;;  %v552_v36 = vmax.f32 %v467_v30, 0.0  ;;  %v1300_v31 = vld [vmem:[#allocation8 + $0x80] sm:$0xff] }
 0x1a2   :  { %v551_v37 = vmax.f32 %v462_v33, 0.0  ;;  %v6803_v38 = vpop.f32.mrb[20].mxu0  ;;  %v1304_v32 = vld [vmem:[#allocation8 + $0xa0] sm:$0xff]  ;;  %2094 = vmatprep.subr.bf16.mxu1 %v6236_v26 }
 0x1a3   :  { %v584_v40 = vsel %vm532_vm2, %v467_v30, %v552_v36  ;;  %6837 = vmatprep.mubr.msk.bf16.mxu1 %vm628_vm3, %v605_v35  ;;  %v477_v41 = vadd.f32 %v6803_v38, %v8041_v43  ;;  %v471_v45 = vpop.f32.mrb[21].mxu0  ;;  %v6237_v30 = vcombine.low %v1285_v44, %v1289_v12  ;;  %v6246_v36 = vcombine.high %v1293_v18, %v1297_v19 }
 0x1a4   :  { %v583_v47 = vsel %vm532_vm2, %v462_v33, %v551_v37  ;;  %v472_v48 = vadd.f32 %v8041_v43, %v471_v45  ;;  %v6244_v37 = vcombine.high %v1292_v27, %v1296_v28  ;;  %v1305_v45 = vld [vmem:[#allocation8 + $0xa8] sm:$0xff]  ;;  %2095 = vmatpush1.bf16.msra.mxu1 %v6235_v24 }
 0x1a5   :  { %v606_v49 = vpack.c.bf16 %v584_v40, %v583_v47  ;;  %v554_v50 = vmax.f32 %v477_v41, 0.0  ;;  %v6243_v47 = vcombine.low %v1292_v27, %v1296_v28  ;;  %v1329_v24 = vld [vmem:[#allocation8 + $0x168] sm:$0xff] }
 0x1a6   :  { %v553_v51 = vmax.f32 %v472_v48, 0.0  ;;  %v6806_v52 = vpop.f32.mrb[22].mxu0  ;;  %2096 = vmatprep.subr.bf16.mxu1 %v6244_v37 }
 0x1a7   :  { %6838 = vmatmul.mubr.msk.bf16.gmra.mrb[24].mxu1 %vm628_vm3, %v606_v49  ;;  %v586_v53 = vsel %vm532_vm2, %v477_v41, %v554_v50  ;;  %v487_v55 = vadd.f32 %v6806_v52, %v8041_v43  ;;  %v481_v56 = vpop.f32.mrb[23].mxu0  ;;  %v1301_v41 = vld [vmem:[#allocation8 + $0x88] sm:$0xff]  ;;  %v6252_v50 = vcombine.high %v1300_v31, %v1304_v32 }
 0x1a8   :  { %v585_v58 = vsel %vm532_vm2, %v472_v48, %v553_v51  ;;  %v482_v59 = vadd.f32 %v8041_v43, %v481_v56  ;;  %v1308_v56 = vld [vmem:[#allocation8 + $0xc0] sm:$0xff]  ;;  %2097 = vmatpush1.bf16.msra.mxu1 %v6243_v47 }
 0x1a9   :  { %v607_v61 = vpack.c.bf16 %v586_v53, %v585_v58  ;;  %v556_v62 = vmax.f32 %v487_v55, 0.0  ;;  %v1312_v58 = vld [vmem:[#allocation8 + $0xe0] sm:$0xff]  ;;  %2098 = vmatprep.subr.bf16.mxu1 %v6252_v50 }
 0x1aa   :  { %v555_v63 = vmax.f32 %v482_v59, 0.0  ;;  %v6809_v0 = vpop.f32.mrb[24].mxu0 }
 0x1ab   :  { %v588_v1 = vsel %vm532_vm2, %v487_v55, %v556_v62  ;;  %6841 = vmatprep.mubr.msk.bf16.mxu1 %vm628_vm3, %v607_v61  ;;  %v497_v2 = vadd.f32 %v6809_v0, %v8041_v43  ;;  %v491_v3 = vpop.f32.mrb[25].mxu0  ;;  %v6245_v55 = vcombine.low %v1293_v18, %v1297_v19  ;;  %v6254_v62 = vcombine.high %v1301_v41, %v1305_v45  ;;  %v1309_v0 = vld [vmem:[#allocation8 + $0xc8] sm:$0xff] }
 0x1ac   :  { %v587_v4 = vsel %vm532_vm2, %v482_v59, %v555_v63  ;;  %v492_v5 = vadd.f32 %v8041_v43, %v491_v3  ;;  %v7691_v43 = vmov 0  }
 0x1ad   :  { %v608_v6 = vpack.c.bf16 %v588_v1, %v587_v4  ;;  %v558_v7 = vmax.f32 %v497_v2, 0.0  ;;  %1027 = vmatprep.mubr.bf16.mxu0 %v7691_v43  ;;  %v1313_v1 = vld [vmem:[#allocation8 + $0xe8] sm:$0xff]  ;;  %v6260_v4 = vcombine.high %v1308_v56, %v1312_v58 }
 0x1ae   :  { %v557_v8 = vmax.f32 %v492_v5, 0.0  ;;  %v6261_v14 = vcombine.low %v1309_v0, %v1313_v1 }
 0x1af   :  { %6842 = vmatmul.mubr.msk.bf16.gmra.mrb[28].mxu1 %vm628_vm3, %v608_v6  ;;  %v590_v9 = vsel %vm532_vm2, %v497_v2, %v558_v7  ;;  %v6251_v2 = vcombine.low %v1300_v31, %v1304_v32  ;;  %v6253_v6 = vcombine.low %v1301_v41, %v1305_v45  ;;  %v1316_v7 = vld [vmem:[#allocation8 + $0x100] sm:$0xff]  ;;  %v1337_v41 = vld [vmem:[#allocation8 + $0x1a8] sm:$0xff] }
 0x1b0   :  { %v589_v10 = vsel %vm532_vm2, %v492_v5, %v557_v8  ;;  %v1320_v8 = vld [vmem:[#allocation8 + $0x120] sm:$0xff] }
 0x1b1   :  { %v609_v11 = vpack.c.bf16 %v590_v9, %v589_v10  ;;  %2099 = vmatpush1.bf16.msra.mxu1 %v6251_v2  ;;  %v6267_v26 = vcombine.low %v1316_v7, %v1320_v8  ;;  %v1332_v31 = vld [vmem:[#allocation8 + $0x180] sm:$0xff] }
 0x1b2   :  { %2100 = vmatprep.subr.bf16.mxu1 %v6260_v4  ;;  %v1336_v32 = vld [vmem:[#allocation8 + $0x1a0] sm:$0xff] }
 0x1b3   :  { %6845 = vmatprep.mubr.msk.bf16.mxu1 %vm628_vm3, %v609_v11  ;;  %v6262_v11 = vcombine.high %v1309_v0, %v1313_v1  ;;  %v1345_v0 = vld [vmem:[#allocation8 + $0x1e8] sm:$0xff]  ;;  %v6283_v1 = vcombine.low %v1332_v31, %v1336_v32 }
 0x1b7   :  { %6846 = vmatmul.mubr.msk.bf16.gmra.mrb[32].mxu1 %vm628_vm3, %v610_v25 }
 0x1b8   :  { %6849 = vmatprep.mubr.msk.bf16.mxu1 %vm628_vm3, %v611_v46 }
 0x1bf   :  { %6850 = vmatmul.mubr.msk.bf16.gmra.mrb[36].mxu1 %vm628_vm3, %v612_v60 }
 0x25a   :  { %v6823_v21 = vpop.f32.mrb[8].mxu1 }
 0x25b   :  { %v720_v25 = vadd.f32 %v6823_v21, %v8187_v16  ;;  %v711_v34 = vpop.f32.mrb[9].mxu1  ;;  %v1321_v21 = vld [vmem:[#allocation8 + $0x128] sm:$0xff] }
 0x25c   :  { %v712_v39 = vadd.f32 %v8187_v16, %v711_v34  ;;  %v6824_v46 = vpop.f32.mrb[10].mxu1  ;;  %v6270_v20 = vcombine.high %v1317_v13, %v1321_v21 }
 0x25d   :  { %v723_v54 = vadd.f32 %v6824_v46, %v8187_v16  ;;  %v714_v57 = vpop.f32.mrb[11].mxu1  ;;  %v840_v15 = vmax.f32 %v720_v25, 0.0  ;;  %v6259_v25 = vcombine.low %v1308_v56, %v1312_v58  ;;  %v6268_v46 = vcombine.high %v1316_v7, %v1320_v8  ;;  %v1344_v56 = vld [vmem:[#allocation8 + $0x1e0] sm:$0xff] }
 0x25e   :  { %v715_v60 = vadd.f32 %v8187_v16, %v714_v57  ;;  %v838_v22 = vmax.f32 %v712_v39, 0.0  ;;  %v1348_v7 = vld [vmem:[#allocation8 + $0x200] sm:$0xff] }
 0x25f   :  { %v841_v17 = vmax.f32 %v723_v54, 0.0  ;;  %2101 = vmatpush1.bf16.msra.mxu1 %v6259_v25  ;;  %v1352_v8 = vld [vmem:[#allocation8 + $0x220] sm:$0xff] }
 0x260   :  { %v839_v23 = vmax.f32 %v715_v60, 0.0  ;;  %2102 = vmatprep.subr.bf16.mxu1 %v6268_v46  ;;  %v6300_v46 = vcombine.high %v1348_v7, %v1352_v8 }
 0x261   :  { %v871_v29 = vpack.c.bf16 %v841_v17, %v840_v15  ;;  %v1324_v15 = vld [vmem:[#allocation8 + $0x140] sm:$0xff] }
 0x262   :  { %v870_v33 = vpack.c.bf16 %v839_v23, %v838_v22  ;;  %v6827_v35 = vpop.f32.mrb[12].mxu1  ;;  %v1328_v17 = vld [vmem:[#allocation8 + $0x160] sm:$0xff]  ;;  %v1325_v23 = vld [vmem:[#allocation8 + $0x148] sm:$0xff] }
 0x263   :  { %v736_v38 = vadd.f32 %v6827_v35, %v8187_v16  ;;  %v727_v40 = vpop.f32.mrb[13].mxu1  ;;  %v6276_v28 = vcombine.high %v1324_v15, %v1328_v17  ;;  %2103 = vmatpush1.bf16.msra.mxu1 %v6267_v26  ;;  %v6275_v45 = vcombine.low %v1324_v15, %v1328_v17  ;;  %v1356_v15 = vld [vmem:[#allocation8 + $0x240] sm:$0xff] }
 0x264   :  { %6219 = vmatmul.mubr.msk.bf16.vlgmr.msra.gmra.mrb[28].mxu0 %vm946_vm4, %v870_v33  ;;  %v728_v48 = vadd.f32 %v8187_v16, %v727_v40  ;;  %v6828_v49 = vpop.f32.mrb[14].mxu1  ;;  %v1333_v40 = vld [vmem:[#allocation8 + $0x188] sm:$0xff]  ;;  %v1360_v17 = vld [vmem:[#allocation8 + $0x260] sm:$0xff] }
 0x265   :  { %v844_v51 = vmax.f32 %v736_v38, 0.0  ;;  %v739_v52 = vadd.f32 %v6828_v49, %v8187_v16  ;;  %v730_v53 = vpop.f32.mrb[15].mxu1  ;;  %1037 = vmatprep.mubr.bf16.mxu0 %v7691_v43  ;;  %2288 = vmatpush1.bf16.msra.mxu0 %v6237_v30  ;;  %v6269_v30 = vcombine.low %v1317_v13, %v1321_v21  ;;  %v6284_v49 = vcombine.high %v1332_v31, %v1336_v32  ;;  %v1349_v13 = vld [vmem:[#allocation8 + $0x208] sm:$0xff]  ;;  %v1364_v31 = vld [vmem:[#allocation8 + $0x280] sm:$0xff] }
 0x266   :  { %v842_v59 = vmax.f32 %v728_v48, 0.0  ;;  %v731_v61 = vadd.f32 %v8187_v16, %v730_v53  ;;  %2289 = vmatprep.subr.bf16.mxu0 %v6246_v36  ;;  %v6278_v36 = vcombine.high %v1325_v23, %v1329_v24  ;;  %2104 = vmatprep.subr.bf16.mxu1 %v6276_v28  ;;  %v6277_v53 = vcombine.low %v1325_v23, %v1329_v24  ;;  %v1353_v21 = vld [vmem:[#allocation8 + $0x228] sm:$0xff]  ;;  %v1368_v32 = vld [vmem:[#allocation8 + $0x2a0] sm:$0xff] }
 0x267   :  { %v845_v63 = vmax.f32 %v739_v52, 0.0  ;;  %2105 = vmatpush1.bf16.msra.mxu1 %v6275_v45  ;;  %v1361_v23 = vld [vmem:[#allocation8 + $0x268] sm:$0xff]  ;;  %v6299_v24 = vcombine.low %v1348_v7, %v1352_v8  ;;  %v1380_v8 = vld [vmem:[#allocation8 + $0x300] sm:$0xff] }
 0x268   :  { %v843_v3 = vmax.f32 %v731_v61, 0.0  ;;  %v6286_v61 = vcombine.high %v1333_v40, %v1337_v41  ;;  %2106 = vmatprep.subr.bf16.mxu1 %v6284_v49  ;;  %v1369_v45 = vld [vmem:[#allocation8 + $0x2a8] sm:$0xff] }
 0x269   :  { %v8199_v5 = vpack.c.bf16 %v845_v63, %v844_v51  ;;  %2290 = vmatpush1.bf16.msra.mxu0 %v6245_v55  ;;  %v1340_v55 = vld [vmem:[#allocation8 + $0x1c0] sm:$0xff]  ;;  %v1341_v63 = vld [vmem:[#allocation8 + $0x1c8] sm:$0xff] }
 0x26a   :  { %v872_v9 = vpack.c.bf16 %v843_v3, %v842_v59  ;;  %v6831_v10 = vpop.f32.mrb[16].mxu1  ;;  %2291 = vmatprep.subr.bf16.mxu0 %v6254_v62  ;;  %v6292_v3 = vcombine.high %v1340_v55, %v1344_v56  ;;  %v6291_v25 = vcombine.low %v1340_v55, %v1344_v56  ;;  %v1372_v56 = vld [vmem:[#allocation8 + $0x2c0] sm:$0xff] }
 0x26b   :  { %v752_v44 = vadd.f32 %v6831_v10, %v8187_v16  ;;  %v743_v12 = vpop.f32.mrb[17].mxu1  ;;  %2107 = vmatpush1.bf16.msra.mxu1 %v6283_v1  ;;  %v6315_v1 = vcombine.low %v1364_v31, %v1368_v32 }
 0x26c   :  { %6220 = vmatmul.mubr.msk.bf16.gmra.mrb[32].mxu0 %vm946_vm4, %v871_v29  ;;  %v744_v34 = vadd.f32 %v8187_v16, %v743_v12  ;;  %v6832_v39 = vpop.f32.mrb[18].mxu1  ;;  %2108 = vmatprep.subr.bf16.mxu1 %v6292_v3 }
 0x26d   :  { %1047 = vmatprep.mubr.bf16.mxu0 %v7691_v43  ;;  %v848_v54 = vmax.f32 %v752_v44, 0.0  ;;  %v755_v57 = vadd.f32 %v6832_v39, %v8187_v16  ;;  %v746_v60 = vpop.f32.mrb[19].mxu1  ;;  %2292 = vmatpush1.bf16.msra.mxu0 %v6253_v6  ;;  %v6285_v6 = vcombine.low %v1333_v40, %v1337_v41  ;;  %v1365_v41 = vld [vmem:[#allocation8 + $0x288] sm:$0xff] }
 0x26e   :  { %v846_v18 = vmax.f32 %v744_v34, 0.0  ;;  %v747_v19 = vadd.f32 %v8187_v16, %v746_v60  ;;  %2293 = vmatprep.subr.bf16.mxu0 %v6262_v11  ;;  %v6294_v11 = vcombine.high %v1341_v63, %v1345_v0  ;;  %v6317_v7 = vcombine.low %v1365_v41, %v1369_v45 }
 0x26f   :  { %v849_v22 = vmax.f32 %v755_v57, 0.0  ;;  %2109 = vmatpush1.bf16.msra.mxu1 %v6291_v25  ;;  %v1381_v25 = vld [vmem:[#allocation8 + $0x308] sm:$0xff] }
 0x270   :  { %v847_v27 = vmax.f32 %v747_v19, 0.0  ;;  %2110 = vmatprep.subr.bf16.mxu1 %v6300_v46 }
 0x271   :  { %v8207_v29 = vpack.c.bf16 %v849_v22, %v848_v54  ;;  %2294 = vmatpush1.bf16.msra.mxu0 %v6261_v14  ;;  %v6293_v14 = vcombine.low %v1341_v63, %v1345_v0  ;;  %v1357_v22 = vld [vmem:[#allocation8 + $0x248] sm:$0xff] }
 0x272   :  { %v8209_v33 = vpack.c.bf16 %v847_v27, %v846_v18  ;;  %v6835_v35 = vpop.f32.mrb[20].mxu1  ;;  %2295 = vmatprep.subr.bf16.mxu0 %v6270_v20  ;;  %v6308_v27 = vcombine.high %v1356_v15, %v1360_v17  ;;  %v6309_v55 = vcombine.low %v1357_v22, %v1361_v23  ;;  %v1373_v63 = vld [vmem:[#allocation8 + $0x2c8] sm:$0xff] }
 0x273   :  { %v768_v37 = vadd.f32 %v6835_v35, %v8187_v16  ;;  %v759_v38 = vpop.f32.mrb[21].mxu1  ;;  %2111 = vmatpush1.bf16.msra.mxu1 %v6299_v24  ;;  %v1377_v0 = vld [vmem:[#allocation8 + $0x2e8] sm:$0xff] }
 0x274   :  { %6221 = vmatmul.mubr.msk.bf16.gmra.mrb[36].mxu0 %vm946_vm4, %v872_v9  ;;  %v760_v47 = vadd.f32 %v8187_v16, %v759_v38  ;;  %v6836_v48 = vpop.f32.mrb[22].mxu1  ;;  %2112 = vmatprep.subr.bf16.mxu1 %v6308_v27  ;;  %v1393_v24 = vld [vmem:[#allocation8 + $0x368] sm:$0xff] }
 0x275   :  { %1057 = vmatprep.mubr.bf16.mxu0 %v7691_v43  ;;  %v852_v50 = vmax.f32 %v768_v37, 0.0  ;;  %v771_v51 = vadd.f32 %v6836_v48, %v8187_v16  ;;  %v762_v52 = vpop.f32.mrb[23].mxu1  ;;  %2296 = vmatpush1.bf16.msra.mxu0 %v6269_v30  ;;  %v6301_v30 = vcombine.low %v1349_v13, %v1353_v21  ;;  %v6310_v37 = vcombine.high %v1357_v22, %v1361_v23  ;;  %v1389_v23 = vld [vmem:[#allocation8 + $0x348] sm:$0xff] }
 0x276   :  { %v850_v58 = vmax.f32 %v760_v47, 0.0  ;;  %v763_v59 = vadd.f32 %v8187_v16, %v762_v52  ;;  %2297 = vmatprep.subr.bf16.mxu0 %v6278_v36  ;;  %v6307_v47 = vcombine.low %v1356_v15, %v1360_v17  ;;  %v6325_v17 = vcombine.low %v1373_v63, %v1377_v0 }
 0x277   :  { %v853_v62 = vmax.f32 %v771_v51, 0.0 }
 0x278   :  { %v851_v2 = vmax.f32 %v763_v59, 0.0  ;;  %2113 = vmatpush1.bf16.msra.mxu1 %v6307_v47  ;;  %v1401_v47 = vld [vmem:[#allocation8 + $0x3a8] sm:$0xff] }
 0x279   :  { %v8217_v4 = vpack.c.bf16 %v853_v62, %v852_v50  ;;  %2298 = vmatpush1.bf16.msra.mxu0 %v6277_v53  ;;  %v6316_v50 = vcombine.high %v1364_v31, %v1368_v32 }
 0x27a   :  { %v8219_v9 = vpack.c.bf16 %v851_v2, %v850_v58  ;;  %v6839_v10 = vpop.f32.mrb[24].mxu1  ;;  %2299 = vmatprep.subr.bf16.mxu0 %v6286_v61  ;;  %v1376_v58 = vld [vmem:[#allocation8 + $0x2e0] sm:$0xff] }
 0x27b   :  { %v784_v44 = vadd.f32 %v6839_v10, %v8187_v16  ;;  %v775_v12 = vpop.f32.mrb[25].mxu1  ;;  %2114 = vmatprep.subr.bf16.mxu1 %v6316_v50  ;;  %v6324_v3 = vcombine.high %v1372_v56, %v1376_v58  ;;  %v1384_v10 = vld [vmem:[#allocation8 + $0x320] sm:$0xff] }
 0x27c   :  { %6222 = vmatmul.mubr.msk.bf16.gmra.mrb[40].mxu0 %vm946_vm4, %v8199_v5  ;;  %v776_v34 = vadd.f32 %v8187_v16, %v775_v12  ;;  %v6840_v39 = vpop.f32.mrb[26].mxu1  ;;  %v6302_v5 = vcombine.high %v1349_v13, %v1353_v21  ;;  %v6326_v12 = vcombine.high %v1373_v63, %v1377_v0  ;;  %2115 = vmatpush1.bf16.msra.mxu1 %v6315_v1 }
 0x27d   :  { %1067 = vmatprep.mubr.bf16.mxu0 %v7691_v43  ;;  %v856_v54 = vmax.f32 %v784_v44, 0.0  ;;  %v787_v57 = vadd.f32 %v6840_v39, %v8187_v16  ;;  %v778_v60 = vpop.f32.mrb[27].mxu1  ;;  %2300 = vmatpush1.bf16.msra.mxu0 %v6285_v6  ;;  %v6323_v39 = vcombine.low %v1372_v56, %v1376_v58 }
 0x27e   :  { %v854_v18 = vmax.f32 %v776_v34, 0.0  ;;  %v779_v19 = vadd.f32 %v8187_v16, %v778_v60  ;;  %2301 = vmatprep.subr.bf16.mxu0 %v6294_v11  ;;  %v1385_v34 = vld [vmem:[#allocation8 + $0x328] sm:$0xff]  ;;  %2116 = vmatprep.subr.bf16.mxu1 %v6324_v3 }
 0x27f   :  { %v857_v20 = vmax.f32 %v787_v57, 0.0  ;;  %v6332_v57 = vcombine.high %v1380_v8, %v1384_v10  ;;  %v6333_v32 = vcombine.low %v1381_v25, %v1385_v34  ;;  %v1409_v3 = vld [vmem:[#allocation8 + $0x3e8] sm:$0xff] }
 0x280   :  { %v855_v26 = vmax.f32 %v779_v19, 0.0  ;;  %v1392_v19 = vld [vmem:[#allocation8 + $0x360] sm:$0xff]  ;;  %2117 = vmatpush1.bf16.msra.mxu1 %v6323_v39 }
 0x281   :  { %v8228_v28 = vpack.c.bf16 %v857_v20, %v856_v54  ;;  %2302 = vmatpush1.bf16.msra.mxu0 %v6293_v14  ;;  %2118 = vmatprep.subr.bf16.mxu1 %v6332_v57  ;;  %v894_v57 = vld [vmem:[%s9037_s6] sm:$0x3] }
 0x282   :  { %v8230_v35 = vpack.c.bf16 %v855_v26, %v854_v18  ;;  %v6843_v36 = vpop.f32.mrb[28].mxu1  ;;  %2303 = vmatprep.subr.bf16.mxu0 %v6302_v5  ;;  %v1388_v18 = vld [vmem:[#allocation8 + $0x340] sm:$0xff]  ;;  %v6331_v26 = vcombine.low %v1380_v8, %v1384_v10 }
 0x283   :  { %v800_v38 = vadd.f32 %v6843_v36, %v8187_v16  ;;  %v791_v40 = vpop.f32.mrb[29].mxu1 }
 0x284   :  { %6223 = vmatmul.mubr.msk.bf16.gmra.mrb[44].mxu0 %vm946_vm4, %v8209_v33  ;;  %v792_v48 = vadd.f32 %v8187_v16, %v791_v40  ;;  %v6844_v49 = vpop.f32.mrb[30].mxu1  ;;  %v6318_v33 = vcombine.high %v1365_v41, %v1369_v45  ;;  %v1397_v45 = vld [vmem:[#allocation8 + $0x388] sm:$0xff]  ;;  %2119 = vmatpush1.bf16.msra.mxu1 %v6331_v26 }
 0x285   :  { %1077 = vmatprep.mubr.bf16.mxu0 %v7691_v43  ;;  %v860_v51 = vmax.f32 %v800_v38, 0.0  ;;  %v803_v52 = vadd.f32 %v6844_v49, %v8187_v16  ;;  %v794_v53 = vpop.f32.mrb[31].mxu1  ;;  %2304 = vmatpush1.bf16.msra.mxu0 %v6301_v30  ;;  %v6340_v30 = vcombine.high %v1388_v18, %v1392_v19  ;;  %v6342_v38 = vcombine.high %v1389_v23, %v1393_v24 }
 0x286   :  { %v858_v59 = vmax.f32 %v792_v48, 0.0  ;;  %v795_v61 = vadd.f32 %v8187_v16, %v794_v53  ;;  %2305 = vmatprep.subr.bf16.mxu0 %v6310_v37  ;;  %v6339_v48 = vcombine.low %v1388_v18, %v1392_v19 }
 0x287   :  { %v861_v62 = vmax.f32 %v803_v52, 0.0  ;;  %2120 = vmatprep.subr.bf16.mxu1 %v6340_v30  ;;  %v1298_v30 = vld [vmem:[#allocation8 + $0x70] sm:$0xff] }
 0x288   :  { %v859_v2 = vmax.f32 %v795_v61, 0.0  ;;  %2121 = vmatpush1.bf16.msra.mxu1 %v6339_v48  ;;  %v1302_v48 = vld [vmem:[#allocation8 + $0x90] sm:$0xff] }
 0x289   :  { %v8239_v6 = vpack.c.bf16 %v861_v62, %v860_v51  ;;  %2306 = vmatpush1.bf16.msra.mxu0 %v6309_v55  ;;  %v6341_v55 = vcombine.low %v1389_v23, %v1393_v24  ;;  %v6349_v62 = vcombine.low %v1397_v45, %v1401_v47  ;;  %v1294_v24 = vld [vmem:[#allocation8 + $0x50] sm:$0xff] }
 0x28a   :  { %v8241_v11 = vpack.c.bf16 %v859_v2, %v858_v59  ;;  %v6847_v44 = vpop.f32.mrb[32].mxu1  ;;  %2307 = vmatprep.subr.bf16.mxu0 %v6318_v33  ;;  %v6350_v59 = vcombine.high %v1397_v45, %v1401_v47  ;;  %v1405_v2 = vld [vmem:[#allocation8 + $0x3c8] sm:$0xff]  ;;  %v6248_v45 = vcombine.high %v1294_v24, %v1298_v30 }
 0x28b   :  { %v816_v13 = vadd.f32 %v6847_v44, %v8187_v16  ;;  %v807_v21 = vpop.f32.mrb[33].mxu1  ;;  %v6357_v8 = vcombine.low %v1405_v2, %v1409_v3  ;;  %v1286_v44 = vld [vmem:[#allocation8 + $0x10] sm:$0xff] }
 0x28c   :  { %6224 = vmatmul.mubr.msk.bf16.gmra.mrb[48].mxu0 %vm946_vm4, %v8207_v29  ;;  %v808_v46 = vadd.f32 %v8187_v16, %v807_v21  ;;  %v6848_v54 = vpop.f32.mrb[34].mxu1  ;;  %v6334_v29 = vcombine.high %v1381_v25, %v1385_v34  ;;  %v1291_v25 = vld [vmem:[#allocation8 + $0x38] sm:$0xff] }
 0x28d   :  { %1087 = vmatprep.mubr.bf16.mxu0 %v7691_v43  ;;  %v864_v60 = vmax.f32 %v816_v13, 0.0  ;;  %v819_v14 = vadd.f32 %v6848_v54, %v8187_v16  ;;  %v810_v15 = vpop.f32.mrb[35].mxu1  ;;  %2308 = vmatpush1.bf16.msra.mxu0 %v6317_v7  ;;  %v1408_v7 = vld [vmem:[#allocation8 + $0x3e0] sm:$0xff]  ;;  %v1287_v13 = vld [vmem:[#allocation8 + $0x18] sm:$0xff] }
 0x28e   :  { %v862_v5 = vmax.f32 %v808_v46, 0.0  ;;  %v811_v20 = vadd.f32 %v8187_v16, %v810_v15  ;;  %2309 = vmatprep.subr.bf16.mxu0 %v6326_v12  ;;  %v1290_v12 = vld [vmem:[#allocation8 + $0x30] sm:$0xff]  ;;  %v6241_v34 = vcombine.low %v1287_v13, %v1291_v25  ;;  %v6242_v39 = vcombine.high %v1287_v13, %v1291_v25 }
 0x28f   :  { %v865_v22 = vmax.f32 %v819_v14, 0.0  ;;  %v6239_v21 = vcombine.low %v1286_v44, %v1290_v12  ;;  %v8283_v46 = vshrl.u32 %v530_v42, 7 }
 0x290   :  { %v863_v27 = vmax.f32 %v811_v20, 0.0 }
 0x291   :  { %v8250_v31 = vpack.c.bf16 %v865_v22, %v864_v60  ;;  %2310 = vmatpush1.bf16.msra.mxu0 %v6325_v17  ;;  %v8286_v54 = vsub.s32 0, %v8283_v46  ;;  %v8292_v60 = vsub.s32 1, %v8283_v46 }
 0x292   :  { %v882_v36 = vpack.c.bf16 %v863_v27, %v862_v5  ;;  %v6851_v37 = vpop.f32.mrb[36].mxu1  ;;  %2311 = vmatprep.subr.bf16.mxu0 %v6334_v29 }
 0x293   :  { %v832_v40 = vadd.f32 %v6851_v37, %v8187_v16  ;;  %v823_v41 = vpop.f32.mrb[37].mxu1  ;;  %v8295_v14 = vrot.slane %v894_v57, %v8286_v54 }
 0x294   :  { %6225 = vmatmul.mubr.msk.bf16.gmra.mrb[52].mxu0 %vm946_vm4, %v8219_v9  ;;  %v824_v49 = vadd.f32 %v8187_v16, %v823_v41  ;;  %v6852_v50 = vpop.f32.mrb[38].mxu1 }
 0x295   :  { %1097 = vmatprep.mubr.bf16.mxu0 %v7691_v43  ;;  %v868_v51 = vmax.f32 %v832_v40, 0.0  ;;  %v835_v52 = vadd.f32 %v6852_v50, %v8187_v16  ;;  %v826_v53 = vpop.f32.mrb[39].mxu1  ;;  %2312 = vmatpush1.bf16.msra.mxu0 %v6333_v32  ;;  %v1299_v32 = vld [vmem:[#allocation8 + $0x78] sm:$0xff] }
 0x296   :  { %v866_v56 = vmax.f32 %v824_v49, 0.0  ;;  %v827_v58 = vadd.f32 %v8187_v16, %v826_v53  ;;  %2313 = vmatprep.subr.bf16.mxu0 %v6342_v38  ;;  %v1396_v16 = vld [vmem:[#allocation8 + $0x380] sm:$0xff]  ;;  %v1307_v53 = vld [vmem:[#allocation8 + $0xb8] sm:$0xff] }
 0x297   :  { %v869_v61 = vmax.f32 %v835_v52, 0.0  ;;  %v1303_v52 = vld [vmem:[#allocation8 + $0x98] sm:$0xff] }
 0x298   :  { %v867_v9 = vmax.f32 %v827_v58, 0.0 }
 0x299   :  { %v885_v33 = vpack.c.bf16 %v869_v61, %v868_v51  ;;  %2314 = vmatpush1.bf16.msra.mxu0 %v6341_v55  ;;  %v1306_v51 = vld [vmem:[#allocation8 + $0xb0] sm:$0xff] }
 0x29a   :  { %v884_v63 = vpack.c.bf16 %v867_v9, %v866_v56  ;;  %2315 = vmatprep.subr.bf16.mxu0 %v6350_v59  ;;  %v6247_v59 = vcombine.low %v1294_v24, %v1298_v30  ;;  %v1327_v30 = vld [vmem:[#allocation8 + $0x158] sm:$0xff] }
 0x29c   :  { %6226 = vmatmul.mubr.msk.bf16.gmra.mrb[56].mxu0 %vm946_vm4, %v8217_v4  ;;  %v1400_v4 = vld [vmem:[#allocation8 + $0x3a0] sm:$0xff] }
 0x29d   :  { %1107 = vmatprep.mubr.bf16.mxu0 %v7691_v43  ;;  %2316 = vmatpush1.bf16.msra.mxu0 %v6349_v62  ;;  %v6348_v0 = vcombine.high %v1396_v16, %v1400_v4  ;;  %v6347_v1 = vcombine.low %v1396_v16, %v1400_v4  ;;  %v6256_v62 = vcombine.high %v1302_v48, %v1306_v51  ;;  %v1310_v16 = vld [vmem:[#allocation8 + $0xd0] sm:$0xff] }
 0x29f   :  { %2122 = vmatprep.subr.bf16.mxu1 %v6348_v0 }
 0x2a0   :  { %2123 = vmatpush1.bf16.msra.mxu1 %v6347_v1  ;;  %v1314_v1 = vld [vmem:[#allocation8 + $0xf0] sm:$0xff] }
 0x2a4   :  { %6227 = vmatmul.mubr.msk.bf16.gmra.mrb[60].mxu0 %vm946_vm4, %v8230_v35  ;;  %v1404_v35 = vld [vmem:[#allocation8 + $0x3c0] sm:$0xff] }
 0x2a5   :  { %1117 = vmatprep.mubr.bf16.mxu0 %v7691_v43  ;;  %v6355_v10 = vcombine.low %v1404_v35, %v1408_v7 }
 0x2ac   :  { %6228 = vmatmul.mubr.msk.bf16.gmra.mrb[64].mxu0 %vm946_vm4, %v8228_v28  ;;  %v6358_v28 = vcombine.high %v1405_v2, %v1409_v3  ;;  %v1311_v2 = vld [vmem:[#allocation8 + $0xd8] sm:$0xff] }
 0x2ad   :  { %1127 = vmatprep.mubr.bf16.mxu0 %v7691_v43  ;;  %v1315_v3 = vld [vmem:[#allocation8 + $0xf8] sm:$0xff] }
 0x2ae   :  { %2317 = vmatprep.subr.bf16.mxu0 %v6358_v28  ;;  %v6266_v13 = vcombine.high %v1311_v2, %v1315_v3 }
 0x2af   :  { %2318 = vmatpush1.bf16.msra.mxu0 %v6357_v8  ;;  %v6255_v8 = vcombine.low %v1302_v48, %v1306_v51  ;;  %v1334_v51 = vld [vmem:[#allocation8 + $0x190] sm:$0xff] }
 0x2b0   :  { %2673 = vmatprep.subr.bf16.mxu0 %v6242_v39  ;;  %v1319_v39 = vld [vmem:[#allocation8 + $0x118] sm:$0xff] }
 0x2b4   :  { %6229 = vmatmul.mubr.msk.bf16.gmra.mrb[68].mxu0 %vm946_vm4, %v8241_v11  ;;  %v6356_v11 = vcombine.high %v1404_v35, %v1408_v7 }
 0x2b5   :  { %1137 = vmatprep.mubr.bf16.mxu0 %v7691_v43 }
 0x2b6   :  { %2124 = vmatprep.subr.bf16.mxu1 %v6356_v11 }
 0x2b7   :  { %2125 = vmatpush1.bf16.msra.mxu1 %v6355_v10  ;;  %v6257_v10 = vcombine.low %v1303_v52, %v1307_v53 }
 0x2bc   :  { %6230 = vmatmul.mubr.msk.bf16.gmra.mrb[72].mxu0 %vm946_vm4, %v8239_v6  ;;  %v6240_v6 = vcombine.high %v1286_v44, %v1290_v12  ;;  %v6264_v12 = vcombine.high %v1310_v16, %v1314_v1 }
 0x2bd   :  { %1147 = vmatprep.mubr.bf16.mxu0 %v7691_v43 }
 0x2be   :  { %2480 = vmatprep.subr.bf16.mxu1 %v6240_v6 }
 0x2c4   :  { %6231 = vmatmul.mubr.msk.bf16.gmra.mrb[76].mxu0 %vm946_vm4, %v882_v36 }
 0x2c5   :  { %1157 = vmatprep.mubr.bf16.mxu0 %v7691_v43 }
 0x2cc   :  { %6232 = vmatmul.mubr.msk.bf16.gmra.mrb[80].mxu0 %vm946_vm4, %v8250_v31  ;;  %v1295_v31 = vld [vmem:[#allocation8 + $0x58] sm:$0xff] }
 0x2cd   :  { %1167 = vmatprep.mubr.bf16.mxu0 %v7691_v43  ;;  %v6250_v47 = vcombine.high %v1295_v31, %v1299_v32  ;;  %v6249_v61 = vcombine.low %v1295_v31, %v1299_v32  ;;  %v1331_v31 = vld [vmem:[#allocation8 + $0x178] sm:$0xff] }
 0x2d4   :  { %6233 = vmatmul.mubr.msk.bf16.gmra.mrb[84].mxu0 %vm946_vm4, %v884_v63  ;;  %v6258_v63 = vcombine.high %v1303_v52, %v1307_v53 }
 0x2d5   :  { %1177 = vmatprep.mubr.bf16.mxu0 %v7691_v43  ;;  %v8298_v43 = vrot.slane %v894_v57, %v8292_v60  ;;  %v1323_v57 = vld [vmem:[#allocation8 + $0x138] sm:$0xff] }
 0x2dc   :  { %6234 = vmatmul.mubr.msk.bf16.gmra.mrb[88].mxu0 %vm946_vm4, %v885_v33 }
 0x337   :  { %v1029_v15 = vpop.f32.mrb[28].mxu0 }
 0x338   :  { %v1030_v42 = vadd.f32 %v1029_v15, %v8295_v14  ;;  %v1031_v17 = vpop.f32.mrb[29].mxu0 }
 0x339   :  { %v1032_v18 = vadd.f32 %v1031_v17, %v8298_v43  ;;  %v1033_v19 = vpop.f32.mrb[30].mxu0 }
 0x33a   :  { %v1034_v5 = vadd.f32 %v1033_v19, %v8295_v14  ;;  %v1035_v20 = vpop.f32.mrb[31].mxu0  ;;  %v1188_v22 = vmax.f32 %v1030_v42, 0.0  ;;  %v6265_v19 = vcombine.low %v1311_v2, %v1315_v3 }
 0x33b   :  { %v1036_v29 = vadd.f32 %v1035_v20, %v8298_v43  ;;  %v1189_v26 = vmax.f32 %v1032_v18, 0.0  ;;  %v6263_v18 = vcombine.low %v1310_v16, %v1314_v1  ;;  %v1342_v1 = vld [vmem:[#allocation8 + $0x1d0] sm:$0xff] }
 0x33c   :  { %v1190_v23 = vmax.f32 %v1034_v5, 0.0 }
 0x33d   :  { %v1191_v27 = vmax.f32 %v1036_v29, 0.0 }
 0x33e   :  { %v8304_v36 = vpack.c.bf16 %v1190_v23, %v1188_v22  ;;  %v6274_v22 = vcombine.high %v1319_v39, %v1323_v57  ;;  %v1326_v23 = vld [vmem:[#allocation8 + $0x150] sm:$0xff] }
 0x33f   :  { %v8306_v37 = vpack.c.bf16 %v1191_v27, %v1189_v26  ;;  %v1039_v38 = vpop.f32.mrb[32].mxu0  ;;  %v1330_v27 = vld [vmem:[#allocation8 + $0x170] sm:$0xff] }
 0x340   :  { %v1040_v40 = vadd.f32 %v1039_v38, %v8295_v14  ;;  %v1041_v41 = vpop.f32.mrb[33].mxu0 }
 0x341   :  { %v1042_v49 = vadd.f32 %v1041_v41, %v8298_v43  ;;  %v1043_v50 = vpop.f32.mrb[34].mxu0  ;;  %2126 = vmatprep.mubr.bf16.mxu1 %v8306_v37  ;;  %2319 = vmatprep.mubr.bf16.mxu0 %v8306_v37 }
 0x342   :  { %v1044_v55 = vadd.f32 %v1043_v50, %v8295_v14  ;;  %v1045_v56 = vpop.f32.mrb[35].mxu0  ;;  %2127 = vmatmul.mubr.bf16.vlgmr.msra.gmra.mrb[40].mxu1 %v8304_v36  ;;  %2320 = vmatmul.mubr.bf16.vlgmr.msra.gmra.mrb[92].mxu0 %v8304_v36  ;;  %v1192_v9 = vmax.f32 %v1040_v40, 0.0  ;;  %v6282_v50 = vcombine.high %v1327_v30, %v1331_v31 }
 0x343   :  { %v1046_v58 = vadd.f32 %v1045_v56, %v8298_v43  ;;  %2481 = vmatpush1.bf16.msra.mxu1 %v6239_v21  ;;  %2674 = vmatpush1.bf16.msra.mxu0 %v6241_v34  ;;  %v1193_v4 = vmax.f32 %v1042_v49, 0.0  ;;  %v1318_v21 = vld [vmem:[#allocation8 + $0x110] sm:$0xff]  ;;  %v6280_v49 = vcombine.high %v1326_v23, %v1330_v27  ;;  %v1335_v56 = vld [vmem:[#allocation8 + $0x198] sm:$0xff] }
 0x344   :  { %v1194_v33 = vmax.f32 %v1044_v55, 0.0  ;;  %2482 = vmatprep.subr.bf16.mxu1 %v6248_v45  ;;  %2675 = vmatprep.subr.bf16.mxu0 %v6250_v47  ;;  %v1322_v34 = vld [vmem:[#allocation8 + $0x130] sm:$0xff]  ;;  %v6273_v45 = vcombine.low %v1319_v39, %v1323_v57 }
 0x345   :  { %v1195_v0 = vmax.f32 %v1046_v58, 0.0  ;;  %v6272_v29 = vcombine.high %v1318_v21, %v1322_v34  ;;  %v6271_v41 = vcombine.low %v1318_v21, %v1322_v34  ;;  %v1338_v55 = vld [vmem:[#allocation8 + $0x1b0] sm:$0xff]  ;;  %v1339_v58 = vld [vmem:[#allocation8 + $0x1b8] sm:$0xff] }
 0x346   :  { %v8316_v35 = vpack.c.bf16 %v1194_v33, %v1192_v9  ;;  %v6279_v33 = vcombine.low %v1326_v23, %v1330_v27  ;;  %v6289_v21 = vcombine.low %v1335_v56, %v1339_v58  ;;  %v1350_v57 = vld [vmem:[#allocation8 + $0x210] sm:$0xff] }
 0x347   :  { %v8318_v28 = vpack.c.bf16 %v1195_v0, %v1193_v4  ;;  %v1049_v7 = vpop.f32.mrb[36].mxu0  ;;  %2483 = vmatpush1.bf16.msra.mxu1 %v6247_v59  ;;  %2676 = vmatpush1.bf16.msra.mxu0 %v6249_v61  ;;  %v6288_v4 = vcombine.high %v1334_v51, %v1338_v55  ;;  %v6290_v0 = vcombine.high %v1335_v56, %v1339_v58 }
 0x348   :  { %v1050_v11 = vadd.f32 %v1049_v7, %v8295_v14  ;;  %v1051_v44 = vpop.f32.mrb[37].mxu0  ;;  %2484 = vmatprep.subr.bf16.mxu1 %v6256_v62  ;;  %2677 = vmatprep.subr.bf16.mxu0 %v6258_v63  ;;  %v6281_v62 = vcombine.low %v1327_v30, %v1331_v31  ;;  %v1346_v7 = vld [vmem:[#allocation8 + $0x1f0] sm:$0xff] }
 0x349   :  { %v1052_v6 = vadd.f32 %v1051_v44, %v8298_v43  ;;  %v1053_v25 = vpop.f32.mrb[38].mxu0  ;;  %2136 = vmatprep.mubr.bf16.mxu1 %v8318_v28  ;;  %2329 = vmatprep.mubr.bf16.mxu0 %v8318_v28  ;;  %v6296_v34 = vcombine.high %v1342_v1, %v1346_v7  ;;  %v1358_v31 = vld [vmem:[#allocation8 + $0x250] sm:$0xff] }
 0x34a   :  { %v1054_v15 = vadd.f32 %v1053_v25, %v8295_v14  ;;  %v1055_v42 = vpop.f32.mrb[39].mxu0  ;;  %2137 = vmatmul.mubr.bf16.gmra.mrb[44].mxu1 %v8316_v35  ;;  %2330 = vmatmul.mubr.bf16.gmra.mrb[96].mxu0 %v8316_v35  ;;  %v1196_v5 = vmax.f32 %v1050_v11, 0.0 }
 0x34b   :  { %v1056_v17 = vadd.f32 %v1055_v42, %v8298_v43  ;;  %2485 = vmatpush1.bf16.msra.mxu1 %v6255_v8  ;;  %2678 = vmatpush1.bf16.msra.mxu0 %v6257_v10  ;;  %v1197_v24 = vmax.f32 %v1052_v6, 0.0  ;;  %v1343_v8 = vld [vmem:[#allocation8 + $0x1d8] sm:$0xff] }
 0x34c   :  { %v1198_v20 = vmax.f32 %v1054_v15, 0.0  ;;  %2486 = vmatprep.subr.bf16.mxu1 %v6264_v12  ;;  %2679 = vmatprep.subr.bf16.mxu0 %v6266_v13  ;;  %v1347_v10 = vld [vmem:[#allocation8 + $0x1f8] sm:$0xff]  ;;  %v6287_v13 = vcombine.low %v1334_v51, %v1338_v55 }
 0x34d   :  { %v1199_v26 = vmax.f32 %v1056_v17, 0.0  ;;  %v6298_v39 = vcombine.high %v1343_v8, %v1347_v10  ;;  %v1354_v17 = vld [vmem:[#allocation8 + $0x230] sm:$0xff]  ;;  %v6297_v23 = vcombine.low %v1343_v8, %v1347_v10 }
 0x34e   :  { %v8328_v32 = vpack.c.bf16 %v1198_v20, %v1196_v5  ;;  %v6304_v27 = vcombine.high %v1350_v57, %v1354_v17 }
 0x34f   :  { %v8330_v38 = vpack.c.bf16 %v1199_v26, %v1197_v24  ;;  %v1059_v40 = vpop.f32.mrb[40].mxu0  ;;  %2487 = vmatpush1.bf16.msra.mxu1 %v6263_v18  ;;  %2680 = vmatpush1.bf16.msra.mxu0 %v6265_v19  ;;  %v1351_v18 = vld [vmem:[#allocation8 + $0x218] sm:$0xff] }
 0x350   :  { %v1060_v47 = vadd.f32 %v1059_v40, %v8295_v14  ;;  %v1061_v48 = vpop.f32.mrb[41].mxu0  ;;  %2488 = vmatprep.subr.bf16.mxu1 %v6272_v29  ;;  %2681 = vmatprep.subr.bf16.mxu0 %v6274_v22  ;;  %v1355_v19 = vld [vmem:[#allocation8 + $0x238] sm:$0xff]  ;;  %v6295_v22 = vcombine.low %v1342_v1, %v1346_v7 }
 0x351   :  { %v1062_v52 = vadd.f32 %v1061_v48, %v8298_v43  ;;  %v1063_v53 = vpop.f32.mrb[42].mxu0  ;;  %2146 = vmatprep.mubr.bf16.mxu1 %v8330_v38  ;;  %2339 = vmatprep.mubr.bf16.mxu0 %v8330_v38  ;;  %v6306_v30 = vcombine.high %v1351_v18, %v1355_v19  ;;  %v1363_v48 = vld [vmem:[#allocation8 + $0x278] sm:$0xff] }
 0x352   :  { %v1064_v59 = vadd.f32 %v1063_v53, %v8295_v14  ;;  %v1065_v61 = vpop.f32.mrb[43].mxu0  ;;  %2147 = vmatmul.mubr.bf16.gmra.mrb[48].mxu1 %v8328_v32  ;;  %2340 = vmatmul.mubr.bf16.gmra.mrb[100].mxu0 %v8328_v32  ;;  %v1200_v63 = vmax.f32 %v1060_v47, 0.0  ;;  %v1359_v47 = vld [vmem:[#allocation8 + $0x258] sm:$0xff]  ;;  %v6305_v53 = vcombine.low %v1351_v18, %v1355_v19 }
 0x353   :  { %v1066_v9 = vadd.f32 %v1065_v61, %v8298_v43  ;;  %2489 = vmatpush1.bf16.msra.mxu1 %v6271_v41  ;;  %2682 = vmatpush1.bf16.msra.mxu0 %v6273_v45  ;;  %v1201_v2 = vmax.f32 %v1062_v52, 0.0  ;;  %v1362_v45 = vld [vmem:[#allocation8 + $0x270] sm:$0xff]  ;;  %v6303_v52 = vcombine.low %v1350_v57, %v1354_v17 }
 0x354   :  { %v1202_v16 = vmax.f32 %v1064_v59, 0.0  ;;  %2490 = vmatprep.subr.bf16.mxu1 %v6280_v49  ;;  %2683 = vmatprep.subr.bf16.mxu0 %v6282_v50  ;;  %v6312_v58 = vcombine.high %v1358_v31, %v1362_v45  ;;  %v6314_v59 = vcombine.high %v1359_v47, %v1363_v48  ;;  %v1366_v61 = vld [vmem:[#allocation8 + $0x290] sm:$0xff] }
 0x355   :  { %v1203_v3 = vmax.f32 %v1066_v9, 0.0 }
 0x356   :  { %v8340_v11 = vpack.c.bf16 %v1202_v16, %v1200_v63  ;;  %v1367_v63 = vld [vmem:[#allocation8 + $0x298] sm:$0xff] }
 0x357   :  { %v8342_v44 = vpack.c.bf16 %v1203_v3, %v1201_v2  ;;  %v1069_v12 = vpop.f32.mrb[44].mxu0  ;;  %2491 = vmatpush1.bf16.msra.mxu1 %v6279_v33  ;;  %2684 = vmatpush1.bf16.msra.mxu0 %v6281_v62  ;;  %v1370_v62 = vld [vmem:[#allocation8 + $0x2b0] sm:$0xff]  ;;  %v1371_v16 = vld [vmem:[#allocation8 + $0x2b8] sm:$0xff]  ;;  %v6311_v2 = vcombine.low %v1358_v31, %v1362_v45  ;;  %v6313_v3 = vcombine.low %v1359_v47, %v1363_v48 }
 0x358   :  { %v1070_v6 = vadd.f32 %v1069_v12, %v8295_v14  ;;  %v1071_v25 = vpop.f32.mrb[45].mxu0  ;;  %2492 = vmatprep.subr.bf16.mxu1 %v6288_v4  ;;  %2685 = vmatprep.subr.bf16.mxu0 %v6290_v0  ;;  %v6320_v10 = vcombine.high %v1366_v61, %v1370_v62  ;;  %v6322_v12 = vcombine.high %v1367_v63, %v1371_v16 }
 0x359   :  { %v1072_v15 = vadd.f32 %v1071_v25, %v8298_v43  ;;  %v1073_v42 = vpop.f32.mrb[46].mxu0  ;;  %2156 = vmatprep.mubr.bf16.mxu1 %v8342_v44  ;;  %2349 = vmatprep.mubr.bf16.mxu0 %v8342_v44  ;;  %v1378_v25 = vld [vmem:[#allocation8 + $0x2f0] sm:$0xff]  ;;  %v6319_v17 = vcombine.low %v1366_v61, %v1370_v62  ;;  %v6321_v18 = vcombine.low %v1367_v63, %v1371_v16  ;;  %v1391_v61 = vld [vmem:[#allocation8 + $0x358] sm:$0xff] }
 0x35a   :  { %v1074_v5 = vadd.f32 %v1073_v42, %v8295_v14  ;;  %v1075_v20 = vpop.f32.mrb[47].mxu0  ;;  %2157 = vmatmul.mubr.bf16.gmra.mrb[52].mxu1 %v8340_v11  ;;  %2350 = vmatmul.mubr.bf16.gmra.mrb[104].mxu0 %v8340_v11  ;;  %v1204_v24 = vmax.f32 %v1070_v6, 0.0 }
 0x35b   :  { %v1076_v29 = vadd.f32 %v1075_v20, %v8298_v43  ;;  %2493 = vmatpush1.bf16.msra.mxu1 %v6287_v13  ;;  %2686 = vmatpush1.bf16.msra.mxu0 %v6289_v21  ;;  %v1205_v40 = vmax.f32 %v1072_v15, 0.0  ;;  %v1374_v13 = vld [vmem:[#allocation8 + $0x2d0] sm:$0xff] }
 0x35c   :  { %v1206_v26 = vmax.f32 %v1074_v5, 0.0  ;;  %2494 = vmatprep.subr.bf16.mxu1 %v6296_v34  ;;  %2687 = vmatprep.subr.bf16.mxu0 %v6298_v39  ;;  %v1375_v34 = vld [vmem:[#allocation8 + $0x2d8] sm:$0xff]  ;;  %v6328_v20 = vcombine.high %v1374_v13, %v1378_v25  ;;  %v6327_v45 = vcombine.low %v1374_v13, %v1378_v25 }
 0x35d   :  { %v1207_v41 = vmax.f32 %v1076_v29, 0.0  ;;  %v1379_v39 = vld [vmem:[#allocation8 + $0x2f8] sm:$0xff] }
 0x35e   :  { %v8352_v49 = vpack.c.bf16 %v1206_v26, %v1204_v24  ;;  %v6330_v29 = vcombine.high %v1375_v34, %v1379_v39  ;;  %v1386_v26 = vld [vmem:[#allocation8 + $0x330] sm:$0xff]  ;;  %v6329_v47 = vcombine.low %v1375_v34, %v1379_v39  ;;  %v1399_v13 = vld [vmem:[#allocation8 + $0x398] sm:$0xff] }
 0x35f   :  { %v8354_v50 = vpack.c.bf16 %v1207_v41, %v1205_v40  ;;  %v1079_v51 = vpop.f32.mrb[48].mxu0  ;;  %2495 = vmatpush1.bf16.msra.mxu1 %v6295_v22  ;;  %2688 = vmatpush1.bf16.msra.mxu0 %v6297_v23  ;;  %v1382_v22 = vld [vmem:[#allocation8 + $0x310] sm:$0xff] }
 0x360   :  { %v1080_v55 = vadd.f32 %v1079_v51, %v8295_v14  ;;  %v1081_v56 = vpop.f32.mrb[49].mxu0  ;;  %2496 = vmatprep.subr.bf16.mxu1 %v6304_v27  ;;  %2689 = vmatprep.subr.bf16.mxu0 %v6306_v30  ;;  %v1383_v27 = vld [vmem:[#allocation8 + $0x318] sm:$0xff]  ;;  %v6335_v16 = vcombine.low %v1382_v22, %v1386_v26 }
 0x361   :  { %v1082_v9 = vadd.f32 %v1081_v56, %v8298_v43  ;;  %v1083_v33 = vpop.f32.mrb[50].mxu0  ;;  %2166 = vmatprep.mubr.bf16.mxu1 %v8354_v50  ;;  %2359 = vmatprep.mubr.bf16.mxu0 %v8354_v50  ;;  %v1387_v30 = vld [vmem:[#allocation8 + $0x338] sm:$0xff] }
 0x362   :  { %v1084_v4 = vadd.f32 %v1083_v33, %v8295_v14  ;;  %v1085_v0 = vpop.f32.mrb[51].mxu0  ;;  %2167 = vmatmul.mubr.bf16.gmra.mrb[56].mxu1 %v8352_v49  ;;  %2360 = vmatmul.mubr.bf16.gmra.mrb[108].mxu0 %v8352_v49  ;;  %v1208_v7 = vmax.f32 %v1080_v55, 0.0  ;;  %v1390_v55 = vld [vmem:[#allocation8 + $0x350] sm:$0xff] }
 0x363   :  { %v1086_v1 = vadd.f32 %v1085_v0, %v8298_v43  ;;  %2497 = vmatpush1.bf16.msra.mxu1 %v6303_v52  ;;  %2690 = vmatpush1.bf16.msra.mxu0 %v6305_v53  ;;  %v1209_v21 = vmax.f32 %v1082_v9, 0.0  ;;  %v6336_v52 = vcombine.high %v1382_v22, %v1386_v26  ;;  %v6338_v53 = vcombine.high %v1383_v27, %v1387_v30  ;;  %v1395_v9 = vld [vmem:[#allocation8 + $0x378] sm:$0xff] }
 0x364   :  { %v1210_v8 = vmax.f32 %v1084_v4, 0.0  ;;  %2498 = vmatprep.subr.bf16.mxu1 %v6312_v58  ;;  %2691 = vmatprep.subr.bf16.mxu0 %v6314_v59  ;;  %v1394_v59 = vld [vmem:[#allocation8 + $0x370] sm:$0xff]  ;;  %v6337_v4 = vcombine.low %v1383_v27, %v1387_v30  ;;  %v1411_v26 = vld [vmem:[#allocation8 + $0x3f8] sm:$0xff] }
 0x365   :  { %v1211_v6 = vmax.f32 %v1086_v1, 0.0  ;;  %v6343_v39 = vcombine.low %v1390_v55, %v1394_v59 }
 0x366   :  { %v8364_v57 = vpack.c.bf16 %v1210_v8, %v1208_v7  ;;  %v1398_v7 = vld [vmem:[#allocation8 + $0x390] sm:$0xff] }
 0x367   :  { %v8366_v15 = vpack.c.bf16 %v1211_v6, %v1209_v21  ;;  %v1089_v42 = vpop.f32.mrb[52].mxu0  ;;  %2499 = vmatpush1.bf16.msra.mxu1 %v6311_v2  ;;  %2692 = vmatpush1.bf16.msra.mxu0 %v6313_v3  ;;  %v6344_v2 = vcombine.high %v1390_v55, %v1394_v59  ;;  %v6346_v3 = vcombine.high %v1391_v61, %v1395_v9  ;;  %v1403_v21 = vld [vmem:[#allocation8 + $0x3b8] sm:$0xff] }
 0x368   :  { %v1090_v19 = vadd.f32 %v1089_v42, %v8295_v14  ;;  %v1091_v5 = vpop.f32.mrb[53].mxu0  ;;  %2500 = vmatprep.subr.bf16.mxu1 %v6320_v10  ;;  %2693 = vmatprep.subr.bf16.mxu0 %v6322_v12  ;;  %v1402_v12 = vld [vmem:[#allocation8 + $0x3b0] sm:$0xff]  ;;  %v6345_v42 = vcombine.low %v1391_v61, %v1395_v9 }
 0x369   :  { %v1092_v23 = vadd.f32 %v1091_v5, %v8298_v43  ;;  %v1093_v24 = vpop.f32.mrb[54].mxu0  ;;  %2176 = vmatprep.mubr.bf16.mxu1 %v8366_v15  ;;  %2369 = vmatprep.mubr.bf16.mxu0 %v8366_v15  ;;  %v6354_v5 = vcombine.high %v1399_v13, %v1403_v21 }
 0x36a   :  { %v1094_v31 = vadd.f32 %v1093_v24, %v8295_v14  ;;  %v1095_v40 = vpop.f32.mrb[55].mxu0  ;;  %2177 = vmatmul.mubr.bf16.gmra.mrb[60].mxu1 %v8364_v57  ;;  %2370 = vmatmul.mubr.bf16.gmra.mrb[112].mxu0 %v8364_v57  ;;  %v1212_v48 = vmax.f32 %v1090_v19, 0.0  ;;  %v6352_v19 = vcombine.high %v1398_v7, %v1402_v12  ;;  %v1407_v24 = vld [vmem:[#allocation8 + $0x3d8] sm:$0xff] }
 0x36b   :  { %v1096_v41 = vadd.f32 %v1095_v40, %v8298_v43  ;;  %2501 = vmatpush1.bf16.msra.mxu1 %v6319_v17  ;;  %2694 = vmatpush1.bf16.msra.mxu0 %v6321_v18  ;;  %v1213_v56 = vmax.f32 %v1092_v23, 0.0  ;;  %v1410_v23 = vld [vmem:[#allocation8 + $0x3f0] sm:$0xff]  ;;  %v6351_v40 = vcombine.low %v1398_v7, %v1402_v12  ;;  %v6361_v61 = vcombine.low %v1407_v24, %v1411_v26 }
 0x36c   :  { %v1214_v51 = vmax.f32 %v1094_v31, 0.0  ;;  %2502 = vmatprep.subr.bf16.mxu1 %v6328_v20  ;;  %2695 = vmatprep.subr.bf16.mxu0 %v6330_v29  ;;  %v1406_v20 = vld [vmem:[#allocation8 + $0x3d0] sm:$0xff] }
 0x36d   :  { %v1215_v58 = vmax.f32 %v1096_v41, 0.0  ;;  %v6353_v41 = vcombine.low %v1399_v13, %v1403_v21  ;;  %v6359_v59 = vcombine.low %v1406_v20, %v1410_v23 }
 0x36e   :  { %v8376_v33 = vpack.c.bf16 %v1214_v51, %v1212_v48  ;;  %v6360_v48 = vcombine.high %v1406_v20, %v1410_v23  ;;  %v6362_v51 = vcombine.high %v1407_v24, %v1411_v26 }
 0x36f   :  { %v8378_v62 = vpack.c.bf16 %v1215_v58, %v1213_v56  ;;  %v1099_v63 = vpop.f32.mrb[56].mxu0  ;;  %2503 = vmatpush1.bf16.msra.mxu1 %v6327_v45  ;;  %2696 = vmatpush1.bf16.msra.mxu0 %v6329_v47 }
 0x370   :  { %v1100_v0 = vadd.f32 %v1099_v63, %v8295_v14  ;;  %v1101_v1 = vpop.f32.mrb[57].mxu0  ;;  %2504 = vmatprep.subr.bf16.mxu1 %v6336_v52  ;;  %2697 = vmatprep.subr.bf16.mxu0 %v6338_v53 }
 0x371   :  { %v1102_v8 = vadd.f32 %v1101_v1, %v8298_v43  ;;  %v1103_v10 = vpop.f32.mrb[58].mxu0  ;;  %2186 = vmatprep.mubr.bf16.mxu1 %v8378_v62  ;;  %2379 = vmatprep.mubr.bf16.mxu0 %v8378_v62 }
 0x372   :  { %v1104_v6 = vadd.f32 %v1103_v10, %v8295_v14  ;;  %v1105_v25 = vpop.f32.mrb[59].mxu0  ;;  %2187 = vmatmul.mubr.bf16.gmra.mrb[64].mxu1 %v8376_v33  ;;  %2380 = vmatmul.mubr.bf16.gmra.mrb[116].mxu0 %v8376_v33  ;;  %v1216_v17 = vmax.f32 %v1100_v0, 0.0 }
 0x373   :  { %v1106_v34 = vadd.f32 %v1105_v25, %v8298_v43  ;;  %2505 = vmatpush1.bf16.msra.mxu1 %v6335_v16  ;;  %2698 = vmatpush1.bf16.msra.mxu0 %v6337_v4  ;;  %v1217_v29 = vmax.f32 %v1102_v8, 0.0 }
 0x374   :  { %v1218_v18 = vmax.f32 %v1104_v6, 0.0  ;;  %2506 = vmatprep.subr.bf16.mxu1 %v6344_v2  ;;  %2699 = vmatprep.subr.bf16.mxu0 %v6346_v3 }
 0x375   :  { %v1219_v22 = vmax.f32 %v1106_v34, 0.0 }
 0x376   :  { %v8388_v27 = vpack.c.bf16 %v1218_v18, %v1216_v17 }
 0x377   :  { %v8390_v30 = vpack.c.bf16 %v1219_v22, %v1217_v29  ;;  %v1109_v31 = vpop.f32.mrb[60].mxu0  ;;  %2507 = vmatpush1.bf16.msra.mxu1 %v6343_v39  ;;  %2700 = vmatpush1.bf16.msra.mxu0 %v6345_v42 }
 0x378   :  { %v1110_v45 = vadd.f32 %v1109_v31, %v8295_v14  ;;  %v1111_v47 = vpop.f32.mrb[61].mxu0  ;;  %2508 = vmatprep.subr.bf16.mxu1 %v6352_v19  ;;  %2701 = vmatprep.subr.bf16.mxu0 %v6354_v5 }
 0x379   :  { %v1112_v52 = vadd.f32 %v1111_v47, %v8298_v43  ;;  %v1113_v53 = vpop.f32.mrb[62].mxu0  ;;  %2196 = vmatprep.mubr.bf16.mxu1 %v8390_v30  ;;  %2389 = vmatprep.mubr.bf16.mxu0 %v8390_v30 }
 0x37a   :  { %v1114_v55 = vadd.f32 %v1113_v53, %v8295_v14  ;;  %v1115_v56 = vpop.f32.mrb[63].mxu0  ;;  %2197 = vmatmul.mubr.bf16.gmra.mrb[68].mxu1 %v8388_v27  ;;  %2390 = vmatmul.mubr.bf16.gmra.mrb[120].mxu0 %v8388_v27  ;;  %v1220_v9 = vmax.f32 %v1110_v45, 0.0 }
 0x37b   :  { %v1116_v58 = vadd.f32 %v1115_v56, %v8298_v43  ;;  %2509 = vmatpush1.bf16.msra.mxu1 %v6351_v40  ;;  %2702 = vmatpush1.bf16.msra.mxu0 %v6353_v41  ;;  %v1221_v16 = vmax.f32 %v1112_v52, 0.0 }
 0x37c   :  { %v1222_v63 = vmax.f32 %v1114_v55, 0.0  ;;  %2510 = vmatprep.subr.bf16.mxu1 %v6360_v48  ;;  %2703 = vmatprep.subr.bf16.mxu0 %v6362_v51 }
 0x37d   :  { %v1223_v4 = vmax.f32 %v1116_v58, 0.0 }
 0x37e   :  { %v8400_v0 = vpack.c.bf16 %v1222_v63, %v1220_v9 }
 0x37f   :  { %v8402_v1 = vpack.c.bf16 %v1223_v4, %v1221_v16  ;;  %v1119_v2 = vpop.f32.mrb[64].mxu0  ;;  %2511 = vmatpush1.bf16.msra.mxu1 %v6359_v59  ;;  %2704 = vmatpush1.bf16.msra.mxu0 %v6361_v61 }
 0x380   :  { %v1120_v3 = vadd.f32 %v1119_v2, %v8295_v14  ;;  %v1121_v7 = vpop.f32.mrb[65].mxu0 }
 0x381   :  { %v1122_v8 = vadd.f32 %v1121_v7, %v8298_v43  ;;  %v1123_v10 = vpop.f32.mrb[66].mxu0  ;;  %2206 = vmatprep.mubr.bf16.mxu1 %v8402_v1  ;;  %2399 = vmatprep.mubr.bf16.mxu0 %v8402_v1 }
 0x382   :  { %v1124_v12 = vadd.f32 %v1123_v10, %v8295_v14  ;;  %v1125_v13 = vpop.f32.mrb[67].mxu0  ;;  %2207 = vmatmul.mubr.bf16.gmra.mrb[72].mxu1 %v8400_v0  ;;  %2400 = vmatmul.mubr.bf16.gmra.mrb[124].mxu0 %v8400_v0  ;;  %v1224_v6 = vmax.f32 %v1120_v3, 0.0 }
 0x383   :  { %v1126_v21 = vadd.f32 %v1125_v13, %v8298_v43  ;;  %v1225_v34 = vmax.f32 %v1122_v8, 0.0 }
 0x384   :  { %v1226_v25 = vmax.f32 %v1124_v12, 0.0 }
 0x385   :  { %v1227_v39 = vmax.f32 %v1126_v21, 0.0 }
 0x386   :  { %v8412_v42 = vpack.c.bf16 %v1226_v25, %v1224_v6 }
 0x387   :  { %v8414_v17 = vpack.c.bf16 %v1227_v39, %v1225_v34  ;;  %v1129_v18 = vpop.f32.mrb[68].mxu0 }
 0x388   :  { %v1130_v19 = vadd.f32 %v1129_v18, %v8295_v14  ;;  %v1131_v5 = vpop.f32.mrb[69].mxu0 }
 0x389   :  { %v1132_v20 = vadd.f32 %v1131_v5, %v8298_v43  ;;  %v1133_v29 = vpop.f32.mrb[70].mxu0  ;;  %2216 = vmatprep.mubr.bf16.mxu1 %v8414_v17  ;;  %2409 = vmatprep.mubr.bf16.mxu0 %v8414_v17 }
 0x38a   :  { %v1134_v22 = vadd.f32 %v1133_v29, %v8295_v14  ;;  %v1135_v23 = vpop.f32.mrb[71].mxu0  ;;  %2217 = vmatmul.mubr.bf16.gmra.mrb[76].mxu1 %v8412_v42  ;;  %2410 = vmatmul.mubr.bf16.gmra.mrb[128].mxu0 %v8412_v42  ;;  %v1228_v26 = vmax.f32 %v1130_v19, 0.0 }
 0x38b   :  { %v1136_v24 = vadd.f32 %v1135_v23, %v8298_v43  ;;  %v1229_v40 = vmax.f32 %v1132_v20, 0.0 }
 0x38c   :  { %v1230_v31 = vmax.f32 %v1134_v22, 0.0 }
 0x38d   :  { %v1231_v41 = vmax.f32 %v1136_v24, 0.0 }
 0x38e   :  { %v8424_v45 = vpack.c.bf16 %v1230_v31, %v1228_v26 }
 0x38f   :  { %v8426_v47 = vpack.c.bf16 %v1231_v41, %v1229_v40  ;;  %v1139_v48 = vpop.f32.mrb[72].mxu0 }
 0x390   :  { %v1140_v51 = vadd.f32 %v1139_v48, %v8295_v14  ;;  %v1141_v52 = vpop.f32.mrb[73].mxu0 }
 0x391   :  { %v1142_v53 = vadd.f32 %v1141_v52, %v8298_v43  ;;  %v1143_v55 = vpop.f32.mrb[74].mxu0  ;;  %2226 = vmatprep.mubr.bf16.mxu1 %v8426_v47  ;;  %2419 = vmatprep.mubr.bf16.mxu0 %v8426_v47 }
 0x392   :  { %v1144_v56 = vadd.f32 %v1143_v55, %v8295_v14  ;;  %v1145_v58 = vpop.f32.mrb[75].mxu0  ;;  %2227 = vmatmul.mubr.bf16.gmra.mrb[80].mxu1 %v8424_v45  ;;  %2420 = vmatmul.mubr.bf16.gmra.mrb[132].mxu0 %v8424_v45  ;;  %v1232_v61 = vmax.f32 %v1140_v51, 0.0 }
 0x393   :  { %v1146_v59 = vadd.f32 %v1145_v58, %v8298_v43  ;;  %v1233_v63 = vmax.f32 %v1142_v53, 0.0 }
 0x394   :  { %v1234_v9 = vmax.f32 %v1144_v56, 0.0 }
 0x395   :  { %v1235_v16 = vmax.f32 %v1146_v59, 0.0 }
 0x396   :  { %v8436_v4 = vpack.c.bf16 %v1234_v9, %v1232_v61 }
 0x397   :  { %v8438_v2 = vpack.c.bf16 %v1235_v16, %v1233_v63  ;;  %v1149_v3 = vpop.f32.mrb[76].mxu0 }
 0x398   :  { %v1150_v7 = vadd.f32 %v1149_v3, %v8295_v14  ;;  %v1151_v8 = vpop.f32.mrb[77].mxu0 }
 0x399   :  { %v1152_v10 = vadd.f32 %v1151_v8, %v8298_v43  ;;  %v1153_v12 = vpop.f32.mrb[78].mxu0  ;;  %2236 = vmatprep.mubr.bf16.mxu1 %v8438_v2  ;;  %2429 = vmatprep.mubr.bf16.mxu0 %v8438_v2 }
 0x39a   :  { %v1154_v13 = vadd.f32 %v1153_v12, %v8295_v14  ;;  %v1155_v21 = vpop.f32.mrb[79].mxu0  ;;  %2237 = vmatmul.mubr.bf16.gmra.mrb[84].mxu1 %v8436_v4  ;;  %2430 = vmatmul.mubr.bf16.gmra.mrb[136].mxu0 %v8436_v4  ;;  %v1236_v25 = vmax.f32 %v1150_v7, 0.0 }
 0x39b   :  { %v1156_v6 = vadd.f32 %v1155_v21, %v8298_v43  ;;  %v1237_v39 = vmax.f32 %v1152_v10, 0.0 }
 0x39c   :  { %v1238_v34 = vmax.f32 %v1154_v13, 0.0 }
 0x39d   :  { %v1239_v18 = vmax.f32 %v1156_v6, 0.0 }
 0x39e   :  { %v8448_v19 = vpack.c.bf16 %v1238_v34, %v1236_v25 }
 0x39f   :  { %v8450_v5 = vpack.c.bf16 %v1239_v18, %v1237_v39  ;;  %v1159_v20 = vpop.f32.mrb[80].mxu0 }
 0x3a0   :  { %v1160_v29 = vadd.f32 %v1159_v20, %v8295_v14  ;;  %v1161_v22 = vpop.f32.mrb[81].mxu0 }
 0x3a1   :  { %v1162_v23 = vadd.f32 %v1161_v22, %v8298_v43  ;;  %v1163_v24 = vpop.f32.mrb[82].mxu0  ;;  %2246 = vmatprep.mubr.bf16.mxu1 %v8450_v5  ;;  %2439 = vmatprep.mubr.bf16.mxu0 %v8450_v5 }
 0x3a2   :  { %v1164_v26 = vadd.f32 %v1163_v24, %v8295_v14  ;;  %v1165_v31 = vpop.f32.mrb[83].mxu0  ;;  %2247 = vmatmul.mubr.bf16.gmra.mrb[88].mxu1 %v8448_v19  ;;  %2440 = vmatmul.mubr.bf16.gmra.mrb[140].mxu0 %v8448_v19  ;;  %v1240_v41 = vmax.f32 %v1160_v29, 0.0 }
 0x3a3   :  { %v1166_v40 = vadd.f32 %v1165_v31, %v8298_v43  ;;  %v1241_v51 = vmax.f32 %v1162_v23, 0.0 }
 0x3a4   :  { %v1242_v48 = vmax.f32 %v1164_v26, 0.0 }
 0x3a5   :  { %v1243_v52 = vmax.f32 %v1166_v40, 0.0 }
 0x3a6   :  { %v8460_v53 = vpack.c.bf16 %v1242_v48, %v1240_v41 }
 0x3a7   :  { %v8462_v55 = vpack.c.bf16 %v1243_v52, %v1241_v51  ;;  %v1169_v56 = vpop.f32.mrb[84].mxu0 }
 0x3a8   :  { %v1170_v58 = vadd.f32 %v1169_v56, %v8295_v14  ;;  %v1171_v59 = vpop.f32.mrb[85].mxu0 }
 0x3a9   :  { %v1172_v61 = vadd.f32 %v1171_v59, %v8298_v43  ;;  %v1173_v9 = vpop.f32.mrb[86].mxu0  ;;  %2256 = vmatprep.mubr.bf16.mxu1 %v8462_v55  ;;  %2449 = vmatprep.mubr.bf16.mxu0 %v8462_v55 }
 0x3aa   :  { %v1174_v63 = vadd.f32 %v1173_v9, %v8295_v14  ;;  %v1175_v16 = vpop.f32.mrb[87].mxu0  ;;  %2257 = vmatmul.mubr.bf16.gmra.mrb[92].mxu1 %v8460_v53  ;;  %2450 = vmatmul.mubr.bf16.gmra.mrb[144].mxu0 %v8460_v53  ;;  %v1244_v7 = vmax.f32 %v1170_v58, 0.0 }
 0x3ab   :  { %v1176_v3 = vadd.f32 %v1175_v16, %v8298_v43  ;;  %v1245_v10 = vmax.f32 %v1172_v61, 0.0 }
 0x3ac   :  { %v1246_v8 = vmax.f32 %v1174_v63, 0.0 }
 0x3ad   :  { %v1247_v12 = vmax.f32 %v1176_v3, 0.0 }
 0x3ae   :  { %v8472_v13 = vpack.c.bf16 %v1246_v8, %v1244_v7 }
 0x3af   :  { %v8474_v21 = vpack.c.bf16 %v1247_v12, %v1245_v10  ;;  %v1179_v6 = vpop.f32.mrb[88].mxu0 }
 0x3b0   :  { %v1180_v25 = vadd.f32 %v1179_v6, %v8295_v14  ;;  %v1181_v34 = vpop.f32.mrb[89].mxu0 }
 0x3b1   :  { %v1182_v39 = vadd.f32 %v1181_v34, %v8298_v43  ;;  %v1183_v18 = vpop.f32.mrb[90].mxu0  ;;  %2266 = vmatprep.mubr.bf16.mxu1 %v8474_v21  ;;  %2459 = vmatprep.mubr.bf16.mxu0 %v8474_v21 }
 0x3b2   :  { %v1184_v20 = vadd.f32 %v1183_v18, %v8295_v14  ;;  %v1185_v29 = vpop.f32.mrb[91].mxu0  ;;  %2267 = vmatmul.mubr.bf16.gmra.mrb[96].mxu1 %v8472_v13  ;;  %2460 = vmatmul.mubr.bf16.gmra.mrb[148].mxu0 %v8472_v13  ;;  %v1248_v23 = vmax.f32 %v1180_v25, 0.0  ;;  %v1424_v14 = vsub.s32 2, %v8283_v46 }
 0x3b3   :  { %v1186_v22 = vadd.f32 %v1185_v29, %v8298_v43  ;;  %v1249_v26 = vmax.f32 %v1182_v39, 0.0  ;;  %v1412_v43 = vld [vmem:[#allocation9] sm:$0xff] }
 0x3b4   :  { %v1250_v24 = vmax.f32 %v1184_v20, 0.0 }
 0x3b5   :  { %v1251_v31 = vmax.f32 %v1186_v22, 0.0 }
 0x3b6   :  { %v8484_v40 = vpack.c.bf16 %v1250_v24, %v1248_v23 }
 0x3b7   :  { %v8486_v41 = vpack.c.bf16 %v1251_v31, %v1249_v26 }
 0x3b9   :  { %2276 = vmatprep.mubr.bf16.mxu1 %v8486_v41  ;;  %2469 = vmatprep.mubr.bf16.mxu0 %v8486_v41 }
 0x3ba   :  { %2277 = vmatmul.mubr.bf16.gmra.mrb[100].mxu1 %v8484_v40  ;;  %2470 = vmatmul.mubr.bf16.gmra.mrb[152].mxu0 %v8484_v40 }
 0x3bb   :  { %2512 = vmatprep.mubr.bf16.mxu1 %v8306_v37  ;;  %2705 = vmatprep.mubr.bf16.mxu0 %v8306_v37  ;;  %v8537_v37 = vrot.slane %v1412_v43, %v8286_v54 }
 0x3c2   :  { %2513 = vmatmul.mubr.bf16.vlgmr.msra.gmra.mrb[104].mxu1 %v8304_v36  ;;  %2706 = vmatmul.mubr.bf16.vlgmr.msra.gmra.mrb[156].mxu0 %v8304_v36  ;;  %v1428_v36 = vsub.s32 3, %v8283_v46 }
 0x3c3   :  { %2522 = vmatprep.mubr.bf16.mxu1 %v8318_v28  ;;  %2715 = vmatprep.mubr.bf16.mxu0 %v8318_v28  ;;  %v8546_v28 = vrot.slane %v1412_v43, %v8292_v60 }
 0x3ca   :  { %2523 = vmatmul.mubr.bf16.gmra.mrb[108].mxu1 %v8316_v35  ;;  %2716 = vmatmul.mubr.bf16.gmra.mrb[160].mxu0 %v8316_v35  ;;  %v8541_v35 = vrot.slane %v1412_v43, %v1424_v14 }
 0x3cb   :  { %2532 = vmatprep.mubr.bf16.mxu1 %v8330_v38  ;;  %2725 = vmatprep.mubr.bf16.mxu0 %v8330_v38 }
 0x3d2   :  { %2533 = vmatmul.mubr.bf16.gmra.mrb[112].mxu1 %v8328_v32  ;;  %2726 = vmatmul.mubr.bf16.gmra.mrb[164].mxu0 %v8328_v32  ;;  %v8550_v32 = vrot.slane %v1412_v43, %v1428_v36 }
 0x3d3   :  { %2542 = vmatprep.mubr.bf16.mxu1 %v8342_v44  ;;  %2735 = vmatprep.mubr.bf16.mxu0 %v8342_v44 }
 0x3da   :  { %2543 = vmatmul.mubr.bf16.gmra.mrb[116].mxu1 %v8340_v11  ;;  %2736 = vmatmul.mubr.bf16.gmra.mrb[168].mxu0 %v8340_v11 }
 0x3db   :  { %2552 = vmatprep.mubr.bf16.mxu1 %v8354_v50  ;;  %2745 = vmatprep.mubr.bf16.mxu0 %v8354_v50 }
 0x3e2   :  { %2553 = vmatmul.mubr.bf16.gmra.mrb[120].mxu1 %v8352_v49  ;;  %2746 = vmatmul.mubr.bf16.gmra.mrb[172].mxu0 %v8352_v49 }
 0x3e3   :  { %2562 = vmatprep.mubr.bf16.mxu1 %v8366_v15  ;;  %2755 = vmatprep.mubr.bf16.mxu0 %v8366_v15 }
 0x3ea   :  { %2563 = vmatmul.mubr.bf16.gmra.mrb[124].mxu1 %v8364_v57  ;;  %2756 = vmatmul.mubr.bf16.gmra.mrb[176].mxu0 %v8364_v57 }
 0x3eb   :  { %2572 = vmatprep.mubr.bf16.mxu1 %v8378_v62  ;;  %2765 = vmatprep.mubr.bf16.mxu0 %v8378_v62 }
 0x3f2   :  { %2573 = vmatmul.mubr.bf16.gmra.mrb[128].mxu1 %v8376_v33  ;;  %2766 = vmatmul.mubr.bf16.gmra.mrb[180].mxu0 %v8376_v33 }
 0x3f3   :  { %2582 = vmatprep.mubr.bf16.mxu1 %v8390_v30  ;;  %2775 = vmatprep.mubr.bf16.mxu0 %v8390_v30 }
 0x3fa   :  { %2583 = vmatmul.mubr.bf16.gmra.mrb[132].mxu1 %v8388_v27  ;;  %2776 = vmatmul.mubr.bf16.gmra.mrb[184].mxu0 %v8388_v27 }
 0x3fb   :  { %2592 = vmatprep.mubr.bf16.mxu1 %v8402_v1  ;;  %2785 = vmatprep.mubr.bf16.mxu0 %v8402_v1 }
 0x402   :  { %2593 = vmatmul.mubr.bf16.gmra.mrb[136].mxu1 %v8400_v0  ;;  %2786 = vmatmul.mubr.bf16.gmra.mrb[188].mxu0 %v8400_v0 }
 0x403   :  { %2602 = vmatprep.mubr.bf16.mxu1 %v8414_v17  ;;  %2795 = vmatprep.mubr.bf16.mxu0 %v8414_v17 }
 0x40a   :  { %2603 = vmatmul.mubr.bf16.gmra.mrb[140].mxu1 %v8412_v42  ;;  %2796 = vmatmul.mubr.bf16.gmra.mrb[192].mxu0 %v8412_v42 }
 0x40b   :  { %2612 = vmatprep.mubr.bf16.mxu1 %v8426_v47  ;;  %2805 = vmatprep.mubr.bf16.mxu0 %v8426_v47 }
 0x412   :  { %2613 = vmatmul.mubr.bf16.gmra.mrb[144].mxu1 %v8424_v45  ;;  %2806 = vmatmul.mubr.bf16.gmra.mrb[196].mxu0 %v8424_v45 }
 0x413   :  { %2622 = vmatprep.mubr.bf16.mxu1 %v8438_v2  ;;  %2815 = vmatprep.mubr.bf16.mxu0 %v8438_v2 }
 0x415   :  { %v2128_v38 = vpop.f32.mrb[40].mxu1  ;;  %v2321_v11 = vpop.f32.mrb[92].mxu0 }
 0x416   :  { %v2129_v44 = vadd.f32 %v2128_v38, %v8537_v37  ;;  %v2322_v49 = vadd.f32 %v2321_v11, %v8541_v35  ;;  %v2130_v50 = vpop.f32.mrb[41].mxu1  ;;  %v2323_v57 = vpop.f32.mrb[93].mxu0 }
 0x417   :  { %v2131_v15 = vadd.f32 %v2130_v50, %v8546_v28  ;;  %v2324_v33 = vadd.f32 %v2323_v57, %v8550_v32  ;;  %v2132_v62 = vpop.f32.mrb[42].mxu1  ;;  %v2325_v27 = vpop.f32.mrb[94].mxu0 }
 0x418   :  { %v2133_v30 = vadd.f32 %v2132_v62, %v8537_v37  ;;  %v2326_v0 = vadd.f32 %v2325_v27, %v8541_v35  ;;  %v2134_v1 = vpop.f32.mrb[43].mxu1  ;;  %v2327_v42 = vpop.f32.mrb[95].mxu0  ;;  %v2866_v47 = vmax.f32 %v2129_v44, 0.0  ;;  %v2868_v2 = vmax.f32 %v2322_v49, 0.0 }
 0x419   :  { %v2135_v17 = vadd.f32 %v2134_v1, %v8546_v28  ;;  %v2328_v45 = vadd.f32 %v2327_v42, %v8550_v32  ;;  %v2867_v52 = vmax.f32 %v2131_v15, 0.0  ;;  %v2869_v56 = vmax.f32 %v2324_v33, 0.0 }
 0x41a   :  { %v2874_v48 = vmax.f32 %v2133_v30, 0.0  ;;  %v2876_v51 = vmax.f32 %v2326_v0, 0.0  ;;  %2623 = vmatmul.mubr.bf16.gmra.mrb[148].mxu1 %v8436_v4  ;;  %2816 = vmatmul.mubr.bf16.gmra.mrb[200].mxu0 %v8436_v4 }
 0x41b   :  { %v2875_v58 = vmax.f32 %v2135_v17, 0.0  ;;  %v2877_v59 = vmax.f32 %v2328_v45, 0.0  ;;  %2632 = vmatprep.mubr.bf16.mxu1 %v8450_v5  ;;  %2825 = vmatprep.mubr.bf16.mxu0 %v8450_v5 }
 0x41c   :  { %v3122_v61 = vmax.f32 %v2866_v47, %v2874_v48  ;;  %v3164_v9 = vmax.f32 %v2868_v2, %v2876_v51 }
 0x41d   :  { %v3143_v63 = vmax.f32 %v2867_v52, %v2875_v58  ;;  %v3185_v16 = vmax.f32 %v2869_v56, %v2877_v59  ;;  %v2138_v3 = vpop.f32.mrb[44].mxu1  ;;  %v2331_v7 = vpop.f32.mrb[96].mxu0 }
 0x41e   :  { %v2139_v8 = vadd.f32 %v2138_v3, %v8537_v37  ;;  %v2332_v10 = vadd.f32 %v2331_v7, %v8541_v35  ;;  %v2140_v12 = vpop.f32.mrb[45].mxu1  ;;  %v2333_v4 = vpop.f32.mrb[97].mxu0 }
 0x41f   :  { %v2141_v6 = vadd.f32 %v2140_v12, %v8546_v28  ;;  %v2334_v25 = vadd.f32 %v2333_v4, %v8550_v32  ;;  %v2142_v34 = vpop.f32.mrb[46].mxu1  ;;  %v2335_v39 = vpop.f32.mrb[98].mxu0 }
 0x420   :  { %v2882_v18 = vmax.f32 %v2139_v8, 0.0  ;;  %v2884_v5 = vmax.f32 %v2332_v10, 0.0  ;;  %v2143_v20 = vadd.f32 %v2142_v34, %v8537_v37  ;;  %v2336_v29 = vadd.f32 %v2335_v39, %v8541_v35  ;;  %v2144_v22 = vpop.f32.mrb[47].mxu1  ;;  %v2337_v23 = vpop.f32.mrb[99].mxu0 }
 0x421   :  { %v2883_v24 = vmax.f32 %v2141_v6, 0.0  ;;  %v2885_v26 = vmax.f32 %v2334_v25, 0.0  ;;  %v2145_v31 = vadd.f32 %v2144_v22, %v8546_v28  ;;  %v2338_v43 = vadd.f32 %v2337_v23, %v8550_v32 }
 0x422   :  { %v3123_v38 = vmax.f32 %v3122_v61, %v2882_v18  ;;  %v3165_v11 = vmax.f32 %v3164_v9, %v2884_v5  ;;  %v2890_v44 = vmax.f32 %v2143_v20, 0.0  ;;  %v2892_v49 = vmax.f32 %v2336_v29, 0.0  ;;  %2633 = vmatmul.mubr.bf16.gmra.mrb[152].mxu1 %v8448_v19  ;;  %2826 = vmatmul.mubr.bf16.gmra.mrb[204].mxu0 %v8448_v19 }
 0x423   :  { %v3144_v50 = vmax.f32 %v3143_v63, %v2883_v24  ;;  %v3186_v57 = vmax.f32 %v3185_v16, %v2885_v26  ;;  %v2891_v15 = vmax.f32 %v2145_v31, 0.0  ;;  %v2893_v33 = vmax.f32 %v2338_v43, 0.0  ;;  %2642 = vmatprep.mubr.bf16.mxu1 %v8462_v55  ;;  %2835 = vmatprep.mubr.bf16.mxu0 %v8462_v55 }
 0x424   :  { %v3124_v62 = vmax.f32 %v3123_v38, %v2890_v44  ;;  %v3166_v27 = vmax.f32 %v3165_v11, %v2892_v49 }
 0x425   :  { %v3145_v30 = vmax.f32 %v3144_v50, %v2891_v15  ;;  %v3187_v0 = vmax.f32 %v3186_v57, %v2893_v33  ;;  %v2148_v1 = vpop.f32.mrb[48].mxu1  ;;  %v2341_v42 = vpop.f32.mrb[100].mxu0 }
 0x426   :  { %v2149_v17 = vadd.f32 %v2148_v1, %v8537_v37  ;;  %v2342_v45 = vadd.f32 %v2341_v42, %v8541_v35  ;;  %v2150_v47 = vpop.f32.mrb[49].mxu1  ;;  %v2343_v19 = vpop.f32.mrb[101].mxu0 }
 0x427   :  { %v2151_v2 = vadd.f32 %v2150_v47, %v8546_v28  ;;  %v2344_v48 = vadd.f32 %v2343_v19, %v8550_v32  ;;  %v2152_v51 = vpop.f32.mrb[50].mxu1  ;;  %v2345_v52 = vpop.f32.mrb[102].mxu0 }
 0x428   :  { %v2898_v56 = vmax.f32 %v2149_v17, 0.0  ;;  %v2900_v55 = vmax.f32 %v2342_v45, 0.0  ;;  %v2153_v58 = vadd.f32 %v2152_v51, %v8537_v37  ;;  %v2346_v59 = vadd.f32 %v2345_v52, %v8541_v35  ;;  %v2154_v61 = vpop.f32.mrb[51].mxu1  ;;  %v2347_v9 = vpop.f32.mrb[103].mxu0 }
 0x429   :  { %v2899_v63 = vmax.f32 %v2151_v2, 0.0  ;;  %v2901_v16 = vmax.f32 %v2344_v48, 0.0  ;;  %v2155_v3 = vadd.f32 %v2154_v61, %v8546_v28  ;;  %v2348_v7 = vadd.f32 %v2347_v9, %v8550_v32 }
 0x42a   :  { %v3125_v8 = vmax.f32 %v3124_v62, %v2898_v56  ;;  %v3167_v10 = vmax.f32 %v3166_v27, %v2900_v55  ;;  %v2906_v12 = vmax.f32 %v2153_v58, 0.0  ;;  %v2908_v4 = vmax.f32 %v2346_v59, 0.0  ;;  %2643 = vmatmul.mubr.bf16.gmra.mrb[156].mxu1 %v8460_v53  ;;  %2836 = vmatmul.mubr.bf16.gmra.mrb[208].mxu0 %v8460_v53 }
 0x42b   :  { %v3146_v6 = vmax.f32 %v3145_v30, %v2899_v63  ;;  %v3188_v25 = vmax.f32 %v3187_v0, %v2901_v16  ;;  %v2907_v34 = vmax.f32 %v2155_v3, 0.0  ;;  %v2909_v39 = vmax.f32 %v2348_v7, 0.0  ;;  %2652 = vmatprep.mubr.bf16.mxu1 %v8474_v21  ;;  %2845 = vmatprep.mubr.bf16.mxu0 %v8474_v21 }
 0x42c   :  { %v3126_v18 = vmax.f32 %v3125_v8, %v2906_v12  ;;  %v3168_v5 = vmax.f32 %v3167_v10, %v2908_v4 }
 0x42d   :  { %v3147_v20 = vmax.f32 %v3146_v6, %v2907_v34  ;;  %v3189_v29 = vmax.f32 %v3188_v25, %v2909_v39  ;;  %v2158_v22 = vpop.f32.mrb[52].mxu1  ;;  %v2351_v23 = vpop.f32.mrb[104].mxu0 }
 0x42e   :  { %v2159_v24 = vadd.f32 %v2158_v22, %v8537_v37  ;;  %v2352_v26 = vadd.f32 %v2351_v23, %v8541_v35  ;;  %v2160_v31 = vpop.f32.mrb[53].mxu1  ;;  %v2353_v53 = vpop.f32.mrb[105].mxu0 }
 0x42f   :  { %v2161_v43 = vadd.f32 %v2160_v31, %v8546_v28  ;;  %v2354_v38 = vadd.f32 %v2353_v53, %v8550_v32  ;;  %v2162_v11 = vpop.f32.mrb[54].mxu1  ;;  %v2355_v44 = vpop.f32.mrb[106].mxu0 }
 0x430   :  { %v2914_v49 = vmax.f32 %v2159_v24, 0.0  ;;  %v2916_v21 = vmax.f32 %v2352_v26, 0.0  ;;  %v2163_v50 = vadd.f32 %v2162_v11, %v8537_v37  ;;  %v2356_v57 = vadd.f32 %v2355_v44, %v8541_v35  ;;  %v2164_v15 = vpop.f32.mrb[55].mxu1  ;;  %v2357_v33 = vpop.f32.mrb[107].mxu0 }
 0x431   :  { %v2915_v62 = vmax.f32 %v2161_v43, 0.0  ;;  %v2917_v27 = vmax.f32 %v2354_v38, 0.0  ;;  %v2165_v30 = vadd.f32 %v2164_v15, %v8546_v28  ;;  %v2358_v0 = vadd.f32 %v2357_v33, %v8550_v32 }
 0x432   :  { %v3127_v1 = vmax.f32 %v3126_v18, %v2914_v49  ;;  %v3169_v42 = vmax.f32 %v3168_v5, %v2916_v21  ;;  %v2922_v17 = vmax.f32 %v2163_v50, 0.0  ;;  %v2924_v45 = vmax.f32 %v2356_v57, 0.0  ;;  %2653 = vmatmul.mubr.bf16.gmra.mrb[160].mxu1 %v8472_v13  ;;  %2846 = vmatmul.mubr.bf16.gmra.mrb[212].mxu0 %v8472_v13  ;;  %v6955_v50 = vld [vmem:[#allocation11] ss:$16 sps:$4 sm:$0xff]   ;;  %v6957_v57 = vld [vmem:[#allocation11 + $0x4] ss:$16 sps:$4 sm:$0xff]  }
 0x433   :  { %v3148_v47 = vmax.f32 %v3147_v20, %v2915_v62  ;;  %v3190_v19 = vmax.f32 %v3189_v29, %v2917_v27  ;;  %v2923_v2 = vmax.f32 %v2165_v30, 0.0  ;;  %v2925_v48 = vmax.f32 %v2358_v0, 0.0  ;;  %2662 = vmatprep.mubr.bf16.mxu1 %v8486_v41  ;;  %2855 = vmatprep.mubr.bf16.mxu0 %v8486_v41 }
 0x434   :  { %v3128_v51 = vmax.f32 %v3127_v1, %v2922_v17  ;;  %v3170_v52 = vmax.f32 %v3169_v42, %v2924_v45  ;;  %5189 = vmatprep.subr.bf16.mxu1 %v6957_v57 }
 0x435   :  { %v3149_v56 = vmax.f32 %v3148_v47, %v2923_v2  ;;  %v3191_v55 = vmax.f32 %v3190_v19, %v2925_v48  ;;  %v2168_v58 = vpop.f32.mrb[56].mxu1  ;;  %v2361_v59 = vpop.f32.mrb[108].mxu0  ;;  %5190 = vmatpush1.bf16.msra.mxu1 %v6955_v50 }
 0x436   :  { %v2169_v61 = vadd.f32 %v2168_v58, %v8537_v37  ;;  %v2362_v9 = vadd.f32 %v2361_v59, %v8541_v35  ;;  %v2170_v63 = vpop.f32.mrb[57].mxu1  ;;  %v2363_v13 = vpop.f32.mrb[109].mxu0 }
 0x437   :  { %v2171_v16 = vadd.f32 %v2170_v63, %v8546_v28  ;;  %v2364_v3 = vadd.f32 %v2363_v13, %v8550_v32  ;;  %v2172_v7 = vpop.f32.mrb[58].mxu1  ;;  %v2365_v8 = vpop.f32.mrb[110].mxu0 }
 0x438   :  { %v2930_v10 = vmax.f32 %v2169_v61, 0.0  ;;  %v2932_v41 = vmax.f32 %v2362_v9, 0.0  ;;  %v2173_v12 = vadd.f32 %v2172_v7, %v8537_v37  ;;  %v2366_v4 = vadd.f32 %v2365_v8, %v8541_v35  ;;  %v2174_v6 = vpop.f32.mrb[59].mxu1  ;;  %v2367_v25 = vpop.f32.mrb[111].mxu0 }
 0x439   :  { %v2931_v34 = vmax.f32 %v2171_v16, 0.0  ;;  %v2933_v39 = vmax.f32 %v2364_v3, 0.0  ;;  %v2175_v18 = vadd.f32 %v2174_v6, %v8546_v28  ;;  %v2368_v5 = vadd.f32 %v2367_v25, %v8550_v32  ;;  %v6960_v6 = vld [vmem:[#allocation11 + $0x24] ss:$16 sps:$4 sm:$0xff]  }
 0x43a   :  { %v3129_v20 = vmax.f32 %v3128_v51, %v2930_v10  ;;  %v3171_v29 = vmax.f32 %v3170_v52, %v2932_v41  ;;  %v2938_v22 = vmax.f32 %v2173_v12, 0.0  ;;  %v2940_v23 = vmax.f32 %v2366_v4, 0.0  ;;  %2663 = vmatmul.mubr.bf16.gmra.mrb[164].mxu1 %v8484_v40  ;;  %2856 = vmatmul.mubr.bf16.gmra.mrb[216].mxu0 %v8484_v40  ;;  %v6958_v4 = vld [vmem:[#allocation11 + $0x20] ss:$16 sps:$4 sm:$0xff]  }
 0x43b   :  { %v3150_v24 = vmax.f32 %v3149_v56, %v2931_v34  ;;  %v3192_v26 = vmax.f32 %v3191_v55, %v2933_v39  ;;  %v2939_v31 = vmax.f32 %v2175_v18, 0.0  ;;  %v2941_v53 = vmax.f32 %v2368_v5, 0.0  ;;  %5191 = vmatprep.subr.bf16.mxu1 %v6960_v6 }
 0x43c   :  { %v3130_v43 = vmax.f32 %v3129_v20, %v2938_v22  ;;  %v3172_v38 = vmax.f32 %v3171_v29, %v2940_v23  ;;  %v7692_v23 = vmov 1966171168   ;;  %5192 = vmatpush1.bf16.msra.mxu1 %v6958_v4 }
 0x43d   :  { %v3151_v11 = vmax.f32 %v3150_v24, %v2939_v31  ;;  %v3193_v44 = vmax.f32 %v3192_v26, %v2941_v53  ;;  %v2178_v49 = vpop.f32.mrb[60].mxu1  ;;  %v2371_v21 = vpop.f32.mrb[112].mxu0  ;;  %v3303_v24 = vunpack.c.l.s4 %v7692_v23 }
 0x43e   :  { %v2179_v15 = vadd.f32 %v2178_v49, %v8537_v37  ;;  %v2372_v33 = vadd.f32 %v2371_v21, %v8541_v35  ;;  %v2180_v62 = vpop.f32.mrb[61].mxu1  ;;  %v2373_v27 = vpop.f32.mrb[113].mxu0 }
 0x43f   :  { %v2181_v40 = vadd.f32 %v2180_v62, %v8546_v28  ;;  %v2374_v30 = vadd.f32 %v2373_v27, %v8550_v32  ;;  %v2182_v0 = vpop.f32.mrb[62].mxu1  ;;  %v2375_v1 = vpop.f32.mrb[114].mxu0 }
 0x440   :  { %v2946_v42 = vmax.f32 %v2179_v15, 0.0  ;;  %v2948_v17 = vmax.f32 %v2372_v33, 0.0  ;;  %v2183_v45 = vadd.f32 %v2182_v0, %v8537_v37  ;;  %v2376_v47 = vadd.f32 %v2375_v1, %v8541_v35  ;;  %v2184_v19 = vpop.f32.mrb[63].mxu1  ;;  %v2377_v2 = vpop.f32.mrb[115].mxu0 }
 0x441   :  { %v2947_v48 = vmax.f32 %v2181_v40, 0.0  ;;  %v2949_v51 = vmax.f32 %v2374_v30, 0.0  ;;  %v2185_v52 = vadd.f32 %v2184_v19, %v8546_v28  ;;  %v2378_v56 = vadd.f32 %v2377_v2, %v8550_v32  ;;  %v6961_v2 = vld [vmem:[#allocation11 + $0x40] ss:$16 sps:$4 sm:$0xff]  }
 0x442   :  { %v3131_v55 = vmax.f32 %v3130_v43, %v2946_v42  ;;  %v3173_v58 = vmax.f32 %v3172_v38, %v2948_v17  ;;  %v2954_v59 = vmax.f32 %v2183_v45, 0.0  ;;  %v2956_v61 = vmax.f32 %v2376_v47, 0.0 }
 0x443   :  { %v3152_v9 = vmax.f32 %v3151_v11, %v2947_v48  ;;  %v3194_v63 = vmax.f32 %v3193_v44, %v2949_v51  ;;  %v2955_v13 = vmax.f32 %v2185_v52, 0.0  ;;  %v2957_v16 = vmax.f32 %v2378_v56, 0.0  ;;  %v6963_v48 = vld [vmem:[#allocation11 + $0x44] ss:$16 sps:$4 sm:$0xff]  }
 0x444   :  { %v3132_v3 = vmax.f32 %v3131_v55, %v2954_v59  ;;  %v3174_v7 = vmax.f32 %v3173_v58, %v2956_v61  ;;  %5193 = vmatprep.subr.bf16.mxu1 %v6963_v48 }
 0x445   :  { %v3153_v8 = vmax.f32 %v3152_v9, %v2955_v13  ;;  %v3195_v10 = vmax.f32 %v3194_v63, %v2957_v16  ;;  %v2188_v41 = vpop.f32.mrb[64].mxu1  ;;  %v2381_v12 = vpop.f32.mrb[116].mxu0  ;;  %v3304_v63 = vunpack.c.0.s8 %v3303_v24  ;;  %5194 = vmatpush1.bf16.msra.mxu1 %v6961_v2 }
 0x446   :  { %v2189_v25 = vadd.f32 %v2188_v41, %v8537_v37  ;;  %v2382_v34 = vadd.f32 %v2381_v12, %v8541_v35  ;;  %v2190_v39 = vpop.f32.mrb[65].mxu1  ;;  %v2383_v18 = vpop.f32.mrb[117].mxu0 }
 0x447   :  { %v2191_v5 = vadd.f32 %v2190_v39, %v8546_v28  ;;  %v2384_v20 = vadd.f32 %v2383_v18, %v8550_v32  ;;  %v2192_v29 = vpop.f32.mrb[66].mxu1  ;;  %v2385_v22 = vpop.f32.mrb[118].mxu0 }
 0x448   :  { %v2962_v26 = vmax.f32 %v2189_v25, 0.0  ;;  %v2964_v31 = vmax.f32 %v2382_v34, 0.0  ;;  %v2193_v53 = vadd.f32 %v2192_v29, %v8537_v37  ;;  %v2386_v43 = vadd.f32 %v2385_v22, %v8541_v35  ;;  %v2194_v38 = vpop.f32.mrb[67].mxu1  ;;  %v2387_v11 = vpop.f32.mrb[119].mxu0 }
 0x449   :  { %v2963_v44 = vmax.f32 %v2191_v5, 0.0  ;;  %v2965_v49 = vmax.f32 %v2384_v20, 0.0  ;;  %v2195_v21 = vadd.f32 %v2194_v38, %v8546_v28  ;;  %v2388_v50 = vadd.f32 %v2387_v11, %v8550_v32 }
 0x44a   :  { %v3133_v57 = vmax.f32 %v3132_v3, %v2962_v26  ;;  %v3175_v15 = vmax.f32 %v3174_v7, %v2964_v31  ;;  %v2970_v33 = vmax.f32 %v2193_v53, 0.0  ;;  %v2972_v62 = vmax.f32 %v2386_v43, 0.0 }
 0x44b   :  { %v3154_v27 = vmax.f32 %v3153_v8, %v2963_v44  ;;  %v3196_v40 = vmax.f32 %v3195_v10, %v2965_v49  ;;  %v2971_v30 = vmax.f32 %v2195_v21, 0.0  ;;  %v2973_v0 = vmax.f32 %v2388_v50, 0.0 }
 0x44c   :  { %v3134_v1 = vmax.f32 %v3133_v57, %v2970_v33  ;;  %v3176_v42 = vmax.f32 %v3175_v15, %v2972_v62  ;;  %v8637_v31 = vsub.s32 %v3304_v63, %v8283_v46 }
 0x44d   :  { %v3155_v17 = vmax.f32 %v3154_v27, %v2971_v30  ;;  %v3197_v45 = vmax.f32 %v3196_v40, %v2973_v0  ;;  %v2198_v47 = vpop.f32.mrb[68].mxu1  ;;  %v2391_v19 = vpop.f32.mrb[120].mxu0 }
 0x44e   :  { %v2199_v51 = vadd.f32 %v2198_v47, %v8537_v37  ;;  %v2392_v52 = vadd.f32 %v2391_v19, %v8541_v35  ;;  %v2200_v56 = vpop.f32.mrb[69].mxu1  ;;  %v2393_v55 = vpop.f32.mrb[121].mxu0 }
 0x44f   :  { %v2201_v58 = vadd.f32 %v2200_v56, %v8546_v28  ;;  %v2394_v59 = vadd.f32 %v2393_v55, %v8550_v32  ;;  %v2202_v61 = vpop.f32.mrb[70].mxu1  ;;  %v2395_v9 = vpop.f32.mrb[122].mxu0 }
 0x450   :  { %v2978_v13 = vmax.f32 %v2199_v51, 0.0  ;;  %v2980_v16 = vmax.f32 %v2392_v52, 0.0  ;;  %v2203_v3 = vadd.f32 %v2202_v61, %v8537_v37  ;;  %v2396_v7 = vadd.f32 %v2395_v9, %v8541_v35  ;;  %v2204_v8 = vpop.f32.mrb[71].mxu1  ;;  %v2397_v10 = vpop.f32.mrb[123].mxu0 }
 0x451   :  { %v2979_v41 = vmax.f32 %v2201_v58, 0.0  ;;  %v2981_v12 = vmax.f32 %v2394_v59, 0.0  ;;  %v2205_v4 = vadd.f32 %v2204_v8, %v8546_v28  ;;  %v2398_v6 = vadd.f32 %v2397_v10, %v8550_v32 }
 0x452   :  { %v3135_v25 = vmax.f32 %v3134_v1, %v2978_v13  ;;  %v3177_v34 = vmax.f32 %v3176_v42, %v2980_v16  ;;  %v2986_v39 = vmax.f32 %v2203_v3, 0.0  ;;  %v2988_v18 = vmax.f32 %v2396_v7, 0.0 }
 0x453   :  { %v3156_v5 = vmax.f32 %v3155_v17, %v2979_v41  ;;  %v3198_v20 = vmax.f32 %v3197_v45, %v2981_v12  ;;  %v2987_v29 = vmax.f32 %v2205_v4, 0.0  ;;  %v2989_v22 = vmax.f32 %v2398_v6, 0.0 }
 0x454   :  { %v3136_v23 = vmax.f32 %v3135_v25, %v2986_v39  ;;  %v3178_v24 = vmax.f32 %v3177_v34, %v2988_v18 }
 0x455   :  { %v3157_v26 = vmax.f32 %v3156_v5, %v2987_v29  ;;  %v3199_v53 = vmax.f32 %v3198_v20, %v2989_v22  ;;  %v2208_v43 = vpop.f32.mrb[72].mxu1  ;;  %v2401_v38 = vpop.f32.mrb[124].mxu0 }
 0x456   :  { %v3137_v11 = vrot.slane %v3136_v23, 4  ;;  %v3179_v44 = vrot.slane %v3178_v24, 4  ;;  %v2209_v49 = vadd.f32 %v2208_v43, %v8537_v37  ;;  %v2402_v21 = vadd.f32 %v2401_v38, %v8541_v35  ;;  %v2210_v50 = vpop.f32.mrb[73].mxu1  ;;  %v2403_v57 = vpop.f32.mrb[125].mxu0 }
 0x457   :  { %v3158_v15 = vrot.slane %v3157_v26, 4  ;;  %v3200_v33 = vrot.slane %v3199_v53, 4  ;;  %v2211_v62 = vadd.f32 %v2210_v50, %v8546_v28  ;;  %v2404_v27 = vadd.f32 %v2403_v57, %v8550_v32  ;;  %v2212_v40 = vpop.f32.mrb[74].mxu1  ;;  %v2405_v30 = vpop.f32.mrb[126].mxu0 }
 0x458   :  { %v3138_v0 = vmax.f32 %v3136_v23, %v3137_v11  ;;  %v3180_v1 = vmax.f32 %v3178_v24, %v3179_v44  ;;  %v2994_v42 = vmax.f32 %v2209_v49, 0.0  ;;  %v2996_v17 = vmax.f32 %v2402_v21, 0.0  ;;  %v2214_v45 = vpop.f32.mrb[75].mxu1  ;;  %v2407_v47 = vpop.f32.mrb[127].mxu0 }
 0x459   :  { %v3159_v19 = vmax.f32 %v3157_v26, %v3158_v15  ;;  %v3201_v2 = vmax.f32 %v3199_v53, %v3200_v33  ;;  %v2995_v48 = vmax.f32 %v2211_v62, 0.0  ;;  %v2997_v51 = vmax.f32 %v2404_v27, 0.0 }
 0x45a   :  { %v3139_v52 = vrot.slane %v3138_v0, 2  ;;  %v3181_v56 = vrot.slane %v3180_v1, 2  ;;  %v2213_v55 = vadd.f32 %v2212_v40, %v8537_v37  ;;  %v2406_v58 = vadd.f32 %v2405_v30, %v8541_v35 }
 0x45b   :  { %v3160_v59 = vrot.slane %v3159_v19, 2  ;;  %v3202_v61 = vrot.slane %v3201_v2, 2  ;;  %v2215_v9 = vadd.f32 %v2214_v45, %v8546_v28  ;;  %v2408_v63 = vadd.f32 %v2407_v47, %v8550_v32 }
 0x45c   :  { %v3140_v13 = vmax.f32 %v3138_v0, %v3139_v52  ;;  %v3182_v16 = vmax.f32 %v3180_v1, %v3181_v56  ;;  %v3002_v3 = vmax.f32 %v2213_v55, 0.0  ;;  %v3004_v7 = vmax.f32 %v2406_v58, 0.0 }
 0x45d   :  { %v3161_v8 = vmax.f32 %v3159_v19, %v3160_v59  ;;  %v3203_v10 = vmax.f32 %v3201_v2, %v3202_v61  ;;  %v3003_v41 = vmax.f32 %v2215_v9, 0.0  ;;  %v3005_v12 = vmax.f32 %v2408_v63, 0.0  ;;  %v2218_v4 = vpop.f32.mrb[76].mxu1  ;;  %v2411_v6 = vpop.f32.mrb[128].mxu0 }
 0x45e   :  { %v3141_v25 = vrot.slane %v3140_v13, 1  ;;  %v3183_v34 = vrot.slane %v3182_v16, 1  ;;  %v3349_v39 = vmax.f32 %v2994_v42, %v3002_v3  ;;  %v3391_v18 = vmax.f32 %v2996_v17, %v3004_v7  ;;  %v2220_v5 = vpop.f32.mrb[77].mxu1  ;;  %v2413_v20 = vpop.f32.mrb[129].mxu0 }
 0x45f   :  { %v3162_v29 = vrot.slane %v3161_v8, 1  ;;  %v3204_v22 = vrot.slane %v3203_v10, 1  ;;  %v3370_v23 = vmax.f32 %v2995_v48, %v3003_v41  ;;  %v3412_v24 = vmax.f32 %v2997_v51, %v3005_v12  ;;  %v2222_v26 = vpop.f32.mrb[78].mxu1  ;;  %v2415_v53 = vpop.f32.mrb[130].mxu0 }
 0x460   :  { %v3142_v43 = vmax.f32 %v3140_v13, %v3141_v25  ;;  %v3184_v38 = vmax.f32 %v3182_v16, %v3183_v34  ;;  %v2219_v11 = vadd.f32 %v2218_v4, %v8537_v37  ;;  %v2412_v44 = vadd.f32 %v2411_v6, %v8541_v35  ;;  %v2224_v49 = vpop.f32.mrb[79].mxu1  ;;  %v2417_v21 = vpop.f32.mrb[131].mxu0 }
 0x461   :  { %v3163_v50 = vmax.f32 %v3161_v8, %v3162_v29  ;;  %v3205_v57 = vmax.f32 %v3203_v10, %v3204_v22  ;;  %v2221_v15 = vadd.f32 %v2220_v5, %v8546_v28  ;;  %v2414_v33 = vadd.f32 %v2413_v20, %v8550_v32 }
 0x462   :  { %v3010_v62 = vmax.f32 %v2219_v11, 0.0  ;;  %v3012_v27 = vmax.f32 %v2412_v44, 0.0  ;;  %v2223_v40 = vadd.f32 %v2222_v26, %v8537_v37  ;;  %v2416_v30 = vadd.f32 %v2415_v53, %v8541_v35 }
 0x463   :  { %v3298_v0 = vcombine.low %v3142_v43, %v3163_v50  ;;  %v3299_v1 = vcombine.low %v3184_v38, %v3205_v57  ;;  %v3011_v42 = vmax.f32 %v2221_v15, 0.0  ;;  %v3013_v17 = vmax.f32 %v2414_v33, 0.0 }
 0x464   :  { %v3350_v45 = vmax.f32 %v3349_v39, %v3010_v62  ;;  %v3392_v47 = vmax.f32 %v3391_v18, %v3012_v27  ;;  %v3018_v19 = vmax.f32 %v2223_v40, 0.0  ;;  %v3020_v2 = vmax.f32 %v2416_v30, 0.0  ;;  %v6964_v27 = vld [vmem:[#allocation11 + $0x60] ss:$16 sps:$4 sm:$0xff]  }
 0x465   :  { %v8654_v48 = vrot.slane %v3298_v0, %v8637_v31  ;;  %v8657_v51 = vrot.slane %v3299_v1, %v8637_v31  ;;  %v3371_v52 = vmax.f32 %v3370_v23, %v3011_v42  ;;  %v3413_v56 = vmax.f32 %v3412_v24, %v3013_v17  ;;  %v2228_v55 = vpop.f32.mrb[80].mxu1  ;;  %v2421_v58 = vpop.f32.mrb[132].mxu0  ;;  %v6966_v17 = vld [vmem:[#allocation11 + $0x64] ss:$16 sps:$4 sm:$0xff]  }
 0x466   :  { %v3351_v59 = vmax.f32 %v3350_v45, %v3018_v19  ;;  %v3393_v61 = vmax.f32 %v3392_v47, %v3020_v2  ;;  %v2225_v9 = vadd.f32 %v2224_v49, %v8546_v28  ;;  %v2418_v63 = vadd.f32 %v2417_v21, %v8550_v32  ;;  %v2230_v13 = vpop.f32.mrb[81].mxu1  ;;  %v2423_v16 = vpop.f32.mrb[133].mxu0  ;;  %5195 = vmatprep.subr.bf16.mxu1 %v6966_v17 }
 0x467   :  { %v3330_v3 = vcombine.low %v8654_v48, %v8657_v51  ;;  %v2229_v7 = vadd.f32 %v2228_v55, %v8537_v37  ;;  %v2422_v8 = vadd.f32 %v2421_v58, %v8541_v35  ;;  %v2231_v10 = vadd.f32 %v2230_v13, %v8546_v28  ;;  %v2232_v41 = vpop.f32.mrb[82].mxu1  ;;  %v2425_v12 = vpop.f32.mrb[134].mxu0  ;;  %v6969_v55 = vld [vmem:[#allocation11 + $0x84] ss:$16 sps:$4 sm:$0xff]   ;;  %5196 = vmatpush1.bf16.msra.mxu1 %v6964_v27 }
 0x468   :  { %v3019_v4 = vmax.f32 %v2225_v9, 0.0  ;;  %v3021_v6 = vmax.f32 %v2418_v63, 0.0  ;;  %v2424_v25 = vadd.f32 %v2423_v16, %v8550_v32  ;;  %v2233_v34 = vadd.f32 %v2232_v41, %v8537_v37  ;;  %v2234_v39 = vpop.f32.mrb[83].mxu1  ;;  %v2427_v18 = vpop.f32.mrb[135].mxu0  ;;  %v6967_v41 = vld [vmem:[#allocation11 + $0x80] ss:$16 sps:$4 sm:$0xff]   ;;  %5197 = vmatprep.subr.bf16.mxu1 %v6969_v55 }
 0x469   :  { %v3026_v5 = vmax.f32 %v2229_v7, 0.0  ;;  %v3028_v20 = vmax.f32 %v2422_v8, 0.0  ;;  %v3027_v29 = vmax.f32 %v2231_v10, 0.0  ;;  %v2426_v38 = vadd.f32 %v2425_v12, %v8541_v35 }
 0x46a   :  { %v3372_v22 = vmax.f32 %v3371_v52, %v3019_v4  ;;  %v3414_v23 = vmax.f32 %v3413_v56, %v3021_v6  ;;  %v3029_v24 = vmax.f32 %v2424_v25, 0.0  ;;  %v3034_v26 = vmax.f32 %v2233_v34, 0.0  ;;  %v6972_v34 = vld [vmem:[#allocation11 + $0xa4] ss:$16 sps:$4 sm:$0xff]  }
 0x46b   :  { %v3352_v53 = vmax.f32 %v3351_v59, %v3026_v5  ;;  %v3394_v43 = vmax.f32 %v3393_v61, %v3028_v20  ;;  %v2235_v11 = vadd.f32 %v2234_v39, %v8546_v28  ;;  %v2428_v21 = vadd.f32 %v2427_v18, %v8550_v32  ;;  %5198 = vmatpush1.bf16.msra.mxu1 %v6967_v41 }
 0x46c   :  { %v3373_v44 = vmax.f32 %v3372_v22, %v3027_v29  ;;  %v3415_v49 = vmax.f32 %v3414_v23, %v3029_v24  ;;  %v3036_v57 = vmax.f32 %v2426_v38, 0.0  ;;  %5199 = vmatprep.subr.bf16.mxu1 %v6972_v34 }
 0x46d   :  { %v3353_v50 = vmax.f32 %v3352_v53, %v3034_v26  ;;  %v3035_v15 = vmax.f32 %v2235_v11, 0.0  ;;  %v2238_v33 = vpop.f32.mrb[84].mxu1  ;;  %v2431_v62 = vpop.f32.mrb[136].mxu0  ;;  %v3037_v40 = vmax.f32 %v2428_v21, 0.0 }
 0x46e   :  { %v2239_v30 = vadd.f32 %v2238_v33, %v8537_v37  ;;  %v2432_v0 = vadd.f32 %v2431_v62, %v8541_v35  ;;  %v2240_v1 = vpop.f32.mrb[85].mxu1  ;;  %v2433_v42 = vpop.f32.mrb[137].mxu0  ;;  %v3395_v45 = vmax.f32 %v3394_v43, %v3036_v57  ;;  %v6970_v43 = vld [vmem:[#allocation11 + $0xa0] ss:$16 sps:$4 sm:$0xff]  }
 0x46f   :  { %v3374_v47 = vmax.f32 %v3373_v44, %v3035_v15  ;;  %v2241_v19 = vadd.f32 %v2240_v1, %v8546_v28  ;;  %v2434_v2 = vadd.f32 %v2433_v42, %v8550_v32  ;;  %v2242_v52 = vpop.f32.mrb[86].mxu1  ;;  %v2435_v56 = vpop.f32.mrb[138].mxu0  ;;  %v3416_v58 = vmax.f32 %v3415_v49, %v3037_v40  ;;  %5200 = vmatpush1.bf16.msra.mxu1 %v6970_v43 }
 0x470   :  { %v3042_v59 = vmax.f32 %v2239_v30, 0.0  ;;  %v3044_v61 = vmax.f32 %v2432_v0, 0.0  ;;  %v2243_v9 = vadd.f32 %v2242_v52, %v8537_v37  ;;  %v2244_v63 = vpop.f32.mrb[87].mxu1  ;;  %v2437_v13 = vpop.f32.mrb[139].mxu0  ;;  %v2436_v8 = vadd.f32 %v2435_v56, %v8541_v35 }
 0x471   :  { %v3043_v16 = vmax.f32 %v2241_v19, 0.0  ;;  %v3045_v7 = vmax.f32 %v2434_v2, 0.0  ;;  %v2245_v10 = vadd.f32 %v2244_v63, %v8546_v28  ;;  %v2438_v25 = vadd.f32 %v2437_v13, %v8550_v32  ;;  %v6973_v2 = vld [vmem:[#allocation11 + $0xc0] ss:$16 sps:$4 sm:$0xff]  }
 0x472   :  { %v3354_v12 = vmax.f32 %v3353_v50, %v3042_v59  ;;  %v3396_v4 = vmax.f32 %v3395_v45, %v3044_v61  ;;  %v3050_v6 = vmax.f32 %v2243_v9, 0.0  ;;  %v3052_v5 = vmax.f32 %v2436_v8, 0.0  ;;  %v6975_v50 = vld [vmem:[#allocation11 + $0xc4] ss:$16 sps:$4 sm:$0xff]   ;;  %v6976_v8 = vld [vmem:[#allocation11 + $0xe0] ss:$16 sps:$4 sm:$0xff]  }
 0x473   :  { %v3375_v39 = vmax.f32 %v3374_v47, %v3043_v16  ;;  %v3417_v18 = vmax.f32 %v3416_v58, %v3045_v7  ;;  %v3051_v20 = vmax.f32 %v2245_v10, 0.0  ;;  %v3053_v22 = vmax.f32 %v2438_v25, 0.0  ;;  %5201 = vmatprep.subr.bf16.mxu1 %v6975_v50  ;;  %v6978_v59 = vld [vmem:[#allocation11 + $0xe4] ss:$16 sps:$4 sm:$0xff]   ;;  %v6981_v25 = vld [vmem:[#allocation11 + $0xc] ss:$16 sps:$4 sm:$0xff]  }
 0x474   :  { %v3355_v29 = vmax.f32 %v3354_v12, %v3050_v6  ;;  %v3397_v23 = vmax.f32 %v3396_v4, %v3052_v5  ;;  %5202 = vmatpush1.bf16.msra.mxu1 %v6973_v2  ;;  %v6979_v6 = vld [vmem:[#allocation11 + $0x8] ss:$16 sps:$4 sm:$0xff]   ;;  %5353 = vmatprep.subr.bf16.mxu0 %v6981_v25 }
 0x475   :  { %v3376_v24 = vmax.f32 %v3375_v39, %v3051_v20  ;;  %v2248_v26 = vpop.f32.mrb[88].mxu1  ;;  %v2441_v53 = vpop.f32.mrb[140].mxu0  ;;  %v3418_v38 = vmax.f32 %v3417_v18, %v3053_v22  ;;  %5203 = vmatprep.subr.bf16.mxu1 %v6978_v59  ;;  %v6984_v20 = vld [vmem:[#allocation11 + $0x104] ss:$16 sps:$4 sm:$0xff]   ;;  %5354 = vmatpush1.bf16.msra.mxu0 %v6979_v6 }
 0x476   :  { %v2249_v11 = vadd.f32 %v2248_v26, %v8537_v37  ;;  %v2442_v44 = vadd.f32 %v2441_v53, %v8541_v35  ;;  %v2250_v49 = vpop.f32.mrb[89].mxu1  ;;  %v2443_v21 = vpop.f32.mrb[141].mxu0 }
 0x477   :  { %v2251_v57 = vadd.f32 %v2250_v49, %v8546_v28  ;;  %v2444_v15 = vadd.f32 %v2443_v21, %v8550_v32  ;;  %v2252_v33 = vpop.f32.mrb[90].mxu1  ;;  %v2445_v62 = vpop.f32.mrb[142].mxu0 }
 0x478   :  { %v3058_v27 = vmax.f32 %v2249_v11, 0.0  ;;  %v3060_v40 = vmax.f32 %v2442_v44, 0.0  ;;  %v2253_v30 = vadd.f32 %v2252_v33, %v8537_v37  ;;  %v2446_v0 = vadd.f32 %v2445_v62, %v8541_v35  ;;  %v2254_v1 = vpop.f32.mrb[91].mxu1  ;;  %v2447_v42 = vpop.f32.mrb[143].mxu0  ;;  %5204 = vmatpush1.bf16.msra.mxu1 %v6976_v8  ;;  %v6991_v8 = vld [vmem:[#allocation11 + $0x48] ss:$16 sps:$4 sm:$0xff]  }
 0x479   :  { %v3059_v17 = vmax.f32 %v2251_v57, 0.0  ;;  %v3061_v45 = vmax.f32 %v2444_v15, 0.0  ;;  %v2255_v47 = vadd.f32 %v2254_v1, %v8546_v28  ;;  %v2448_v19 = vadd.f32 %v2447_v42, %v8550_v32  ;;  %v6982_v15 = vld [vmem:[#allocation11 + $0x100] ss:$16 sps:$4 sm:$0xff]   ;;  %5205 = vmatprep.subr.bf16.mxu1 %v6984_v20 }
 0x47a   :  { %v3356_v52 = vmax.f32 %v3355_v29, %v3058_v27  ;;  %v3398_v56 = vmax.f32 %v3397_v23, %v3060_v40  ;;  %v3066_v55 = vmax.f32 %v2253_v30, 0.0  ;;  %v3068_v58 = vmax.f32 %v2446_v0, 0.0  ;;  %v6987_v30 = vld [vmem:[#allocation11 + $0x2c] ss:$16 sps:$4 sm:$0xff]  }
 0x47b   :  { %v3377_v61 = vmax.f32 %v3376_v24, %v3059_v17  ;;  %v3419_v9 = vmax.f32 %v3418_v38, %v3061_v45  ;;  %v3067_v63 = vmax.f32 %v2255_v47, 0.0  ;;  %v3069_v13 = vmax.f32 %v2448_v19, 0.0  ;;  %v6985_v45 = vld [vmem:[#allocation11 + $0x28] ss:$16 sps:$4 sm:$0xff]   ;;  %5355 = vmatprep.subr.bf16.mxu0 %v6987_v30 }
 0x47c   :  { %v3357_v16 = vmax.f32 %v3356_v52, %v3066_v55  ;;  %v3399_v7 = vmax.f32 %v3398_v56, %v3068_v58  ;;  %v1432_v47 = vsub.s32 4, %v8283_v46  ;;  %v1436_v19 = vsub.s32 5, %v8283_v46  ;;  %5206 = vmatpush1.bf16.msra.mxu1 %v6982_v15  ;;  %5356 = vmatpush1.bf16.msra.mxu0 %v6985_v45  ;;  %v7441_v45 = vld [vmem:[#allocation9] sm:$0xff] }
 0x47d   :  { %v3378_v10 = vmax.f32 %v3377_v61, %v3067_v63  ;;  %v3420_v41 = vmax.f32 %v3419_v9, %v3069_v13  ;;  %v2258_v12 = vpop.f32.mrb[92].mxu1  ;;  %v2451_v4 = vpop.f32.mrb[144].mxu0  ;;  %v6988_v61 = vld [vmem:[#allocation11 + $0x120] ss:$16 sps:$4 sm:$0xff]   ;;  %v6990_v9 = vld [vmem:[#allocation11 + $0x124] ss:$16 sps:$4 sm:$0xff]  }
 0x47e   :  { %v2259_v34 = vadd.f32 %v2258_v12, %v8537_v37  ;;  %v2452_v39 = vadd.f32 %v2451_v4, %v8541_v35  ;;  %v2260_v18 = vpop.f32.mrb[93].mxu1  ;;  %v2453_v5 = vpop.f32.mrb[145].mxu0  ;;  %v1444_v12 = vsub.s32 7, %v8283_v46  ;;  %5207 = vmatprep.subr.bf16.mxu1 %v6990_v9  ;;  %v7002_v9 = vld [vmem:[#allocation11 + $0x8c] ss:$16 sps:$4 sm:$0xff]  }
 0x47f   :  { %v2261_v29 = vadd.f32 %v2260_v18, %v8546_v28  ;;  %v2454_v22 = vadd.f32 %v2453_v5, %v8550_v32  ;;  %v2262_v23 = vpop.f32.mrb[94].mxu1  ;;  %v2455_v24 = vpop.f32.mrb[146].mxu0 }
 0x480   :  { %v3074_v26 = vmax.f32 %v2259_v34, 0.0  ;;  %v3076_v53 = vmax.f32 %v2452_v39, 0.0  ;;  %v2263_v43 = vadd.f32 %v2262_v23, %v8537_v37  ;;  %v2456_v38 = vadd.f32 %v2455_v24, %v8541_v35  ;;  %v2264_v11 = vpop.f32.mrb[95].mxu1  ;;  %v2457_v44 = vpop.f32.mrb[147].mxu0  ;;  %5208 = vmatpush1.bf16.msra.mxu1 %v6988_v61  ;;  %v7000_v61 = vld [vmem:[#allocation11 + $0x88] ss:$16 sps:$4 sm:$0xff]  }
 0x481   :  { %v3075_v49 = vmax.f32 %v2261_v29, 0.0  ;;  %v3077_v21 = vmax.f32 %v2454_v22, 0.0  ;;  %v2265_v50 = vadd.f32 %v2264_v11, %v8546_v28  ;;  %v2458_v57 = vadd.f32 %v2457_v44, %v8550_v32 }
 0x482   :  { %v3358_v33 = vmax.f32 %v3357_v16, %v3074_v26  ;;  %v3400_v62 = vmax.f32 %v3399_v7, %v3076_v53  ;;  %v3082_v27 = vmax.f32 %v2263_v43, 0.0  ;;  %v3084_v40 = vmax.f32 %v2456_v38, 0.0 }
 0x483   :  { %v3379_v0 = vmax.f32 %v3378_v10, %v3075_v49  ;;  %v3421_v1 = vmax.f32 %v3420_v41, %v3077_v21  ;;  %v3083_v42 = vmax.f32 %v2265_v50, 0.0  ;;  %v3085_v17 = vmax.f32 %v2458_v57, 0.0  ;;  %v6993_v10 = vld [vmem:[#allocation11 + $0x4c] ss:$16 sps:$4 sm:$0xff]  }
 0x484   :  { %v3359_v2 = vmax.f32 %v3358_v33, %v3082_v27  ;;  %v3401_v52 = vmax.f32 %v3400_v62, %v3084_v40  ;;  %v1440_v41 = vsub.s32 6, %v8283_v46  ;;  %5357 = vmatprep.subr.bf16.mxu0 %v6993_v10  ;;  %v6996_v49 = vld [vmem:[#allocation11 + $0x6c] ss:$16 sps:$4 sm:$0xff]   ;;  %v6994_v33 = vld [vmem:[#allocation11 + $0x68] ss:$16 sps:$4 sm:$0xff]  }
 0x485   :  { %v3380_v56 = vmax.f32 %v3379_v0, %v3083_v42  ;;  %v3422_v55 = vmax.f32 %v3421_v1, %v3085_v17  ;;  %v2268_v58 = vpop.f32.mrb[96].mxu1  ;;  %v2461_v59 = vpop.f32.mrb[148].mxu0  ;;  %5358 = vmatpush1.bf16.msra.mxu0 %v6991_v8  ;;  %v6997_v42 = vld [vmem:[#allocation11 + $0x140] ss:$16 sps:$4 sm:$0xff]   ;;  %v6999_v17 = vld [vmem:[#allocation11 + $0x144] ss:$16 sps:$4 sm:$0xff]  }
 0x486   :  { %v2269_v63 = vadd.f32 %v2268_v58, %v8537_v37  ;;  %v2462_v13 = vadd.f32 %v2461_v59, %v8541_v35  ;;  %v2270_v16 = vpop.f32.mrb[97].mxu1  ;;  %v2463_v7 = vpop.f32.mrb[149].mxu0  ;;  %5359 = vmatprep.subr.bf16.mxu0 %v6996_v49  ;;  %5209 = vmatprep.subr.bf16.mxu1 %v6999_v17  ;;  %v7009_v17 = vld [vmem:[#allocation11 + $0xc8] ss:$16 sps:$4 sm:$0xff]  }
 0x487   :  { %v2271_v4 = vadd.f32 %v2270_v16, %v8546_v28  ;;  %v2464_v6 = vadd.f32 %v2463_v7, %v8550_v32  ;;  %v2272_v25 = vpop.f32.mrb[98].mxu1  ;;  %v2465_v34 = vpop.f32.mrb[150].mxu0  ;;  %5210 = vmatpush1.bf16.msra.mxu1 %v6997_v42 }
 0x488   :  { %v3090_v39 = vmax.f32 %v2269_v63, 0.0  ;;  %v3092_v18 = vmax.f32 %v2462_v13, 0.0  ;;  %v2273_v5 = vadd.f32 %v2272_v25, %v8537_v37  ;;  %v2466_v20 = vadd.f32 %v2465_v34, %v8541_v35  ;;  %v2274_v29 = vpop.f32.mrb[99].mxu1  ;;  %v2467_v22 = vpop.f32.mrb[151].mxu0 }
 0x489   :  { %v3091_v23 = vmax.f32 %v2271_v4, 0.0  ;;  %v3093_v24 = vmax.f32 %v2464_v6, 0.0  ;;  %v2275_v26 = vadd.f32 %v2274_v29, %v8546_v28  ;;  %v2468_v53 = vadd.f32 %v2467_v22, %v8550_v32  ;;  %5360 = vmatpush1.bf16.msra.mxu0 %v6994_v33 }
 0x48a   :  { %v3360_v43 = vmax.f32 %v3359_v2, %v3090_v39  ;;  %v3402_v38 = vmax.f32 %v3401_v52, %v3092_v18  ;;  %v3098_v11 = vmax.f32 %v2273_v5, 0.0  ;;  %v3100_v44 = vmax.f32 %v2466_v20, 0.0  ;;  %5361 = vmatprep.subr.bf16.mxu0 %v7002_v9 }
 0x48b   :  { %v3381_v21 = vmax.f32 %v3380_v56, %v3091_v23  ;;  %v3423_v50 = vmax.f32 %v3422_v55, %v3093_v24  ;;  %v3099_v57 = vmax.f32 %v2275_v26, 0.0  ;;  %v3101_v15 = vmax.f32 %v2468_v53, 0.0  ;;  %v7005_v23 = vld [vmem:[#allocation11 + $0xac] ss:$16 sps:$4 sm:$0xff]   ;;  %v7003_v53 = vld [vmem:[#allocation11 + $0xa8] ss:$16 sps:$4 sm:$0xff]  }
 0x48c   :  { %v3361_v62 = vmax.f32 %v3360_v43, %v3098_v11  ;;  %v3403_v27 = vmax.f32 %v3402_v38, %v3100_v44  ;;  %v8707_v2 = vrot.slane %v7441_v45, %v1432_v47  ;;  %v8709_v52 = vrot.slane %v7441_v45, %v1436_v19 }
 0x48d   :  { %v3382_v40 = vmax.f32 %v3381_v21, %v3099_v57  ;;  %v3424_v30 = vmax.f32 %v3423_v50, %v3101_v15  ;;  %v2278_v0 = vpop.f32.mrb[100].mxu1  ;;  %v2471_v1 = vpop.f32.mrb[152].mxu0  ;;  %v8713_v63 = vrot.slane %v7441_v45, %v1440_v41  ;;  %v8715_v13 = vrot.slane %v7441_v45, %v1444_v12  ;;  %5362 = vmatpush1.bf16.msra.mxu0 %v7000_v61 }
 0x48e   :  { %v2279_v56 = vadd.f32 %v2278_v0, %v8537_v37  ;;  %v2472_v55 = vadd.f32 %v2471_v1, %v8541_v35  ;;  %v2280_v58 = vpop.f32.mrb[101].mxu1  ;;  %v2473_v59 = vpop.f32.mrb[153].mxu0  ;;  %5363 = vmatprep.subr.bf16.mxu0 %v7005_v23 }
 0x48f   :  { %v2281_v16 = vadd.f32 %v2280_v58, %v8546_v28  ;;  %v2474_v7 = vadd.f32 %v2473_v59, %v8550_v32  ;;  %v2282_v47 = vpop.f32.mrb[102].mxu1  ;;  %v2475_v8 = vpop.f32.mrb[154].mxu0 }
 0x490   :  { %v3106_v19 = vmax.f32 %v2279_v56, 0.0  ;;  %v3108_v10 = vmax.f32 %v2472_v55, 0.0  ;;  %v2283_v4 = vadd.f32 %v2282_v47, %v8537_v37  ;;  %v2476_v6 = vadd.f32 %v2475_v8, %v8541_v35  ;;  %v2284_v25 = vpop.f32.mrb[103].mxu1  ;;  %v2477_v34 = vpop.f32.mrb[155].mxu0 }
 0x491   :  { %v3107_v41 = vmax.f32 %v2281_v16, 0.0  ;;  %v3109_v12 = vmax.f32 %v2474_v7, 0.0  ;;  %v2285_v39 = vadd.f32 %v2284_v25, %v8546_v28  ;;  %v2478_v18 = vadd.f32 %v2477_v34, %v8550_v32  ;;  %5364 = vmatpush1.bf16.msra.mxu0 %v7003_v53 }
 0x492   :  { %v3362_v5 = vmax.f32 %v3361_v62, %v3106_v19  ;;  %v3404_v20 = vmax.f32 %v3403_v27, %v3108_v10  ;;  %v3114_v29 = vmax.f32 %v2283_v4, 0.0  ;;  %v3116_v22 = vmax.f32 %v2476_v6, 0.0  ;;  %v7011_v62 = vld [vmem:[#allocation11 + $0xcc] ss:$16 sps:$4 sm:$0xff]  }
 0x493   :  { %v3383_v24 = vmax.f32 %v3382_v40, %v3107_v41  ;;  %v3425_v37 = vmax.f32 %v3424_v30, %v3109_v12  ;;  %v3115_v26 = vmax.f32 %v2285_v39, 0.0  ;;  %v3117_v35 = vmax.f32 %v2478_v18, 0.0  ;;  %5365 = vmatprep.subr.bf16.mxu0 %v7011_v62  ;;  %v7014_v6 = vld [vmem:[#allocation11 + $0xec] ss:$16 sps:$4 sm:$0xff]   ;;  %v7012_v39 = vld [vmem:[#allocation11 + $0xe8] ss:$16 sps:$4 sm:$0xff]  }
 0x494   :  { %v3363_v43 = vmax.f32 %v3362_v5, %v3114_v29  ;;  %v3405_v38 = vmax.f32 %v3404_v20, %v3116_v22  ;;  %v7018_v62 = vld [vmem:[#allocation11 + $0x108] ss:$16 sps:$4 sm:$0xff]  }
 0x495   :  { %v3384_v11 = vmax.f32 %v3383_v24, %v3115_v26  ;;  %v3426_v44 = vmax.f32 %v3425_v37, %v3117_v35  ;;  %v2514_v49 = vpop.f32.mrb[104].mxu1  ;;  %v2707_v28 = vpop.f32.mrb[156].mxu0  ;;  %5366 = vmatpush1.bf16.msra.mxu0 %v7009_v17 }
 0x496   :  { %v3364_v32 = vrot.slane %v3363_v43, 4  ;;  %v3406_v21 = vrot.slane %v3405_v38, 4  ;;  %v2515_v50 = vadd.f32 %v2514_v49, %v8707_v2  ;;  %v2708_v57 = vadd.f32 %v2707_v28, %v8713_v63  ;;  %v2516_v15 = vpop.f32.mrb[105].mxu1  ;;  %v2709_v33 = vpop.f32.mrb[157].mxu0  ;;  %5367 = vmatprep.subr.bf16.mxu0 %v7014_v6  ;;  %v7020_v28 = vld [vmem:[#allocation11 + $0x10c] ss:$16 sps:$4 sm:$0xff]  }
 0x497   :  { %v3385_v27 = vrot.slane %v3384_v11, 4  ;;  %v3427_v40 = vrot.slane %v3426_v44, 4  ;;  %v2517_v30 = vadd.f32 %v2516_v15, %v8709_v52  ;;  %v2710_v0 = vadd.f32 %v2709_v33, %v8715_v13  ;;  %v2518_v1 = vpop.f32.mrb[106].mxu1  ;;  %v2711_v42 = vpop.f32.mrb[158].mxu0 }
 0x498   :  { %v3365_v45 = vmax.f32 %v3363_v43, %v3364_v32  ;;  %v3407_v56 = vmax.f32 %v3405_v38, %v3406_v21  ;;  %v2870_v55 = vmax.f32 %v2515_v50, 0.0  ;;  %v2872_v58 = vmax.f32 %v2708_v57, 0.0  ;;  %v2520_v59 = vpop.f32.mrb[107].mxu1  ;;  %v2713_v61 = vpop.f32.mrb[159].mxu0 }
 0x499   :  { %v3386_v9 = vmax.f32 %v3384_v11, %v3385_v27  ;;  %v3428_v16 = vmax.f32 %v3426_v44, %v3427_v40  ;;  %v2871_v7 = vmax.f32 %v2517_v30, 0.0  ;;  %v2873_v47 = vmax.f32 %v2710_v0, 0.0  ;;  %5368 = vmatpush1.bf16.msra.mxu0 %v7012_v39 }
 0x49a   :  { %v3366_v8 = vrot.slane %v3365_v45, 2  ;;  %v3408_v19 = vrot.slane %v3407_v56, 2  ;;  %v2519_v10 = vadd.f32 %v2518_v1, %v8707_v2  ;;  %v2712_v4 = vadd.f32 %v2711_v42, %v8713_v63  ;;  %5369 = vmatprep.subr.bf16.mxu0 %v7020_v28  ;;  %v7027_v28 = vld [vmem:[#allocation11 + $0x148] ss:$16 sps:$4 sm:$0xff]  }
 0x49b   :  { %v3387_v25 = vrot.slane %v3386_v9, 2  ;;  %v3429_v34 = vrot.slane %v3428_v16, 2  ;;  %v2521_v41 = vadd.f32 %v2520_v59, %v8709_v52  ;;  %v2714_v12 = vadd.f32 %v2713_v61, %v8715_v13 }
 0x49c   :  { %v3367_v18 = vmax.f32 %v3365_v45, %v3366_v8  ;;  %v3409_v5 = vmax.f32 %v3407_v56, %v3408_v19  ;;  %v2878_v20 = vmax.f32 %v2519_v10, 0.0  ;;  %v2880_v29 = vmax.f32 %v2712_v4, 0.0  ;;  %v7021_v10 = vld [vmem:[#allocation11 + $0x128] ss:$16 sps:$4 sm:$0xff]  }
 0x49d   :  { %v3388_v22 = vmax.f32 %v3386_v9, %v3387_v25  ;;  %v3430_v23 = vmax.f32 %v3428_v16, %v3429_v34  ;;  %v2879_v24 = vmax.f32 %v2521_v41, 0.0  ;;  %v2881_v37 = vmax.f32 %v2714_v12, 0.0  ;;  %v2524_v26 = vpop.f32.mrb[108].mxu1  ;;  %v2717_v35 = vpop.f32.mrb[160].mxu0  ;;  %5370 = vmatpush1.bf16.msra.mxu0 %v7018_v62  ;;  %v7023_v16 = vld [vmem:[#allocation11 + $0x12c] ss:$16 sps:$4 sm:$0xff]  }
 0x49e   :  { %v3368_v53 = vrot.slane %v3367_v18, 1  ;;  %v3410_v43 = vrot.slane %v3409_v5, 1  ;;  %v3206_v38 = vmax.f32 %v2870_v55, %v2878_v20  ;;  %v3248_v11 = vmax.f32 %v2872_v58, %v2880_v29  ;;  %v2526_v44 = vpop.f32.mrb[109].mxu1  ;;  %v2719_v49 = vpop.f32.mrb[161].mxu0  ;;  %5371 = vmatprep.subr.bf16.mxu0 %v7023_v16 }
 0x49f   :  { %v3389_v32 = vrot.slane %v3388_v22, 1  ;;  %v3431_v21 = vrot.slane %v3430_v23, 1  ;;  %v3227_v50 = vmax.f32 %v2871_v7, %v2879_v24  ;;  %v3269_v57 = vmax.f32 %v2873_v47, %v2881_v37  ;;  %v2528_v15 = vpop.f32.mrb[110].mxu1  ;;  %v2721_v33 = vpop.f32.mrb[162].mxu0 }
 0x4a0   :  { %v3369_v27 = vmax.f32 %v3367_v18, %v3368_v53  ;;  %v3411_v40 = vmax.f32 %v3409_v5, %v3410_v43  ;;  %v2525_v30 = vadd.f32 %v2524_v26, %v8707_v2  ;;  %v2718_v0 = vadd.f32 %v2717_v35, %v8713_v63  ;;  %v2530_v1 = vpop.f32.mrb[111].mxu1  ;;  %v2723_v42 = vpop.f32.mrb[163].mxu0  ;;  %v7029_v35 = vld [vmem:[#allocation11 + $0x14c] ss:$16 sps:$4 sm:$0xff]  }
 0x4a1   :  { %v3390_v17 = vmax.f32 %v3388_v22, %v3389_v32  ;;  %v3432_v45 = vmax.f32 %v3430_v23, %v3431_v21  ;;  %v2527_v56 = vadd.f32 %v2526_v44, %v8709_v52  ;;  %v2720_v55 = vadd.f32 %v2719_v49, %v8715_v13  ;;  %5372 = vmatpush1.bf16.msra.mxu0 %v7021_v10 }
 0x4a2   :  { %v2886_v58 = vmax.f32 %v2525_v30, 0.0  ;;  %v2888_v59 = vmax.f32 %v2718_v0, 0.0  ;;  %v2529_v61 = vadd.f32 %v2528_v15, %v8707_v2  ;;  %v2722_v9 = vadd.f32 %v2721_v33, %v8713_v63  ;;  %5373 = vmatprep.subr.bf16.mxu0 %v7029_v35 }
 0x4a3   :  { %v3525_v7 = vcombine.low %v3369_v27, %v3390_v17  ;;  %v3526_v47 = vcombine.low %v3411_v40, %v3432_v45  ;;  %v2887_v8 = vmax.f32 %v2527_v56, 0.0  ;;  %v2889_v19 = vmax.f32 %v2720_v55, 0.0  ;;  %v7008_v17 = vld [vmem:[#allocation11 + $0x164] ss:$16 sps:$4 sm:$0xff]   ;;  %v7032_v45 = vld [vmem:[#allocation11 + $0x16c] ss:$16 sps:$4 sm:$0xff]  }
 0x4a4   :  { %v3207_v4 = vmax.f32 %v3206_v38, %v2886_v58  ;;  %v3249_v6 = vmax.f32 %v3248_v11, %v2888_v59  ;;  %v2894_v25 = vmax.f32 %v2529_v61, 0.0  ;;  %v2896_v34 = vmax.f32 %v2722_v9, 0.0  ;;  %v7006_v61 = vld [vmem:[#allocation11 + $0x160] ss:$16 sps:$4 sm:$0xff]   ;;  %v7030_v9 = vld [vmem:[#allocation11 + $0x168] ss:$16 sps:$4 sm:$0xff]   ;;  %5211 = vmatprep.subr.bf16.mxu1 %v7008_v17 }
 0x4a5   :  { %v8738_v41 = vrot.slane %v3525_v7, %v8637_v31  ;;  %v8741_v12 = vrot.slane %v3526_v47, %v8637_v31  ;;  %v3228_v39 = vmax.f32 %v3227_v50, %v2887_v8  ;;  %v3270_v18 = vmax.f32 %v3269_v57, %v2889_v19  ;;  %v2534_v5 = vpop.f32.mrb[112].mxu1  ;;  %v2727_v20 = vpop.f32.mrb[164].mxu0  ;;  %5374 = vmatpush1.bf16.msra.mxu0 %v7027_v28 }
 0x4a6   :  { %v3208_v29 = vmax.f32 %v3207_v4, %v2894_v25  ;;  %v3250_v22 = vmax.f32 %v3249_v6, %v2896_v34  ;;  %v2531_v23 = vadd.f32 %v2530_v1, %v8709_v52  ;;  %v2724_v24 = vadd.f32 %v2723_v42, %v8715_v13  ;;  %v2536_v37 = vpop.f32.mrb[113].mxu1  ;;  %v2729_v26 = vpop.f32.mrb[165].mxu0  ;;  %5375 = vmatprep.subr.bf16.mxu0 %v7032_v45  ;;  %v7015_v25 = vld [vmem:[#allocation11 + $0x180] ss:$16 sps:$4 sm:$0xff]  }
 0x4a7   :  { %v3557_v53 = vcombine.low %v8738_v41, %v8741_v12  ;;  %v2535_v43 = vadd.f32 %v2534_v5, %v8707_v2  ;;  %v2728_v38 = vadd.f32 %v2727_v20, %v8713_v63  ;;  %v2537_v11 = vadd.f32 %v2536_v37, %v8709_v52  ;;  %v2538_v44 = vpop.f32.mrb[114].mxu1  ;;  %v2731_v49 = vpop.f32.mrb[166].mxu0  ;;  %5212 = vmatpush1.bf16.msra.mxu1 %v7006_v61  ;;  %v7051_v12 = vld [vmem:[#allocation11 + $0x200] ss:$16 sps:$4 sm:$0xff]  }
 0x4a8   :  { %v2895_v32 = vmax.f32 %v2531_v23, 0.0  ;;  %v2897_v21 = vmax.f32 %v2724_v24, 0.0  ;;  %v2730_v50 = vadd.f32 %v2729_v26, %v8715_v13  ;;  %v2539_v57 = vadd.f32 %v2538_v44, %v8707_v2  ;;  %v2540_v15 = vpop.f32.mrb[115].mxu1  ;;  %v2733_v33 = vpop.f32.mrb[167].mxu0 }
 0x4a9   :  { %v2902_v62 = vmax.f32 %v2535_v43, 0.0  ;;  %v2904_v27 = vmax.f32 %v2728_v38, 0.0  ;;  %v2903_v40 = vmax.f32 %v2537_v11, 0.0  ;;  %v2732_v58 = vadd.f32 %v2731_v49, %v8713_v63  ;;  %5376 = vmatpush1.bf16.msra.mxu0 %v7030_v9  ;;  %v7026_v43 = vld [vmem:[#allocation11 + $0x1a4] ss:$16 sps:$4 sm:$0xff]  }
 0x4aa   :  { %v3229_v30 = vmax.f32 %v3228_v39, %v2895_v32  ;;  %v3271_v0 = vmax.f32 %v3270_v18, %v2897_v21  ;;  %v2905_v1 = vmax.f32 %v2730_v50, 0.0  ;;  %v2910_v42 = vmax.f32 %v2539_v57, 0.0 }
 0x4ab   :  { %v3209_v56 = vmax.f32 %v3208_v29, %v2902_v62  ;;  %v3251_v55 = vmax.f32 %v3250_v22, %v2904_v27  ;;  %v2541_v59 = vadd.f32 %v2540_v15, %v8709_v52  ;;  %v2734_v47 = vadd.f32 %v2733_v33, %v8715_v13  ;;  %v7017_v29 = vld [vmem:[#allocation11 + $0x184] ss:$16 sps:$4 sm:$0xff]   ;;  %v7024_v33 = vld [vmem:[#allocation11 + $0x1a0] ss:$16 sps:$4 sm:$0xff]   ;;  %v7036_v62 = vld [vmem:[#allocation11 + $0x188] ss:$16 sps:$4 sm:$0xff]  }
 0x4ac   :  { %v3230_v16 = vmax.f32 %v3229_v30, %v2903_v40  ;;  %v3272_v7 = vmax.f32 %v3271_v0, %v2905_v1  ;;  %v2912_v19 = vmax.f32 %v2732_v58, 0.0  ;;  %5213 = vmatprep.subr.bf16.mxu1 %v7017_v29  ;;  %v7035_v1 = vld [vmem:[#allocation11 + $0x1c4] ss:$16 sps:$4 sm:$0xff]   ;;  %v7041_v58 = vld [vmem:[#allocation11 + $0x1ac] ss:$16 sps:$4 sm:$0xff]  }
 0x4ad   :  { %v3210_v8 = vmax.f32 %v3209_v56, %v2910_v42  ;;  %v2911_v10 = vmax.f32 %v2541_v59, 0.0  ;;  %v2544_v4 = vpop.f32.mrb[116].mxu1  ;;  %v2737_v6 = vpop.f32.mrb[168].mxu0  ;;  %v2913_v34 = vmax.f32 %v2734_v47, 0.0  ;;  %5214 = vmatpush1.bf16.msra.mxu1 %v7015_v25  ;;  %v7038_v42 = vld [vmem:[#allocation11 + $0x18c] ss:$16 sps:$4 sm:$0xff]  }
 0x4ae   :  { %v2545_v39 = vadd.f32 %v2544_v4, %v8707_v2  ;;  %v2738_v18 = vadd.f32 %v2737_v6, %v8713_v63  ;;  %v2546_v5 = vpop.f32.mrb[117].mxu1  ;;  %v2739_v20 = vpop.f32.mrb[169].mxu0  ;;  %v3252_v22 = vmax.f32 %v3251_v55, %v2912_v19  ;;  %5215 = vmatprep.subr.bf16.mxu1 %v7026_v43  ;;  %5377 = vmatprep.subr.bf16.mxu0 %v7038_v42  ;;  %v7039_v19 = vld [vmem:[#allocation11 + $0x1a8] ss:$16 sps:$4 sm:$0xff]  }
 0x4af   :  { %v3231_v23 = vmax.f32 %v3230_v16, %v2911_v10  ;;  %v2547_v24 = vadd.f32 %v2546_v5, %v8709_v52  ;;  %v2740_v37 = vadd.f32 %v2739_v20, %v8715_v13  ;;  %v2548_v26 = vpop.f32.mrb[118].mxu1  ;;  %v2741_v35 = vpop.f32.mrb[170].mxu0  ;;  %v3273_v38 = vmax.f32 %v3272_v7, %v2913_v34  ;;  %5378 = vmatpush1.bf16.msra.mxu0 %v7036_v62 }
 0x4b0   :  { %v2918_v11 = vmax.f32 %v2545_v39, 0.0  ;;  %v2920_v44 = vmax.f32 %v2738_v18, 0.0  ;;  %v2549_v49 = vadd.f32 %v2548_v26, %v8707_v2  ;;  %v2550_v28 = vpop.f32.mrb[119].mxu1  ;;  %v2743_v32 = vpop.f32.mrb[171].mxu0  ;;  %v2742_v57 = vadd.f32 %v2741_v35, %v8713_v63  ;;  %5379 = vmatprep.subr.bf16.mxu0 %v7041_v58  ;;  %v7044_v39 = vld [vmem:[#allocation11 + $0x1e4] ss:$16 sps:$4 sm:$0xff]  }
 0x4b1   :  { %v2919_v21 = vmax.f32 %v2547_v24, 0.0  ;;  %v2921_v50 = vmax.f32 %v2740_v37, 0.0  ;;  %v2551_v15 = vadd.f32 %v2550_v28, %v8709_v52  ;;  %v2744_v0 = vadd.f32 %v2743_v32, %v8715_v13  ;;  %5216 = vmatpush1.bf16.msra.mxu1 %v7024_v33  ;;  %v7047_v18 = vld [vmem:[#allocation11 + $0x1cc] ss:$16 sps:$4 sm:$0xff]   ;;  %v7042_v28 = vld [vmem:[#allocation11 + $0x1e0] ss:$16 sps:$4 sm:$0xff]  }
 0x4b2   :  { %v3211_v27 = vmax.f32 %v3210_v8, %v2918_v11  ;;  %v3253_v40 = vmax.f32 %v3252_v22, %v2920_v44  ;;  %v2926_v30 = vmax.f32 %v2549_v49, 0.0  ;;  %v2928_v56 = vmax.f32 %v2742_v57, 0.0  ;;  %v7033_v8 = vld [vmem:[#allocation11 + $0x1c0] ss:$16 sps:$4 sm:$0xff]   ;;  %5217 = vmatprep.subr.bf16.mxu1 %v7035_v1  ;;  %v7045_v32 = vld [vmem:[#allocation11 + $0x1c8] ss:$16 sps:$4 sm:$0xff]  }
 0x4b3   :  { %v3232_v17 = vmax.f32 %v3231_v23, %v2919_v21  ;;  %v3274_v45 = vmax.f32 %v3273_v38, %v2921_v50  ;;  %v2927_v55 = vmax.f32 %v2551_v15, 0.0  ;;  %v2929_v61 = vmax.f32 %v2744_v0, 0.0  ;;  %5380 = vmatpush1.bf16.msra.mxu0 %v7039_v19  ;;  %v7050_v33 = vld [vmem:[#allocation11 + $0x1ec] ss:$16 sps:$4 sm:$0xff]   ;;  %v7053_v0 = vld [vmem:[#allocation11 + $0x204] ss:$16 sps:$4 sm:$0xff]  }
 0x4b4   :  { %v3212_v59 = vmax.f32 %v3211_v27, %v2926_v30  ;;  %v3254_v9 = vmax.f32 %v3253_v40, %v2928_v56  ;;  %5381 = vmatprep.subr.bf16.mxu0 %v7047_v18  ;;  %v7048_v58 = vld [vmem:[#allocation11 + $0x1e8] ss:$16 sps:$4 sm:$0xff]  }
 0x4b5   :  { %v3233_v16 = vmax.f32 %v3232_v17, %v2927_v55  ;;  %v2554_v7 = vpop.f32.mrb[120].mxu1  ;;  %v2747_v47 = vpop.f32.mrb[172].mxu0  ;;  %v3275_v10 = vmax.f32 %v3274_v45, %v2929_v61  ;;  %5218 = vmatpush1.bf16.msra.mxu1 %v7033_v8 }
 0x4b6   :  { %v2555_v4 = vadd.f32 %v2554_v7, %v8707_v2  ;;  %v2748_v6 = vadd.f32 %v2747_v47, %v8713_v63  ;;  %v2556_v25 = vpop.f32.mrb[121].mxu1  ;;  %v2749_v34 = vpop.f32.mrb[173].mxu0  ;;  %5219 = vmatprep.subr.bf16.mxu1 %v7044_v39 }
 0x4b7   :  { %v2557_v5 = vadd.f32 %v2556_v25, %v8709_v52  ;;  %v2750_v20 = vadd.f32 %v2749_v34, %v8715_v13  ;;  %v2558_v29 = vpop.f32.mrb[122].mxu1  ;;  %v2751_v22 = vpop.f32.mrb[174].mxu0  ;;  %5382 = vmatpush1.bf16.msra.mxu0 %v7045_v32 }
 0x4b8   :  { %v2934_v23 = vmax.f32 %v2555_v4, 0.0  ;;  %v2936_v24 = vmax.f32 %v2748_v6, 0.0  ;;  %v2559_v37 = vadd.f32 %v2558_v29, %v8707_v2  ;;  %v2752_v26 = vadd.f32 %v2751_v22, %v8713_v63  ;;  %v2560_v35 = vpop.f32.mrb[123].mxu1  ;;  %v2753_v43 = vpop.f32.mrb[175].mxu0  ;;  %5383 = vmatprep.subr.bf16.mxu0 %v7050_v33 }
 0x4b9   :  { %v2935_v38 = vmax.f32 %v2557_v5, 0.0  ;;  %v2937_v11 = vmax.f32 %v2750_v20, 0.0  ;;  %v2561_v44 = vadd.f32 %v2560_v35, %v8709_v52  ;;  %v2754_v49 = vadd.f32 %v2753_v43, %v8715_v13  ;;  %5220 = vmatpush1.bf16.msra.mxu1 %v7042_v28 }
 0x4ba   :  { %v3213_v21 = vmax.f32 %v3212_v59, %v2934_v23  ;;  %v3255_v50 = vmax.f32 %v3254_v9, %v2936_v24  ;;  %v2942_v57 = vmax.f32 %v2559_v37, 0.0  ;;  %v2944_v15 = vmax.f32 %v2752_v26, 0.0  ;;  %5230 = vmatprep.subr.bf16.mxu1 %v7053_v0 }
 0x4bb   :  { %v3234_v62 = vmax.f32 %v3233_v16, %v2935_v38  ;;  %v3276_v27 = vmax.f32 %v3275_v10, %v2937_v11  ;;  %v2943_v40 = vmax.f32 %v2561_v44, 0.0  ;;  %v2945_v30 = vmax.f32 %v2754_v49, 0.0  ;;  %v7056_v16 = vld [vmem:[#allocation11 + $0x20c] ss:$16 sps:$4 sm:$0xff]   ;;  %5384 = vmatpush1.bf16.msra.mxu0 %v7048_v58 }
 0x4bc   :  { %v3214_v1 = vmax.f32 %v3213_v21, %v2942_v57  ;;  %v3256_v42 = vmax.f32 %v3255_v50, %v2944_v15  ;;  %5394 = vmatprep.subr.bf16.mxu0 %v7056_v16 }
 0x4bd   :  { %v3235_v17 = vmax.f32 %v3234_v62, %v2943_v40  ;;  %v3277_v45 = vmax.f32 %v3276_v27, %v2945_v30  ;;  %v2564_v56 = vpop.f32.mrb[124].mxu1  ;;  %v2757_v55 = vpop.f32.mrb[176].mxu0 }
 0x4be   :  { %v2565_v59 = vadd.f32 %v2564_v56, %v8707_v2  ;;  %v2758_v61 = vadd.f32 %v2757_v55, %v8713_v63  ;;  %v2566_v9 = vpop.f32.mrb[125].mxu1  ;;  %v2759_v7 = vpop.f32.mrb[177].mxu0 }
 0x4bf   :  { %v2567_v47 = vadd.f32 %v2566_v9, %v8709_v52  ;;  %v2760_v8 = vadd.f32 %v2759_v7, %v8715_v13  ;;  %v2568_v19 = vpop.f32.mrb[126].mxu1  ;;  %v2761_v10 = vpop.f32.mrb[178].mxu0 }
 0x4c0   :  { %v2950_v4 = vmax.f32 %v2565_v59, 0.0  ;;  %v2952_v6 = vmax.f32 %v2758_v61, 0.0  ;;  %v2569_v25 = vadd.f32 %v2568_v19, %v8707_v2  ;;  %v2762_v34 = vadd.f32 %v2761_v10, %v8713_v63  ;;  %v2570_v39 = vpop.f32.mrb[127].mxu1  ;;  %v2763_v18 = vpop.f32.mrb[179].mxu0 }
 0x4c1   :  { %v2951_v5 = vmax.f32 %v2567_v47, 0.0  ;;  %v2953_v20 = vmax.f32 %v2760_v8, 0.0  ;;  %v2571_v29 = vadd.f32 %v2570_v39, %v8709_v52  ;;  %v2764_v22 = vadd.f32 %v2763_v18, %v8715_v13 }
 0x4c2   :  { %v3215_v23 = vmax.f32 %v3214_v1, %v2950_v4  ;;  %v3257_v24 = vmax.f32 %v3256_v42, %v2952_v6  ;;  %v2958_v37 = vmax.f32 %v2569_v25, 0.0  ;;  %v2960_v26 = vmax.f32 %v2762_v34, 0.0 }
 0x4c3   :  { %v3236_v35 = vmax.f32 %v3235_v17, %v2951_v5  ;;  %v3278_v43 = vmax.f32 %v3277_v45, %v2953_v20  ;;  %v2959_v38 = vmax.f32 %v2571_v29, 0.0  ;;  %v2961_v11 = vmax.f32 %v2764_v22, 0.0 }
 0x4c4   :  { %v3216_v44 = vmax.f32 %v3215_v23, %v2958_v37  ;;  %v3258_v49 = vmax.f32 %v3257_v24, %v2960_v26 }
 0x4c5   :  { %v3237_v28 = vmax.f32 %v3236_v35, %v2959_v38  ;;  %v3279_v32 = vmax.f32 %v3278_v43, %v2961_v11  ;;  %v2574_v21 = vpop.f32.mrb[128].mxu1  ;;  %v2767_v50 = vpop.f32.mrb[180].mxu0 }
 0x4c6   :  { %v2575_v57 = vadd.f32 %v2574_v21, %v8707_v2  ;;  %v2768_v15 = vadd.f32 %v2767_v50, %v8713_v63  ;;  %v2576_v33 = vpop.f32.mrb[129].mxu1  ;;  %v2769_v62 = vpop.f32.mrb[181].mxu0 }
 0x4c7   :  { %v2577_v27 = vadd.f32 %v2576_v33, %v8709_v52  ;;  %v2770_v40 = vadd.f32 %v2769_v62, %v8715_v13  ;;  %v2578_v30 = vpop.f32.mrb[130].mxu1  ;;  %v2771_v0 = vpop.f32.mrb[182].mxu0 }
 0x4c8   :  { %v2966_v1 = vmax.f32 %v2575_v57, 0.0  ;;  %v2968_v42 = vmax.f32 %v2768_v15, 0.0  ;;  %v2579_v17 = vadd.f32 %v2578_v30, %v8707_v2  ;;  %v2772_v45 = vadd.f32 %v2771_v0, %v8713_v63  ;;  %v2580_v56 = vpop.f32.mrb[131].mxu1  ;;  %v2773_v55 = vpop.f32.mrb[183].mxu0 }
 0x4c9   :  { %v2967_v58 = vmax.f32 %v2577_v27, 0.0  ;;  %v2969_v59 = vmax.f32 %v2770_v40, 0.0  ;;  %v2581_v61 = vadd.f32 %v2580_v56, %v8709_v52  ;;  %v2774_v9 = vadd.f32 %v2773_v55, %v8715_v13 }
 0x4ca   :  { %v3217_v7 = vmax.f32 %v3216_v44, %v2966_v1  ;;  %v3259_v16 = vmax.f32 %v3258_v49, %v2968_v42  ;;  %v2974_v47 = vmax.f32 %v2579_v17, 0.0  ;;  %v2976_v8 = vmax.f32 %v2772_v45, 0.0 }
 0x4cb   :  { %v3238_v19 = vmax.f32 %v3237_v28, %v2967_v58  ;;  %v3280_v10 = vmax.f32 %v3279_v32, %v2969_v59  ;;  %v2975_v4 = vmax.f32 %v2581_v61, 0.0  ;;  %v2977_v6 = vmax.f32 %v2774_v9, 0.0 }
 0x4cc   :  { %v3218_v25 = vmax.f32 %v3217_v7, %v2974_v47  ;;  %v3260_v34 = vmax.f32 %v3259_v16, %v2976_v8  ;;  %v8799_v56 = vrot.slane %v3330_v3, %v8637_v31 }
 0x4cd   :  { %v3239_v39 = vmax.f32 %v3238_v19, %v2975_v4  ;;  %v3281_v18 = vmax.f32 %v3280_v10, %v2977_v6  ;;  %v2584_v5 = vpop.f32.mrb[132].mxu1  ;;  %v2777_v20 = vpop.f32.mrb[184].mxu0 }
 0x4ce   :  { %v2585_v29 = vadd.f32 %v2584_v5, %v8707_v2  ;;  %v2778_v22 = vadd.f32 %v2777_v20, %v8713_v63  ;;  %v2586_v23 = vpop.f32.mrb[133].mxu1  ;;  %v2779_v24 = vpop.f32.mrb[185].mxu0 }
 0x4cf   :  { %v2587_v37 = vadd.f32 %v2586_v23, %v8709_v52  ;;  %v2780_v26 = vadd.f32 %v2779_v24, %v8715_v13  ;;  %v2588_v35 = vpop.f32.mrb[134].mxu1  ;;  %v2781_v43 = vpop.f32.mrb[186].mxu0 }
 0x4d0   :  { %v2982_v38 = vmax.f32 %v2585_v29, 0.0  ;;  %v2984_v11 = vmax.f32 %v2778_v22, 0.0  ;;  %v2589_v44 = vadd.f32 %v2588_v35, %v8707_v2  ;;  %v2782_v49 = vadd.f32 %v2781_v43, %v8713_v63  ;;  %v2590_v28 = vpop.f32.mrb[135].mxu1  ;;  %v2783_v32 = vpop.f32.mrb[187].mxu0 }
 0x4d1   :  { %v2983_v21 = vmax.f32 %v2587_v37, 0.0  ;;  %v2985_v50 = vmax.f32 %v2780_v26, 0.0  ;;  %v2591_v57 = vadd.f32 %v2590_v28, %v8709_v52  ;;  %v2784_v15 = vadd.f32 %v2783_v32, %v8715_v13 }
 0x4d2   :  { %v3219_v33 = vmax.f32 %v3218_v25, %v2982_v38  ;;  %v3261_v62 = vmax.f32 %v3260_v34, %v2984_v11  ;;  %v2990_v27 = vmax.f32 %v2589_v44, 0.0  ;;  %v2992_v40 = vmax.f32 %v2782_v49, 0.0 }
 0x4d3   :  { %v3240_v30 = vmax.f32 %v3239_v39, %v2983_v21  ;;  %v3282_v0 = vmax.f32 %v3281_v18, %v2985_v50  ;;  %v2991_v1 = vmax.f32 %v2591_v57, 0.0  ;;  %v2993_v42 = vmax.f32 %v2784_v15, 0.0 }
 0x4d4   :  { %v3220_v17 = vmax.f32 %v3219_v33, %v2990_v27  ;;  %v3262_v45 = vmax.f32 %v3261_v62, %v2992_v40 }
 0x4d5   :  { %v3241_v55 = vmax.f32 %v3240_v30, %v2991_v1  ;;  %v3283_v58 = vmax.f32 %v3282_v0, %v2993_v42  ;;  %v2594_v59 = vpop.f32.mrb[136].mxu1  ;;  %v2787_v61 = vpop.f32.mrb[188].mxu0 }
 0x4d6   :  { %v3221_v9 = vrot.slane %v3220_v17, 4  ;;  %v3263_v7 = vrot.slane %v3262_v45, 4  ;;  %v2595_v16 = vadd.f32 %v2594_v59, %v8707_v2  ;;  %v2788_v47 = vadd.f32 %v2787_v61, %v8713_v63  ;;  %v2596_v8 = vpop.f32.mrb[137].mxu1  ;;  %v2789_v19 = vpop.f32.mrb[189].mxu0 }
 0x4d7   :  { %v3242_v10 = vrot.slane %v3241_v55, 4  ;;  %v3284_v4 = vrot.slane %v3283_v58, 4  ;;  %v2597_v6 = vadd.f32 %v2596_v8, %v8709_v52  ;;  %v2790_v48 = vadd.f32 %v2789_v19, %v8715_v13  ;;  %v2598_v51 = vpop.f32.mrb[138].mxu1  ;;  %v2791_v3 = vpop.f32.mrb[190].mxu0 }
 0x4d8   :  { %v3222_v25 = vmax.f32 %v3220_v17, %v3221_v9  ;;  %v3264_v34 = vmax.f32 %v3262_v45, %v3263_v7  ;;  %v2998_v39 = vmax.f32 %v2595_v16, 0.0  ;;  %v3000_v18 = vmax.f32 %v2788_v47, 0.0  ;;  %v2600_v5 = vpop.f32.mrb[139].mxu1  ;;  %v2793_v20 = vpop.f32.mrb[191].mxu0 }
 0x4d9   :  { %v3243_v29 = vmax.f32 %v3241_v55, %v3242_v10  ;;  %v3285_v22 = vmax.f32 %v3283_v58, %v3284_v4  ;;  %v2999_v23 = vmax.f32 %v2597_v6, 0.0  ;;  %v3001_v24 = vmax.f32 %v2790_v48, 0.0 }
 0x4da   :  { %v3223_v37 = vrot.slane %v3222_v25, 2  ;;  %v3265_v26 = vrot.slane %v3264_v34, 2  ;;  %v2599_v35 = vadd.f32 %v2598_v51, %v8707_v2  ;;  %v2792_v43 = vadd.f32 %v2791_v3, %v8713_v63 }
 0x4db   :  { %v3244_v38 = vrot.slane %v3243_v29, 2  ;;  %v3286_v11 = vrot.slane %v3285_v22, 2  ;;  %v2601_v44 = vadd.f32 %v2600_v5, %v8709_v52  ;;  %v2794_v49 = vadd.f32 %v2793_v20, %v8715_v13 }
 0x4dc   :  { %v3224_v28 = vmax.f32 %v3222_v25, %v3223_v37  ;;  %v3266_v32 = vmax.f32 %v3264_v34, %v3265_v26  ;;  %v3006_v21 = vmax.f32 %v2599_v35, 0.0  ;;  %v3008_v50 = vmax.f32 %v2792_v43, 0.0 }
 0x4dd   :  { %v3245_v57 = vmax.f32 %v3243_v29, %v3244_v38  ;;  %v3287_v15 = vmax.f32 %v3285_v22, %v3286_v11  ;;  %v3007_v33 = vmax.f32 %v2601_v44, 0.0  ;;  %v3009_v62 = vmax.f32 %v2794_v49, 0.0  ;;  %v2604_v27 = vpop.f32.mrb[140].mxu1  ;;  %v2797_v40 = vpop.f32.mrb[192].mxu0 }
 0x4de   :  { %v3225_v30 = vrot.slane %v3224_v28, 1  ;;  %v3267_v0 = vrot.slane %v3266_v32, 1  ;;  %v3433_v1 = vmax.f32 %v2998_v39, %v3006_v21  ;;  %v3475_v42 = vmax.f32 %v3000_v18, %v3008_v50  ;;  %v2606_v17 = vpop.f32.mrb[141].mxu1  ;;  %v2799_v45 = vpop.f32.mrb[193].mxu0 }
 0x4df   :  { %v3246_v55 = vrot.slane %v3245_v57, 1  ;;  %v3288_v58 = vrot.slane %v3287_v15, 1  ;;  %v3454_v59 = vmax.f32 %v2999_v23, %v3007_v33  ;;  %v3496_v61 = vmax.f32 %v3001_v24, %v3009_v62  ;;  %v2608_v9 = vpop.f32.mrb[142].mxu1  ;;  %v2801_v7 = vpop.f32.mrb[194].mxu0 }
 0x4e0   :  { %v3226_v16 = vmax.f32 %v3224_v28, %v3225_v30  ;;  %v3268_v47 = vmax.f32 %v3266_v32, %v3267_v0  ;;  %v2605_v8 = vadd.f32 %v2604_v27, %v8707_v2  ;;  %v2798_v19 = vadd.f32 %v2797_v40, %v8713_v63  ;;  %v2610_v10 = vpop.f32.mrb[143].mxu1  ;;  %v2803_v4 = vpop.f32.mrb[195].mxu0 }
 0x4e1   :  { %v3247_v6 = vmax.f32 %v3245_v57, %v3246_v55  ;;  %v3289_v48 = vmax.f32 %v3287_v15, %v3288_v58  ;;  %v2607_v51 = vadd.f32 %v2606_v17, %v8709_v52  ;;  %v2800_v3 = vadd.f32 %v2799_v45, %v8715_v13 }
 0x4e2   :  { %v3014_v25 = vmax.f32 %v2605_v8, 0.0  ;;  %v3016_v34 = vmax.f32 %v2798_v19, 0.0  ;;  %v2609_v39 = vadd.f32 %v2608_v9, %v8707_v2  ;;  %v2802_v18 = vadd.f32 %v2801_v7, %v8713_v63 }
 0x4e3   :  { %v3300_v5 = vcombine.low %v3226_v16, %v3247_v6  ;;  %v3301_v20 = vcombine.low %v3268_v47, %v3289_v48  ;;  %v3015_v29 = vmax.f32 %v2607_v51, 0.0  ;;  %v3017_v22 = vmax.f32 %v2800_v3, 0.0 }
 0x4e4   :  { %v3434_v23 = vmax.f32 %v3433_v1, %v3014_v25  ;;  %v3476_v24 = vmax.f32 %v3475_v42, %v3016_v34  ;;  %v3022_v37 = vmax.f32 %v2609_v39, 0.0  ;;  %v3024_v26 = vmax.f32 %v2802_v18, 0.0 }
 0x4e5   :  { %v3322_v35 = vrot.slane %v3300_v5, %v8637_v31  ;;  %v3329_v43 = vrot.slane %v3301_v20, %v8637_v31  ;;  %v3455_v38 = vmax.f32 %v3454_v59, %v3015_v29  ;;  %v3497_v11 = vmax.f32 %v3496_v61, %v3017_v22  ;;  %v2614_v44 = vpop.f32.mrb[144].mxu1  ;;  %v2807_v49 = vpop.f32.mrb[196].mxu0 }
 0x4e6   :  { %v3435_v28 = vmax.f32 %v3434_v23, %v3022_v37  ;;  %v3477_v32 = vmax.f32 %v3476_v24, %v3024_v26  ;;  %v2611_v21 = vadd.f32 %v2610_v10, %v8709_v52  ;;  %v2804_v50 = vadd.f32 %v2803_v4, %v8715_v13  ;;  %v2616_v57 = vpop.f32.mrb[145].mxu1  ;;  %v2809_v15 = vpop.f32.mrb[197].mxu0 }
 0x4e7   :  { %v3331_v33 = vcombine.low %v3322_v35, %v3329_v43  ;;  %v2615_v62 = vadd.f32 %v2614_v44, %v8707_v2  ;;  %v2808_v27 = vadd.f32 %v2807_v49, %v8713_v63  ;;  %v2617_v40 = vadd.f32 %v2616_v57, %v8709_v52  ;;  %v2618_v30 = vpop.f32.mrb[146].mxu1  ;;  %v2811_v0 = vpop.f32.mrb[198].mxu0 }
 0x4e8   :  { %v3023_v1 = vmax.f32 %v2611_v21, 0.0  ;;  %v3025_v42 = vmax.f32 %v2804_v50, 0.0  ;;  %v2810_v17 = vadd.f32 %v2809_v15, %v8715_v13  ;;  %v2619_v45 = vadd.f32 %v2618_v30, %v8707_v2  ;;  %v2620_v55 = vpop.f32.mrb[147].mxu1  ;;  %v2813_v58 = vpop.f32.mrb[199].mxu0 }
 0x4e9   :  { %v3345_v59 = vrot.slane %v3331_v33, %v8637_v31  ;;  %v3030_v61 = vmax.f32 %v2615_v62, 0.0  ;;  %v3032_v9 = vmax.f32 %v2808_v27, 0.0  ;;  %v3031_v7 = vmax.f32 %v2617_v40, 0.0 }
 0x4ea   :  { %v3456_v16 = vmax.f32 %v3455_v38, %v3023_v1  ;;  %v3498_v47 = vmax.f32 %v3497_v11, %v3025_v42  ;;  %v3033_v8 = vmax.f32 %v2810_v17, 0.0  ;;  %v3038_v19 = vmax.f32 %v2619_v45, 0.0 }
 0x4eb   :  { %v3346_v10 = vcombine.low %v8799_v56, %v3345_v59  ;;  %v3436_v4 = vmax.f32 %v3435_v28, %v3030_v61  ;;  %v3478_v6 = vmax.f32 %v3477_v32, %v3032_v9  ;;  %v2812_v48 = vadd.f32 %v2811_v0, %v8713_v63 }
 0x4ec   :  { %v3457_v51 = vmax.f32 %v3456_v16, %v3031_v7  ;;  %v3499_v3 = vmax.f32 %v3498_v47, %v3033_v8  ;;  %v2621_v25 = vadd.f32 %v2620_v55, %v8709_v52  ;;  %v2814_v34 = vadd.f32 %v2813_v58, %v8715_v13 }
 0x4ed   :  { %3348 = vst [vmem:[#allocation2] ss:$2 sm:$0xff] %v3346_v10  ;;  %v3437_v39 = vmax.f32 %v3436_v4, %v3038_v19  ;;  %v3040_v18 = vmax.f32 %v2812_v48, 0.0  ;;  %v2624_v5 = vpop.f32.mrb[148].mxu1  ;;  %v2817_v20 = vpop.f32.mrb[200].mxu0 }
 0x4ee   :  { %v3039_v29 = vmax.f32 %v2621_v25, 0.0  ;;  %v3041_v22 = vmax.f32 %v2814_v34, 0.0  ;;  %v2625_v23 = vadd.f32 %v2624_v5, %v8707_v2  ;;  %v2818_v56 = vadd.f32 %v2817_v20, %v8713_v63  ;;  %v2626_v24 = vpop.f32.mrb[149].mxu1  ;;  %v2819_v37 = vpop.f32.mrb[201].mxu0 }
 0x4ef   :  { %v3479_v26 = vmax.f32 %v3478_v6, %v3040_v18  ;;  %v2627_v35 = vadd.f32 %v2626_v24, %v8709_v52  ;;  %v2820_v43 = vadd.f32 %v2819_v37, %v8715_v13  ;;  %v2628_v38 = vpop.f32.mrb[150].mxu1  ;;  %v2821_v11 = vpop.f32.mrb[202].mxu0 }
 0x4f0   :  { %v3458_v44 = vmax.f32 %v3457_v51, %v3039_v29  ;;  %v3500_v49 = vmax.f32 %v3499_v3, %v3041_v22  ;;  %v3046_v28 = vmax.f32 %v2625_v23, 0.0  ;;  %v3048_v32 = vmax.f32 %v2818_v56, 0.0  ;;  %v2630_v21 = vpop.f32.mrb[151].mxu1  ;;  %v2823_v50 = vpop.f32.mrb[203].mxu0 }
 0x4f1   :  { %v3047_v57 = vmax.f32 %v2627_v35, 0.0  ;;  %v3049_v15 = vmax.f32 %v2820_v43, 0.0  ;;  %v2629_v33 = vadd.f32 %v2628_v38, %v8707_v2  ;;  %v2822_v62 = vadd.f32 %v2821_v11, %v8713_v63 }
 0x4f2   :  { %v3438_v27 = vmax.f32 %v3437_v39, %v3046_v28  ;;  %v3480_v40 = vmax.f32 %v3479_v26, %v3048_v32  ;;  %v2631_v30 = vadd.f32 %v2630_v21, %v8709_v52  ;;  %v2824_v0 = vadd.f32 %v2823_v50, %v8715_v13 }
 0x4f3   :  { %v3459_v1 = vmax.f32 %v3458_v44, %v3047_v57  ;;  %v3501_v42 = vmax.f32 %v3500_v49, %v3049_v15  ;;  %v3054_v17 = vmax.f32 %v2629_v33, 0.0  ;;  %v3056_v45 = vmax.f32 %v2822_v62, 0.0 }
 0x4f4   :  { %v3055_v55 = vmax.f32 %v2631_v30, 0.0  ;;  %v3057_v58 = vmax.f32 %v2824_v0, 0.0 }
 0x4f5   :  { %v3439_v59 = vmax.f32 %v3438_v27, %v3054_v17  ;;  %v3481_v61 = vmax.f32 %v3480_v40, %v3056_v45  ;;  %v2634_v9 = vpop.f32.mrb[152].mxu1  ;;  %v2827_v7 = vpop.f32.mrb[204].mxu0 }
 0x4f6   :  { %v3460_v16 = vmax.f32 %v3459_v1, %v3055_v55  ;;  %v3502_v47 = vmax.f32 %v3501_v42, %v3057_v58  ;;  %v2635_v8 = vadd.f32 %v2634_v9, %v8707_v2  ;;  %v2828_v19 = vadd.f32 %v2827_v7, %v8713_v63  ;;  %v2636_v10 = vpop.f32.mrb[153].mxu1  ;;  %v2829_v4 = vpop.f32.mrb[205].mxu0 }
 0x4f7   :  { %v2637_v6 = vadd.f32 %v2636_v10, %v8709_v52  ;;  %v2830_v48 = vadd.f32 %v2829_v4, %v8715_v13  ;;  %v2638_v51 = vpop.f32.mrb[154].mxu1  ;;  %v2831_v3 = vpop.f32.mrb[206].mxu0 }
 0x4f8   :  { %v3062_v25 = vmax.f32 %v2635_v8, 0.0  ;;  %v3064_v34 = vmax.f32 %v2828_v19, 0.0  ;;  %v2639_v39 = vadd.f32 %v2638_v51, %v8707_v2  ;;  %v2832_v18 = vadd.f32 %v2831_v3, %v8713_v63  ;;  %v2640_v5 = vpop.f32.mrb[155].mxu1  ;;  %v2833_v20 = vpop.f32.mrb[207].mxu0 }
 0x4f9   :  { %v3063_v29 = vmax.f32 %v2637_v6, 0.0  ;;  %v3065_v22 = vmax.f32 %v2830_v48, 0.0  ;;  %v2641_v23 = vadd.f32 %v2640_v5, %v8709_v52  ;;  %v2834_v56 = vadd.f32 %v2833_v20, %v8715_v13 }
 0x4fa   :  { %v3440_v24 = vmax.f32 %v3439_v59, %v3062_v25  ;;  %v3482_v37 = vmax.f32 %v3481_v61, %v3064_v34  ;;  %v3070_v26 = vmax.f32 %v2639_v39, 0.0  ;;  %v3072_v35 = vmax.f32 %v2832_v18, 0.0 }
 0x4fb   :  { %v3461_v43 = vmax.f32 %v3460_v16, %v3063_v29  ;;  %v3503_v38 = vmax.f32 %v3502_v47, %v3065_v22  ;;  %v3071_v11 = vmax.f32 %v2641_v23, 0.0  ;;  %v3073_v44 = vmax.f32 %v2834_v56, 0.0 }
 0x4fc   :  { %v3441_v49 = vmax.f32 %v3440_v24, %v3070_v26  ;;  %v3483_v28 = vmax.f32 %v3482_v37, %v3072_v35 }
 0x4fd   :  { %v3462_v32 = vmax.f32 %v3461_v43, %v3071_v11  ;;  %v3504_v21 = vmax.f32 %v3503_v38, %v3073_v44  ;;  %v2644_v50 = vpop.f32.mrb[156].mxu1  ;;  %v2837_v57 = vpop.f32.mrb[208].mxu0 }
 0x4fe   :  { %v2645_v15 = vadd.f32 %v2644_v50, %v8707_v2  ;;  %v2838_v33 = vadd.f32 %v2837_v57, %v8713_v63  ;;  %v2646_v62 = vpop.f32.mrb[157].mxu1  ;;  %v2839_v27 = vpop.f32.mrb[209].mxu0 }
 0x4ff   :  { %v2647_v40 = vadd.f32 %v2646_v62, %v8709_v52  ;;  %v2840_v30 = vadd.f32 %v2839_v27, %v8715_v13  ;;  %v2648_v0 = vpop.f32.mrb[158].mxu1  ;;  %v2841_v1 = vpop.f32.mrb[210].mxu0 }
 0x500   :  { %v3078_v42 = vmax.f32 %v2645_v15, 0.0  ;;  %v3080_v17 = vmax.f32 %v2838_v33, 0.0  ;;  %v2649_v45 = vadd.f32 %v2648_v0, %v8707_v2  ;;  %v2842_v55 = vadd.f32 %v2841_v1, %v8713_v63  ;;  %v2650_v58 = vpop.f32.mrb[159].mxu1  ;;  %v2843_v59 = vpop.f32.mrb[211].mxu0 }
 0x501   :  { %v3079_v61 = vmax.f32 %v2647_v40, 0.0  ;;  %v3081_v9 = vmax.f32 %v2840_v30, 0.0  ;;  %v2651_v7 = vadd.f32 %v2650_v58, %v8709_v52  ;;  %v2844_v16 = vadd.f32 %v2843_v59, %v8715_v13 }
 0x502   :  { %v3442_v47 = vmax.f32 %v3441_v49, %v3078_v42  ;;  %v3484_v8 = vmax.f32 %v3483_v28, %v3080_v17  ;;  %v3086_v19 = vmax.f32 %v2649_v45, 0.0  ;;  %v3088_v10 = vmax.f32 %v2842_v55, 0.0 }
 0x503   :  { %v3463_v4 = vmax.f32 %v3462_v32, %v3079_v61  ;;  %v3505_v6 = vmax.f32 %v3504_v21, %v3081_v9  ;;  %v3087_v48 = vmax.f32 %v2651_v7, 0.0  ;;  %v3089_v51 = vmax.f32 %v2844_v16, 0.0 }
 0x504   :  { %v3443_v3 = vmax.f32 %v3442_v47, %v3086_v19  ;;  %v3485_v25 = vmax.f32 %v3484_v8, %v3088_v10 }
 0x505   :  { %v3464_v34 = vmax.f32 %v3463_v4, %v3087_v48  ;;  %v3506_v39 = vmax.f32 %v3505_v6, %v3089_v51  ;;  %v2654_v18 = vpop.f32.mrb[160].mxu1  ;;  %v2847_v5 = vpop.f32.mrb[212].mxu0 }
 0x506   :  { %v2655_v20 = vadd.f32 %v2654_v18, %v8707_v2  ;;  %v2848_v29 = vadd.f32 %v2847_v5, %v8713_v63  ;;  %v2656_v22 = vpop.f32.mrb[161].mxu1  ;;  %v2849_v23 = vpop.f32.mrb[213].mxu0 }
 0x507   :  { %v2657_v56 = vadd.f32 %v2656_v22, %v8709_v52  ;;  %v2850_v24 = vadd.f32 %v2849_v23, %v8715_v13  ;;  %v2658_v37 = vpop.f32.mrb[162].mxu1  ;;  %v2851_v26 = vpop.f32.mrb[214].mxu0 }
 0x508   :  { %v3094_v35 = vmax.f32 %v2655_v20, 0.0  ;;  %v3096_v43 = vmax.f32 %v2848_v29, 0.0  ;;  %v2659_v38 = vadd.f32 %v2658_v37, %v8707_v2  ;;  %v2852_v11 = vadd.f32 %v2851_v26, %v8713_v63  ;;  %v2660_v44 = vpop.f32.mrb[163].mxu1  ;;  %v2853_v49 = vpop.f32.mrb[215].mxu0 }
 0x509   :  { %v3095_v28 = vmax.f32 %v2657_v56, 0.0  ;;  %v3097_v32 = vmax.f32 %v2850_v24, 0.0  ;;  %v2661_v21 = vadd.f32 %v2660_v44, %v8709_v52  ;;  %v2854_v50 = vadd.f32 %v2853_v49, %v8715_v13 }
 0x50a   :  { %v3444_v57 = vmax.f32 %v3443_v3, %v3094_v35  ;;  %v3486_v15 = vmax.f32 %v3485_v25, %v3096_v43  ;;  %v3102_v33 = vmax.f32 %v2659_v38, 0.0  ;;  %v3104_v62 = vmax.f32 %v2852_v11, 0.0 }
 0x50b   :  { %v3465_v27 = vmax.f32 %v3464_v34, %v3095_v28  ;;  %v3507_v40 = vmax.f32 %v3506_v39, %v3097_v32  ;;  %v3103_v30 = vmax.f32 %v2661_v21, 0.0  ;;  %v3105_v0 = vmax.f32 %v2854_v50, 0.0 }
 0x50c   :  { %v3445_v1 = vmax.f32 %v3444_v57, %v3102_v33  ;;  %v3487_v42 = vmax.f32 %v3486_v15, %v3104_v62 }
 0x50d   :  { %v3466_v17 = vmax.f32 %v3465_v27, %v3103_v30  ;;  %v3508_v45 = vmax.f32 %v3507_v40, %v3105_v0  ;;  %v2664_v55 = vpop.f32.mrb[164].mxu1  ;;  %v2857_v58 = vpop.f32.mrb[216].mxu0 }
 0x50e   :  { %v2665_v59 = vadd.f32 %v2664_v55, %v8707_v2  ;;  %v2858_v61 = vadd.f32 %v2857_v58, %v8713_v63  ;;  %v2666_v9 = vpop.f32.mrb[165].mxu1  ;;  %v2859_v7 = vpop.f32.mrb[217].mxu0 }
 0x50f   :  { %v2667_v16 = vadd.f32 %v2666_v9, %v8709_v52  ;;  %v2860_v47 = vadd.f32 %v2859_v7, %v8715_v13  ;;  %v2668_v8 = vpop.f32.mrb[166].mxu1  ;;  %v2861_v19 = vpop.f32.mrb[218].mxu0 }
 0x510   :  { %v3110_v10 = vmax.f32 %v2665_v59, 0.0  ;;  %v3112_v4 = vmax.f32 %v2858_v61, 0.0  ;;  %v2669_v6 = vadd.f32 %v2668_v8, %v8707_v2  ;;  %v2862_v48 = vadd.f32 %v2861_v19, %v8713_v63  ;;  %v2670_v51 = vpop.f32.mrb[167].mxu1  ;;  %v2863_v3 = vpop.f32.mrb[219].mxu0 }
 0x511   :  { %v3111_v25 = vmax.f32 %v2667_v16, 0.0  ;;  %v3113_v34 = vmax.f32 %v2860_v47, 0.0  ;;  %v2671_v39 = vadd.f32 %v2670_v51, %v8709_v52  ;;  %v2864_v18 = vadd.f32 %v2863_v3, %v8715_v13 }
 0x512   :  { %v3446_v5 = vmax.f32 %v3445_v1, %v3110_v10  ;;  %v3488_v20 = vmax.f32 %v3487_v42, %v3112_v4  ;;  %v3118_v29 = vmax.f32 %v2669_v6, 0.0  ;;  %v3120_v22 = vmax.f32 %v2862_v48, 0.0 }
 0x513   :  { %v3467_v23 = vmax.f32 %v3466_v17, %v3111_v25  ;;  %v3509_v56 = vmax.f32 %v3508_v45, %v3113_v34  ;;  %v3119_v24 = vmax.f32 %v2671_v39, 0.0  ;;  %v3121_v37 = vmax.f32 %v2864_v18, 0.0 }
 0x514   :  { %v3447_v26 = vmax.f32 %v3446_v5, %v3118_v29  ;;  %v3489_v2 = vmax.f32 %v3488_v20, %v3120_v22  ;;  %v3565_v16 = vrot.slane %v3557_v53, %v8637_v31  ;;  %v7693_v8 = vmov 1983009808   ;;  %v7054_v53 = vld [vmem:[#allocation11 + $0x208] ss:$16 sps:$4 sm:$0xff]   ;;  %v7060_v5 = vld [vmem:[#allocation11 + $0x224] ss:$16 sps:$4 sm:$0xff]  }
 0x515   :  { %v3468_v35 = vmax.f32 %v3467_v23, %v3119_v24  ;;  %v3510_v63 = vmax.f32 %v3509_v56, %v3121_v37  ;;  %v3583_v19 = vunpack.c.l.s4 %v7693_v8  ;;  %v7063_v20 = vld [vmem:[#allocation11 + $0x22c] ss:$16 sps:$4 sm:$0xff]   ;;  %v7058_v29 = vld [vmem:[#allocation11 + $0x220] ss:$16 sps:$4 sm:$0xff]   ;;  %v7061_v22 = vld [vmem:[#allocation11 + $0x228] ss:$16 sps:$4 sm:$0xff]  }
 0x516   :  { %v3448_v43 = vrot.slane %v3447_v26, 4  ;;  %v3490_v38 = vrot.slane %v3489_v2, 4  ;;  %v7066_v23 = vld [vmem:[#allocation11 + $0x244] ss:$16 sps:$4 sm:$0xff]   ;;  %v7069_v56 = vld [vmem:[#allocation11 + $0x24c] ss:$16 sps:$4 sm:$0xff]  }
 0x517   :  { %v3469_v11 = vrot.slane %v3468_v35, 4  ;;  %v3511_v44 = vrot.slane %v3510_v63, 4  ;;  %v3584_v4 = vunpack.c.0.s8 %v3583_v19  ;;  %v7064_v24 = vld [vmem:[#allocation11 + $0x240] ss:$16 sps:$4 sm:$0xff]   ;;  %v7067_v37 = vld [vmem:[#allocation11 + $0x248] ss:$16 sps:$4 sm:$0xff]  }
 0x518   :  { %v3449_v49 = vmax.f32 %v3447_v26, %v3448_v43  ;;  %v3491_v52 = vmax.f32 %v3489_v2, %v3490_v38  ;;  %v7072_v26 = vld [vmem:[#allocation11 + $0x264] ss:$16 sps:$4 sm:$0xff]   ;;  %v7075_v2 = vld [vmem:[#allocation11 + $0x26c] ss:$16 sps:$4 sm:$0xff]   ;;  %v7121_v8 = vld [vmem:[#allocation11 + $0x368] ss:$16 sps:$4 sm:$0xff]  }
 0x519   :  { %v3470_v28 = vmax.f32 %v3468_v35, %v3469_v11  ;;  %v3512_v13 = vmax.f32 %v3510_v63, %v3511_v44  ;;  %v8877_v6 = vsub.s32 %v3584_v4, %v8283_v46  ;;  %v7070_v35 = vld [vmem:[#allocation11 + $0x260] ss:$16 sps:$4 sm:$0xff]   ;;  %v7073_v63 = vld [vmem:[#allocation11 + $0x268] ss:$16 sps:$4 sm:$0xff]   ;;  %v7078_v43 = vld [vmem:[#allocation11 + $0x284] ss:$16 sps:$4 sm:$0xff]  }
 0x51a   :  { %v3450_v32 = vrot.slane %v3449_v49, 2  ;;  %v3492_v21 = vrot.slane %v3491_v52, 2  ;;  %v7081_v38 = vld [vmem:[#allocation11 + $0x28c] ss:$16 sps:$4 sm:$0xff]   ;;  %v7076_v11 = vld [vmem:[#allocation11 + $0x280] ss:$16 sps:$4 sm:$0xff]  }
 0x51b   :  { %v3471_v50 = vrot.slane %v3470_v28, 2  ;;  %v3513_v57 = vrot.slane %v3512_v13, 2  ;;  %v7079_v44 = vld [vmem:[#allocation11 + $0x288] ss:$16 sps:$4 sm:$0xff]   ;;  %v7126_v19 = vld [vmem:[#allocation11 + $0x384] ss:$16 sps:$4 sm:$0xff]  }
 0x51c   :  { %v3451_v15 = vmax.f32 %v3449_v49, %v3450_v32  ;;  %v3493_v33 = vmax.f32 %v3491_v52, %v3492_v21  ;;  %v7084_v49 = vld [vmem:[#allocation11 + $0x2a4] ss:$16 sps:$4 sm:$0xff]   ;;  %v7087_v52 = vld [vmem:[#allocation11 + $0x2ac] ss:$16 sps:$4 sm:$0xff]   ;;  %v7124_v4 = vld [vmem:[#allocation11 + $0x380] ss:$16 sps:$4 sm:$0xff]  }
 0x51d   :  { %v3472_v62 = vmax.f32 %v3470_v28, %v3471_v50  ;;  %v3514_v27 = vmax.f32 %v3512_v13, %v3513_v57  ;;  %v7082_v28 = vld [vmem:[#allocation11 + $0x2a0] ss:$16 sps:$4 sm:$0xff]   ;;  %v7085_v13 = vld [vmem:[#allocation11 + $0x2a8] ss:$16 sps:$4 sm:$0xff]   ;;  %v7090_v32 = vld [vmem:[#allocation11 + $0x2c4] ss:$16 sps:$4 sm:$0xff]  }
 0x51e   :  { %v3452_v40 = vrot.slane %v3451_v15, 1  ;;  %v3494_v30 = vrot.slane %v3493_v33, 1  ;;  %v7093_v21 = vld [vmem:[#allocation11 + $0x2cc] ss:$16 sps:$4 sm:$0xff]   ;;  %v7088_v50 = vld [vmem:[#allocation11 + $0x2c0] ss:$16 sps:$4 sm:$0xff]  }
 0x51f   :  { %v3473_v0 = vrot.slane %v3472_v62, 1  ;;  %v3515_v1 = vrot.slane %v3514_v27, 1  ;;  %v7091_v57 = vld [vmem:[#allocation11 + $0x2c8] ss:$16 sps:$4 sm:$0xff]  }
 0x520   :  { %v3453_v42 = vmax.f32 %v3451_v15, %v3452_v40  ;;  %v3495_v17 = vmax.f32 %v3493_v33, %v3494_v30  ;;  %v7096_v15 = vld [vmem:[#allocation11 + $0x2e4] ss:$16 sps:$4 sm:$0xff]   ;;  %v7099_v33 = vld [vmem:[#allocation11 + $0x2ec] ss:$16 sps:$4 sm:$0xff]  }
 0x521   :  { %v3474_v45 = vmax.f32 %v3472_v62, %v3473_v0  ;;  %v3516_v55 = vmax.f32 %v3514_v27, %v3515_v1  ;;  %v7094_v62 = vld [vmem:[#allocation11 + $0x2e0] ss:$16 sps:$4 sm:$0xff]   ;;  %v7097_v27 = vld [vmem:[#allocation11 + $0x2e8] ss:$16 sps:$4 sm:$0xff]   ;;  %v7102_v40 = vld [vmem:[#allocation11 + $0x304] ss:$16 sps:$4 sm:$0xff]  }
 0x522   :  { %v7105_v30 = vld [vmem:[#allocation11 + $0x30c] ss:$16 sps:$4 sm:$0xff]   ;;  %v7100_v0 = vld [vmem:[#allocation11 + $0x300] ss:$16 sps:$4 sm:$0xff]   ;;  %v7103_v1 = vld [vmem:[#allocation11 + $0x308] ss:$16 sps:$4 sm:$0xff]  }
 0x523   :  { %v3527_v58 = vcombine.low %v3453_v42, %v3474_v45  ;;  %v3528_v59 = vcombine.low %v3495_v17, %v3516_v55  ;;  %v7108_v42 = vld [vmem:[#allocation11 + $0x324] ss:$16 sps:$4 sm:$0xff]   ;;  %v7111_v17 = vld [vmem:[#allocation11 + $0x32c] ss:$16 sps:$4 sm:$0xff]   ;;  %v7106_v45 = vld [vmem:[#allocation11 + $0x320] ss:$16 sps:$4 sm:$0xff]  }
 0x524   :  { %v7109_v55 = vld [vmem:[#allocation11 + $0x328] ss:$16 sps:$4 sm:$0xff]  }
 0x525   :  { %v3549_v61 = vrot.slane %v3527_v58, %v8637_v31  ;;  %v3556_v9 = vrot.slane %v3528_v59, %v8637_v31  ;;  %v7114_v58 = vld [vmem:[#allocation11 + $0x344] ss:$16 sps:$4 sm:$0xff]   ;;  %v7117_v59 = vld [vmem:[#allocation11 + $0x34c] ss:$16 sps:$4 sm:$0xff]  }
 0x527   :  { %v3558_v7 = vcombine.low %v3549_v61, %v3556_v9  ;;  %v7112_v61 = vld [vmem:[#allocation11 + $0x340] ss:$16 sps:$4 sm:$0xff]   ;;  %v7115_v9 = vld [vmem:[#allocation11 + $0x348] ss:$16 sps:$4 sm:$0xff]  }
 0x529   :  { %v3572_v47 = vrot.slane %v3558_v7, %v8637_v31  ;;  %v7120_v7 = vld [vmem:[#allocation11 + $0x364] ss:$16 sps:$4 sm:$0xff]  }
 0x52b   :  { %v3573_v10 = vcombine.low %v3565_v16, %v3572_v47  ;;  %v7123_v16 = vld [vmem:[#allocation11 + $0x36c] ss:$16 sps:$4 sm:$0xff]   ;;  %v7118_v47 = vld [vmem:[#allocation11 + $0x360] ss:$16 sps:$4 sm:$0xff]  }
 0x52d   :  { %3576 = vst [vmem:[#allocation2 + $0x1] ss:$2 sm:$0xff] %v3573_v10  ;;  %v7129_v10 = vld [vmem:[#allocation11 + $0x38c] ss:$16 sps:$4 sm:$0xff]  }
 0x534   :  { %v3577_v48 = vld [vmem:[#allocation2] sm:$0xff] }
 0x535   :  { %v3588_v51 = vrot.slane %v3577_v48, %v8877_v6  ;;  %v3581_v3 = vcombine.high %v3577_v48, %v3577_v48  ;;  %v7127_v48 = vld [vmem:[#allocation11 + $0x388] ss:$16 sps:$4 sm:$0xff]  }
 0x537   :  { %v3596_v25 = vcombine.high %v3588_v51, %v3588_v51  ;;  %v8881_v34 = vrot.slane %v3581_v3, %v8877_v6  ;;  %v3623_v39 = vpack.c.bf16 %v3588_v51, %v3588_v51  ;;  %v7132_v51 = vld [vmem:[#allocation11 + $0x3a4] ss:$16 sps:$4 sm:$0xff]   ;;  %v7135_v3 = vld [vmem:[#allocation11 + $0x3ac] ss:$16 sps:$4 sm:$0xff]  }
 0x539   :  { %v3624_v41 = vpack.c.bf16 %v3596_v25, %v3596_v25  ;;  %v3597_v31 = vcombine.high %v8881_v34, %v8881_v34  ;;  %v7130_v25 = vld [vmem:[#allocation11 + $0x3a0] ss:$16 sps:$4 sm:$0xff]  }
 0x53b   :  { %5221 = vmatprep.mubr.bf16.mxu1 %v3624_v41  ;;  %5385 = vmatprep.mubr.bf16.mxu0 %v3624_v41  ;;  %v3626_v18 = vpack.c.bf16 %v3597_v31, %v3597_v31  ;;  %v7133_v41 = vld [vmem:[#allocation11 + $0x3a8] ss:$16 sps:$4 sm:$0xff]  }
 0x53c   :  { %5222 = vmatmul.mubr.bf16.vlgmr.msra.gmra.mrb[168].mxu1 %v3623_v39  ;;  %5386 = vmatmul.mubr.bf16.vlgmr.msra.gmra.mrb[220].mxu0 %v3623_v39  ;;  %v8885_v31 = vld [vmem:[#allocation2 + $0x8] sm:$0xff]  ;;  %v7136_v39 = vld [vmem:[#allocation11 + $0x3c0] ss:$16 sps:$4 sm:$0xff]  }
 0x53d   :  { %5231 = vmatpush1.bf16.msra.mxu1 %v7051_v12  ;;  %5395 = vmatpush1.bf16.msra.mxu0 %v7054_v53  ;;  %v7138_v12 = vld [vmem:[#allocation11 + $0x3c4] ss:$16 sps:$4 sm:$0xff]   ;;  %v7141_v53 = vld [vmem:[#allocation11 + $0x3cc] ss:$16 sps:$4 sm:$0xff]  }
 0x53e   :  { %5262 = vmatprep.mubr.bf16.mxu1 %v3626_v18  ;;  %5426 = vmatprep.mubr.bf16.mxu0 %v3626_v18  ;;  %v7139_v18 = vld [vmem:[#allocation11 + $0x3c8] ss:$16 sps:$4 sm:$0xff]  }
 0x53f   :  { %5232 = vmatprep.subr.bf16.mxu1 %v7060_v5  ;;  %5396 = vmatprep.subr.bf16.mxu0 %v7063_v20  ;;  %v7144_v5 = vld [vmem:[#allocation11 + $0x3e4] ss:$16 sps:$4 sm:$0xff]   ;;  %v7147_v20 = vld [vmem:[#allocation11 + $0x3ec] ss:$16 sps:$4 sm:$0xff]  }
 0x541   :  { %5233 = vmatpush1.bf16.msra.mxu1 %v7058_v29  ;;  %5397 = vmatpush1.bf16.msra.mxu0 %v7061_v22  ;;  %v8889_v29 = vrot.slane %v8885_v31, %v8877_v6  ;;  %v7142_v22 = vld [vmem:[#allocation11 + $0x3e0] ss:$16 sps:$4 sm:$0xff]  }
 0x542   :  { %5234 = vmatprep.subr.bf16.mxu1 %v7066_v23  ;;  %5398 = vmatprep.subr.bf16.mxu0 %v7069_v56  ;;  %v7145_v23 = vld [vmem:[#allocation11 + $0x3e8] ss:$16 sps:$4 sm:$0xff]   ;;  %v7150_v56 = vld [vmem:[#allocation11 + $0x404] ss:$16 sps:$4 sm:$0xff]  }
 0x545   :  { %5235 = vmatpush1.bf16.msra.mxu1 %v7064_v24  ;;  %5399 = vmatpush1.bf16.msra.mxu0 %v7067_v37  ;;  %v7153_v24 = vld [vmem:[#allocation11 + $0x40c] ss:$16 sps:$4 sm:$0xff]   ;;  %v3613_v37 = vcombine.high %v8889_v29, %v8889_v29 }
 0x546   :  { %5236 = vmatprep.subr.bf16.mxu1 %v7072_v26  ;;  %5400 = vmatprep.subr.bf16.mxu0 %v7075_v2  ;;  %v7148_v26 = vld [vmem:[#allocation11 + $0x400] ss:$16 sps:$4 sm:$0xff]   ;;  %v3625_v2 = vpack.c.bf16 %v8881_v34, %v8881_v34 }
 0x547   :  { %v7160_v34 = vld [vmem:[#allocation11 + $0x440] ss:$16 sps:$4 sm:$0xff]  }
 0x549   :  { %5237 = vmatpush1.bf16.msra.mxu1 %v7070_v35  ;;  %5401 = vmatpush1.bf16.msra.mxu0 %v7073_v63  ;;  %v7151_v35 = vld [vmem:[#allocation11 + $0x408] ss:$16 sps:$4 sm:$0xff]   ;;  %v3628_v63 = vpack.c.bf16 %v3613_v37, %v3613_v37 }
 0x54a   :  { %5238 = vmatprep.subr.bf16.mxu1 %v7078_v43  ;;  %5402 = vmatprep.subr.bf16.mxu0 %v7081_v38  ;;  %v7156_v43 = vld [vmem:[#allocation11 + $0x424] ss:$16 sps:$4 sm:$0xff]   ;;  %v7159_v38 = vld [vmem:[#allocation11 + $0x42c] ss:$16 sps:$4 sm:$0xff]   ;;  %v7229_v37 = vld [vmem:[#allocation11 + $0x5a8] ss:$16 sps:$4 sm:$0xff]  }
 0x54d   :  { %5239 = vmatpush1.bf16.msra.mxu1 %v7076_v11  ;;  %5403 = vmatpush1.bf16.msra.mxu0 %v7079_v44  ;;  %v7154_v11 = vld [vmem:[#allocation11 + $0x420] ss:$16 sps:$4 sm:$0xff]   ;;  %v7157_v44 = vld [vmem:[#allocation11 + $0x428] ss:$16 sps:$4 sm:$0xff]  }
 0x54e   :  { %5240 = vmatprep.subr.bf16.mxu1 %v7084_v49  ;;  %5404 = vmatprep.subr.bf16.mxu0 %v7087_v52  ;;  %v7162_v49 = vld [vmem:[#allocation11 + $0x444] ss:$16 sps:$4 sm:$0xff]   ;;  %v7165_v52 = vld [vmem:[#allocation11 + $0x44c] ss:$16 sps:$4 sm:$0xff]  }
 0x551   :  { %5241 = vmatpush1.bf16.msra.mxu1 %v7082_v28  ;;  %5405 = vmatpush1.bf16.msra.mxu0 %v7085_v13  ;;  %v7163_v28 = vld [vmem:[#allocation11 + $0x448] ss:$16 sps:$4 sm:$0xff]   ;;  %v7168_v13 = vld [vmem:[#allocation11 + $0x464] ss:$16 sps:$4 sm:$0xff]  }
 0x552   :  { %5242 = vmatprep.subr.bf16.mxu1 %v7090_v32  ;;  %5406 = vmatprep.subr.bf16.mxu0 %v7093_v21  ;;  %v7171_v32 = vld [vmem:[#allocation11 + $0x46c] ss:$16 sps:$4 sm:$0xff]   ;;  %v7166_v21 = vld [vmem:[#allocation11 + $0x460] ss:$16 sps:$4 sm:$0xff]  }
 0x555   :  { %5243 = vmatpush1.bf16.msra.mxu1 %v7088_v50  ;;  %5407 = vmatpush1.bf16.msra.mxu0 %v7091_v57  ;;  %v7169_v50 = vld [vmem:[#allocation11 + $0x468] ss:$16 sps:$4 sm:$0xff]   ;;  %v7174_v57 = vld [vmem:[#allocation11 + $0x484] ss:$16 sps:$4 sm:$0xff]  }
 0x556   :  { %5244 = vmatprep.subr.bf16.mxu1 %v7096_v15  ;;  %5408 = vmatprep.subr.bf16.mxu0 %v7099_v33  ;;  %v7177_v15 = vld [vmem:[#allocation11 + $0x48c] ss:$16 sps:$4 sm:$0xff]   ;;  %v7172_v33 = vld [vmem:[#allocation11 + $0x480] ss:$16 sps:$4 sm:$0xff]  }
 0x559   :  { %5245 = vmatpush1.bf16.msra.mxu1 %v7094_v62  ;;  %5409 = vmatpush1.bf16.msra.mxu0 %v7097_v27  ;;  %v7175_v62 = vld [vmem:[#allocation11 + $0x488] ss:$16 sps:$4 sm:$0xff]   ;;  %v7180_v27 = vld [vmem:[#allocation11 + $0x4a4] ss:$16 sps:$4 sm:$0xff]  }
 0x55a   :  { %5246 = vmatprep.subr.bf16.mxu1 %v7102_v40  ;;  %5410 = vmatprep.subr.bf16.mxu0 %v7105_v30  ;;  %v7183_v40 = vld [vmem:[#allocation11 + $0x4ac] ss:$16 sps:$4 sm:$0xff]   ;;  %v7178_v30 = vld [vmem:[#allocation11 + $0x4a0] ss:$16 sps:$4 sm:$0xff]  }
 0x55d   :  { %5247 = vmatpush1.bf16.msra.mxu1 %v7100_v0  ;;  %5411 = vmatpush1.bf16.msra.mxu0 %v7103_v1  ;;  %v7181_v0 = vld [vmem:[#allocation11 + $0x4a8] ss:$16 sps:$4 sm:$0xff]   ;;  %v7186_v1 = vld [vmem:[#allocation11 + $0x4c4] ss:$16 sps:$4 sm:$0xff]  }
 0x55e   :  { %5248 = vmatprep.subr.bf16.mxu1 %v7108_v42  ;;  %5412 = vmatprep.subr.bf16.mxu0 %v7111_v17  ;;  %v7189_v42 = vld [vmem:[#allocation11 + $0x4cc] ss:$16 sps:$4 sm:$0xff]   ;;  %v7184_v17 = vld [vmem:[#allocation11 + $0x4c0] ss:$16 sps:$4 sm:$0xff]  }
 0x561   :  { %5249 = vmatpush1.bf16.msra.mxu1 %v7106_v45  ;;  %5413 = vmatpush1.bf16.msra.mxu0 %v7109_v55  ;;  %v7187_v45 = vld [vmem:[#allocation11 + $0x4c8] ss:$16 sps:$4 sm:$0xff]   ;;  %v7192_v55 = vld [vmem:[#allocation11 + $0x4e4] ss:$16 sps:$4 sm:$0xff]  }
 0x562   :  { %5250 = vmatprep.subr.bf16.mxu1 %v7114_v58  ;;  %5414 = vmatprep.subr.bf16.mxu0 %v7117_v59  ;;  %v7195_v58 = vld [vmem:[#allocation11 + $0x4ec] ss:$16 sps:$4 sm:$0xff]   ;;  %v7190_v59 = vld [vmem:[#allocation11 + $0x4e0] ss:$16 sps:$4 sm:$0xff]  }
 0x565   :  { %5251 = vmatpush1.bf16.msra.mxu1 %v7112_v61  ;;  %5415 = vmatpush1.bf16.msra.mxu0 %v7115_v9  ;;  %v7193_v61 = vld [vmem:[#allocation11 + $0x4e8] ss:$16 sps:$4 sm:$0xff]   ;;  %v7198_v9 = vld [vmem:[#allocation11 + $0x504] ss:$16 sps:$4 sm:$0xff]  }
 0x566   :  { %5252 = vmatprep.subr.bf16.mxu1 %v7120_v7  ;;  %5416 = vmatprep.subr.bf16.mxu0 %v7123_v16  ;;  %v7201_v7 = vld [vmem:[#allocation11 + $0x50c] ss:$16 sps:$4 sm:$0xff]   ;;  %v7196_v16 = vld [vmem:[#allocation11 + $0x500] ss:$16 sps:$4 sm:$0xff]  }
 0x569   :  { %5253 = vmatpush1.bf16.msra.mxu1 %v7118_v47  ;;  %5417 = vmatpush1.bf16.msra.mxu0 %v7121_v8  ;;  %v7199_v47 = vld [vmem:[#allocation11 + $0x508] ss:$16 sps:$4 sm:$0xff]   ;;  %v7204_v8 = vld [vmem:[#allocation11 + $0x524] ss:$16 sps:$4 sm:$0xff]  }
 0x56a   :  { %5254 = vmatprep.subr.bf16.mxu1 %v7126_v19  ;;  %5418 = vmatprep.subr.bf16.mxu0 %v7129_v10  ;;  %v7207_v19 = vld [vmem:[#allocation11 + $0x52c] ss:$16 sps:$4 sm:$0xff]   ;;  %v7202_v10 = vld [vmem:[#allocation11 + $0x520] ss:$16 sps:$4 sm:$0xff]  }
 0x56d   :  { %5255 = vmatpush1.bf16.msra.mxu1 %v7124_v4  ;;  %5419 = vmatpush1.bf16.msra.mxu0 %v7127_v48  ;;  %v7205_v4 = vld [vmem:[#allocation11 + $0x528] ss:$16 sps:$4 sm:$0xff]   ;;  %v7210_v48 = vld [vmem:[#allocation11 + $0x544] ss:$16 sps:$4 sm:$0xff]  }
 0x56e   :  { %5256 = vmatprep.subr.bf16.mxu1 %v7132_v51  ;;  %5420 = vmatprep.subr.bf16.mxu0 %v7135_v3  ;;  %v7213_v51 = vld [vmem:[#allocation11 + $0x54c] ss:$16 sps:$4 sm:$0xff]   ;;  %v7208_v3 = vld [vmem:[#allocation11 + $0x540] ss:$16 sps:$4 sm:$0xff]  }
 0x571   :  { %5257 = vmatpush1.bf16.msra.mxu1 %v7130_v25  ;;  %5421 = vmatpush1.bf16.msra.mxu0 %v7133_v41  ;;  %v7211_v25 = vld [vmem:[#allocation11 + $0x548] ss:$16 sps:$4 sm:$0xff]   ;;  %v7216_v41 = vld [vmem:[#allocation11 + $0x564] ss:$16 sps:$4 sm:$0xff]  }
 0x572   :  { %5258 = vmatprep.subr.bf16.mxu1 %v7138_v12  ;;  %5422 = vmatprep.subr.bf16.mxu0 %v7141_v53  ;;  %v7219_v12 = vld [vmem:[#allocation11 + $0x56c] ss:$16 sps:$4 sm:$0xff]   ;;  %v7214_v53 = vld [vmem:[#allocation11 + $0x560] ss:$16 sps:$4 sm:$0xff]  }
 0x575   :  { %5259 = vmatpush1.bf16.msra.mxu1 %v7136_v39  ;;  %5423 = vmatpush1.bf16.msra.mxu0 %v7139_v18  ;;  %v7217_v39 = vld [vmem:[#allocation11 + $0x568] ss:$16 sps:$4 sm:$0xff]   ;;  %v7222_v18 = vld [vmem:[#allocation11 + $0x584] ss:$16 sps:$4 sm:$0xff]  }
 0x576   :  { %5260 = vmatprep.subr.bf16.mxu1 %v7144_v5  ;;  %5424 = vmatprep.subr.bf16.mxu0 %v7147_v20  ;;  %v7225_v5 = vld [vmem:[#allocation11 + $0x58c] ss:$16 sps:$4 sm:$0xff]   ;;  %v7220_v20 = vld [vmem:[#allocation11 + $0x580] ss:$16 sps:$4 sm:$0xff]  }
 0x579   :  { %5261 = vmatpush1.bf16.msra.mxu1 %v7142_v22  ;;  %5425 = vmatpush1.bf16.msra.mxu0 %v7145_v23  ;;  %v7223_v22 = vld [vmem:[#allocation11 + $0x588] ss:$16 sps:$4 sm:$0xff]   ;;  %v7228_v23 = vld [vmem:[#allocation11 + $0x5a4] ss:$16 sps:$4 sm:$0xff]  }
 0x57a   :  { %5271 = vmatprep.subr.bf16.mxu1 %v7150_v56  ;;  %5435 = vmatprep.subr.bf16.mxu0 %v7153_v24  ;;  %v7231_v56 = vld [vmem:[#allocation11 + $0x5ac] ss:$16 sps:$4 sm:$0xff]   ;;  %v7226_v24 = vld [vmem:[#allocation11 + $0x5a0] ss:$16 sps:$4 sm:$0xff]  }
 0x57c   :  { %5263 = vmatmul.mubr.bf16.vlgmr.msra.gmra.mrb[168].mxu1 %v3625_v2  ;;  %5427 = vmatmul.mubr.bf16.vlgmr.msra.gmra.mrb[220].mxu0 %v3625_v2  ;;  %v7237_v2 = vld [vmem:[#allocation11 + $0x5cc] ss:$16 sps:$4 sm:$0xff]  }
 0x57d   :  { %5272 = vmatpush1.bf16.msra.mxu1 %v7148_v26  ;;  %5303 = vmatprep.mubr.bf16.mxu1 %v3628_v63  ;;  %v7234_v26 = vld [vmem:[#allocation11 + $0x5c4] ss:$16 sps:$4 sm:$0xff]  }
 0x57e   :  { %5436 = vmatpush1.bf16.msra.mxu0 %v7151_v35  ;;  %5467 = vmatprep.mubr.bf16.mxu0 %v3628_v63  ;;  %v3598_v35 = vcombine.high %v8885_v31, %v8885_v31  ;;  %v7232_v63 = vld [vmem:[#allocation11 + $0x5c0] ss:$16 sps:$4 sm:$0xff]  }
 0x57f   :  { %5273 = vmatprep.subr.bf16.mxu1 %v7156_v43  ;;  %5437 = vmatprep.subr.bf16.mxu0 %v7159_v38  ;;  %v7235_v43 = vld [vmem:[#allocation11 + $0x5c8] ss:$16 sps:$4 sm:$0xff]   ;;  %v7240_v38 = vld [vmem:[#allocation11 + $0x5e4] ss:$16 sps:$4 sm:$0xff]  }
 0x581   :  { %5274 = vmatpush1.bf16.msra.mxu1 %v7154_v11  ;;  %v7243_v11 = vld [vmem:[#allocation11 + $0x5ec] ss:$16 sps:$4 sm:$0xff]  }
 0x582   :  { %5438 = vmatpush1.bf16.msra.mxu0 %v7157_v44  ;;  %5275 = vmatprep.subr.bf16.mxu1 %v7162_v49  ;;  %v8898_v44 = vrot.slane %v3598_v35, %v8877_v6  ;;  %v7238_v49 = vld [vmem:[#allocation11 + $0x5e0] ss:$16 sps:$4 sm:$0xff]   ;;  %v7247_v6 = vld [vmem:[#allocation11 + $0x608] ss:$16 sps:$4 sm:$0xff]   ;;  %v7319_v35 = vld [vmem:[#allocation11 + $0x784] ss:$16 sps:$4 sm:$0xff]  }
 0x583   :  { %5439 = vmatprep.subr.bf16.mxu0 %v7165_v52  ;;  %v7241_v52 = vld [vmem:[#allocation11 + $0x5e8] ss:$16 sps:$4 sm:$0xff]  }
 0x584   :  { %v3614_v31 = vcombine.high %v8898_v44, %v8898_v44 }
 0x585   :  { %5276 = vmatpush1.bf16.msra.mxu1 %v7160_v34  ;;  %v7246_v34 = vld [vmem:[#allocation11 + $0x604] ss:$16 sps:$4 sm:$0xff]  }
 0x586   :  { %5440 = vmatpush1.bf16.msra.mxu0 %v7163_v28  ;;  %5277 = vmatprep.subr.bf16.mxu1 %v7168_v13  ;;  %v7249_v28 = vld [vmem:[#allocation11 + $0x60c] ss:$16 sps:$4 sm:$0xff]   ;;  %v7244_v13 = vld [vmem:[#allocation11 + $0x600] ss:$16 sps:$4 sm:$0xff]  }
 0x587   :  { %5441 = vmatprep.subr.bf16.mxu0 %v7171_v32  ;;  %v3627_v32 = vpack.c.bf16 %v8889_v29, %v8889_v29  ;;  %v7257_v29 = vld [vmem:[#allocation11 + $0x640] ss:$16 sps:$4 sm:$0xff]  }
 0x589   :  { %5278 = vmatpush1.bf16.msra.mxu1 %v7166_v21  ;;  %v7253_v21 = vld [vmem:[#allocation11 + $0x624] ss:$16 sps:$4 sm:$0xff]  }
 0x58a   :  { %5442 = vmatpush1.bf16.msra.mxu0 %v7169_v50  ;;  %5279 = vmatprep.subr.bf16.mxu1 %v7174_v57  ;;  %v3630_v50 = vpack.c.bf16 %v3614_v31, %v3614_v31  ;;  %v7256_v57 = vld [vmem:[#allocation11 + $0x62c] ss:$16 sps:$4 sm:$0xff]  }
 0x58b   :  { %5443 = vmatprep.subr.bf16.mxu0 %v7177_v15  ;;  %v7251_v15 = vld [vmem:[#allocation11 + $0x620] ss:$16 sps:$4 sm:$0xff]   ;;  %v7334_v31 = vld [vmem:[#allocation11 + $0x7cc] ss:$16 sps:$4 sm:$0xff]  }
 0x58d   :  { %5280 = vmatpush1.bf16.msra.mxu1 %v7172_v33  ;;  %v7254_v33 = vld [vmem:[#allocation11 + $0x628] ss:$16 sps:$4 sm:$0xff]  }
 0x58e   :  { %5444 = vmatpush1.bf16.msra.mxu0 %v7175_v62  ;;  %5281 = vmatprep.subr.bf16.mxu1 %v7180_v27  ;;  %v7259_v62 = vld [vmem:[#allocation11 + $0x644] ss:$16 sps:$4 sm:$0xff]   ;;  %v7262_v27 = vld [vmem:[#allocation11 + $0x64c] ss:$16 sps:$4 sm:$0xff]  }
 0x58f   :  { %5445 = vmatprep.subr.bf16.mxu0 %v7183_v40  ;;  %v7260_v40 = vld [vmem:[#allocation11 + $0x648] ss:$16 sps:$4 sm:$0xff]  }
 0x591   :  { %5282 = vmatpush1.bf16.msra.mxu1 %v7178_v30  ;;  %v7265_v30 = vld [vmem:[#allocation11 + $0x664] ss:$16 sps:$4 sm:$0xff]  }
 0x592   :  { %5446 = vmatpush1.bf16.msra.mxu0 %v7181_v0  ;;  %5283 = vmatprep.subr.bf16.mxu1 %v7186_v1  ;;  %v7268_v0 = vld [vmem:[#allocation11 + $0x66c] ss:$16 sps:$4 sm:$0xff]   ;;  %v7263_v1 = vld [vmem:[#allocation11 + $0x660] ss:$16 sps:$4 sm:$0xff]  }
 0x593   :  { %5447 = vmatprep.subr.bf16.mxu0 %v7189_v42  ;;  %v7266_v42 = vld [vmem:[#allocation11 + $0x668] ss:$16 sps:$4 sm:$0xff]  }
 0x595   :  { %5284 = vmatpush1.bf16.msra.mxu1 %v7184_v17  ;;  %v7271_v17 = vld [vmem:[#allocation11 + $0x684] ss:$16 sps:$4 sm:$0xff]  }
 0x596   :  { %5448 = vmatpush1.bf16.msra.mxu0 %v7187_v45  ;;  %5285 = vmatprep.subr.bf16.mxu1 %v7192_v55  ;;  %v7274_v45 = vld [vmem:[#allocation11 + $0x68c] ss:$16 sps:$4 sm:$0xff]   ;;  %v7269_v55 = vld [vmem:[#allocation11 + $0x680] ss:$16 sps:$4 sm:$0xff]  }
 0x597   :  { %5449 = vmatprep.subr.bf16.mxu0 %v7195_v58  ;;  %v7272_v58 = vld [vmem:[#allocation11 + $0x688] ss:$16 sps:$4 sm:$0xff]  }
 0x599   :  { %5286 = vmatpush1.bf16.msra.mxu1 %v7190_v59  ;;  %v7277_v59 = vld [vmem:[#allocation11 + $0x6a4] ss:$16 sps:$4 sm:$0xff]  }
 0x59a   :  { %5450 = vmatpush1.bf16.msra.mxu0 %v7193_v61  ;;  %5287 = vmatprep.subr.bf16.mxu1 %v7198_v9  ;;  %v7280_v61 = vld [vmem:[#allocation11 + $0x6ac] ss:$16 sps:$4 sm:$0xff]   ;;  %v7275_v9 = vld [vmem:[#allocation11 + $0x6a0] ss:$16 sps:$4 sm:$0xff]  }
 0x59b   :  { %5451 = vmatprep.subr.bf16.mxu0 %v7201_v7  ;;  %v7278_v7 = vld [vmem:[#allocation11 + $0x6a8] ss:$16 sps:$4 sm:$0xff]  }
 0x59d   :  { %5288 = vmatpush1.bf16.msra.mxu1 %v7196_v16  ;;  %v7283_v16 = vld [vmem:[#allocation11 + $0x6c4] ss:$16 sps:$4 sm:$0xff]  }
 0x59e   :  { %5452 = vmatpush1.bf16.msra.mxu0 %v7199_v47  ;;  %5289 = vmatprep.subr.bf16.mxu1 %v7204_v8  ;;  %v7286_v47 = vld [vmem:[#allocation11 + $0x6cc] ss:$16 sps:$4 sm:$0xff]   ;;  %v7281_v8 = vld [vmem:[#allocation11 + $0x6c0] ss:$16 sps:$4 sm:$0xff]  }
 0x59f   :  { %5453 = vmatprep.subr.bf16.mxu0 %v7207_v19  ;;  %v7284_v19 = vld [vmem:[#allocation11 + $0x6c8] ss:$16 sps:$4 sm:$0xff]  }
 0x5a1   :  { %5290 = vmatpush1.bf16.msra.mxu1 %v7202_v10  ;;  %v7289_v10 = vld [vmem:[#allocation11 + $0x6e4] ss:$16 sps:$4 sm:$0xff]  }
 0x5a2   :  { %5454 = vmatpush1.bf16.msra.mxu0 %v7205_v4  ;;  %5291 = vmatprep.subr.bf16.mxu1 %v7210_v48  ;;  %v7292_v4 = vld [vmem:[#allocation11 + $0x6ec] ss:$16 sps:$4 sm:$0xff]   ;;  %v7287_v48 = vld [vmem:[#allocation11 + $0x6e0] ss:$16 sps:$4 sm:$0xff]  }
 0x5a3   :  { %5455 = vmatprep.subr.bf16.mxu0 %v7213_v51  ;;  %v7290_v51 = vld [vmem:[#allocation11 + $0x6e8] ss:$16 sps:$4 sm:$0xff]  }
 0x5a5   :  { %5292 = vmatpush1.bf16.msra.mxu1 %v7208_v3  ;;  %v7295_v3 = vld [vmem:[#allocation11 + $0x704] ss:$16 sps:$4 sm:$0xff]  }
 0x5a6   :  { %5456 = vmatpush1.bf16.msra.mxu0 %v7211_v25  ;;  %5293 = vmatprep.subr.bf16.mxu1 %v7216_v41  ;;  %v7298_v25 = vld [vmem:[#allocation11 + $0x70c] ss:$16 sps:$4 sm:$0xff]   ;;  %v7293_v41 = vld [vmem:[#allocation11 + $0x700] ss:$16 sps:$4 sm:$0xff]  }
 0x5a7   :  { %5457 = vmatprep.subr.bf16.mxu0 %v7219_v12  ;;  %v7296_v12 = vld [vmem:[#allocation11 + $0x708] ss:$16 sps:$4 sm:$0xff]  }
 0x5a9   :  { %5294 = vmatpush1.bf16.msra.mxu1 %v7214_v53  ;;  %v7301_v53 = vld [vmem:[#allocation11 + $0x724] ss:$16 sps:$4 sm:$0xff]  }
 0x5aa   :  { %5458 = vmatpush1.bf16.msra.mxu0 %v7217_v39  ;;  %5295 = vmatprep.subr.bf16.mxu1 %v7222_v18  ;;  %v7304_v39 = vld [vmem:[#allocation11 + $0x72c] ss:$16 sps:$4 sm:$0xff]   ;;  %v7299_v18 = vld [vmem:[#allocation11 + $0x720] ss:$16 sps:$4 sm:$0xff]  }
 0x5ab   :  { %5459 = vmatprep.subr.bf16.mxu0 %v7225_v5  ;;  %v7302_v5 = vld [vmem:[#allocation11 + $0x728] ss:$16 sps:$4 sm:$0xff]  }
 0x5ad   :  { %5296 = vmatpush1.bf16.msra.mxu1 %v7220_v20  ;;  %v7307_v20 = vld [vmem:[#allocation11 + $0x744] ss:$16 sps:$4 sm:$0xff]  }
 0x5ae   :  { %5460 = vmatpush1.bf16.msra.mxu0 %v7223_v22  ;;  %5297 = vmatprep.subr.bf16.mxu1 %v7228_v23  ;;  %v7310_v22 = vld [vmem:[#allocation11 + $0x74c] ss:$16 sps:$4 sm:$0xff]   ;;  %v7305_v23 = vld [vmem:[#allocation11 + $0x740] ss:$16 sps:$4 sm:$0xff]  }
 0x5af   :  { %5461 = vmatprep.subr.bf16.mxu0 %v7231_v56  ;;  %v7308_v56 = vld [vmem:[#allocation11 + $0x748] ss:$16 sps:$4 sm:$0xff]  }
 0x5b1   :  { %5298 = vmatpush1.bf16.msra.mxu1 %v7226_v24  ;;  %v7313_v24 = vld [vmem:[#allocation11 + $0x764] ss:$16 sps:$4 sm:$0xff]  }
 0x5b2   :  { %5462 = vmatpush1.bf16.msra.mxu0 %v7229_v37  ;;  %5299 = vmatprep.subr.bf16.mxu1 %v7234_v26  ;;  %v7316_v37 = vld [vmem:[#allocation11 + $0x76c] ss:$16 sps:$4 sm:$0xff]   ;;  %v7311_v26 = vld [vmem:[#allocation11 + $0x760] ss:$16 sps:$4 sm:$0xff]  }
 0x5b3   :  { %5463 = vmatprep.subr.bf16.mxu0 %v7237_v2  ;;  %v7314_v2 = vld [vmem:[#allocation11 + $0x768] ss:$16 sps:$4 sm:$0xff]  }
 0x5b5   :  { %5300 = vmatpush1.bf16.msra.mxu1 %v7232_v63  ;;  %v7322_v63 = vld [vmem:[#allocation11 + $0x78c] ss:$16 sps:$4 sm:$0xff]  }
 0x5b6   :  { %5464 = vmatpush1.bf16.msra.mxu0 %v7235_v43  ;;  %5301 = vmatprep.subr.bf16.mxu1 %v7240_v38  ;;  %v7317_v43 = vld [vmem:[#allocation11 + $0x780] ss:$16 sps:$4 sm:$0xff]   ;;  %v7320_v38 = vld [vmem:[#allocation11 + $0x788] ss:$16 sps:$4 sm:$0xff]  }
 0x5b7   :  { %5465 = vmatprep.subr.bf16.mxu0 %v7243_v11  ;;  %v7325_v11 = vld [vmem:[#allocation11 + $0x7a4] ss:$16 sps:$4 sm:$0xff]  }
 0x5b9   :  { %5302 = vmatpush1.bf16.msra.mxu1 %v7238_v49  ;;  %v7328_v49 = vld [vmem:[#allocation11 + $0x7ac] ss:$16 sps:$4 sm:$0xff]  }
 0x5ba   :  { %5466 = vmatpush1.bf16.msra.mxu0 %v7241_v52  ;;  %5312 = vmatprep.subr.bf16.mxu1 %v7246_v34  ;;  %v7323_v52 = vld [vmem:[#allocation11 + $0x7a0] ss:$16 sps:$4 sm:$0xff]   ;;  %v7326_v34 = vld [vmem:[#allocation11 + $0x7a8] ss:$16 sps:$4 sm:$0xff]  }
 0x5bb   :  { %5476 = vmatprep.subr.bf16.mxu0 %v7249_v28  ;;  %v7331_v28 = vld [vmem:[#allocation11 + $0x7c4] ss:$16 sps:$4 sm:$0xff]  }
 0x5bc   :  { %5304 = vmatmul.mubr.bf16.vlgmr.msra.gmra.mrb[168].mxu1 %v3627_v32 }
 0x5bd   :  { %5468 = vmatmul.mubr.bf16.vlgmr.msra.gmra.mrb[220].mxu0 %v3627_v32  ;;  %5313 = vmatpush1.bf16.msra.mxu1 %v7244_v13  ;;  %v7329_v13 = vld [vmem:[#allocation11 + $0x7c0] ss:$16 sps:$4 sm:$0xff]   ;;  %v7332_v32 = vld [vmem:[#allocation11 + $0x7c8] ss:$16 sps:$4 sm:$0xff]  }
 0x5be   :  { %5344 = vmatprep.mubr.bf16.mxu1 %v3630_v50  ;;  %5477 = vmatpush1.bf16.msra.mxu0 %v7247_v6  ;;  %v7337_v6 = vld [vmem:[#allocation11 + $0x7e4] ss:$16 sps:$4 sm:$0xff]  }
 0x5bf   :  { %5508 = vmatprep.mubr.bf16.mxu0 %v3630_v50  ;;  %5314 = vmatprep.subr.bf16.mxu1 %v7253_v21  ;;  %v7340_v21 = vld [vmem:[#allocation11 + $0x7ec] ss:$16 sps:$4 sm:$0xff]   ;;  %v7335_v50 = vld [vmem:[#allocation11 + $0x7e0] ss:$16 sps:$4 sm:$0xff]  }
 0x5c0   :  { %5478 = vmatprep.subr.bf16.mxu0 %v7256_v57  ;;  %v7338_v57 = vld [vmem:[#allocation11 + $0x7e8] ss:$16 sps:$4 sm:$0xff]  }
 0x5c1   :  { %5315 = vmatpush1.bf16.msra.mxu1 %v7251_v15  ;;  %v7343_v15 = vld [vmem:[#allocation14 + $0x4] ss:$8 sps:$4 sm:$0xff]  }
 0x5c2   :  { %5479 = vmatpush1.bf16.msra.mxu0 %v7254_v33  ;;  %5316 = vmatprep.subr.bf16.mxu1 %v7259_v62  ;;  %v7341_v33 = vld [vmem:[#allocation14] ss:$8 sps:$4 sm:$0xff]   ;;  %v3629_v62 = vpack.c.bf16 %v8898_v44, %v8898_v44  ;;  %v7358_v44 = vld [vmem:[#allocation14 + $0x54] ss:$8 sps:$4 sm:$0xff]  }
 0x5c3   :  { %5480 = vmatprep.subr.bf16.mxu0 %v7262_v27  ;;  %v7346_v27 = vld [vmem:[#allocation14 + $0x14] ss:$8 sps:$4 sm:$0xff]  }
 0x5c5   :  { %5317 = vmatpush1.bf16.msra.mxu1 %v7257_v29  ;;  %v7344_v29 = vld [vmem:[#allocation14 + $0x10] ss:$8 sps:$4 sm:$0xff]  }
 0x5c6   :  { %5481 = vmatpush1.bf16.msra.mxu0 %v7260_v40  ;;  %5318 = vmatprep.subr.bf16.mxu1 %v7265_v30  ;;  %v7349_v40 = vld [vmem:[#allocation14 + $0x24] ss:$8 sps:$4 sm:$0xff]   ;;  %v7347_v30 = vld [vmem:[#allocation14 + $0x20] ss:$8 sps:$4 sm:$0xff]  }
 0x5c7   :  { %5482 = vmatprep.subr.bf16.mxu0 %v7268_v0  ;;  %v7352_v0 = vld [vmem:[#allocation14 + $0x34] ss:$8 sps:$4 sm:$0xff]  }
 0x5c9   :  { %5319 = vmatpush1.bf16.msra.mxu1 %v7263_v1  ;;  %v7350_v1 = vld [vmem:[#allocation14 + $0x30] ss:$8 sps:$4 sm:$0xff]  }
 0x5ca   :  { %5483 = vmatpush1.bf16.msra.mxu0 %v7266_v42  ;;  %5320 = vmatprep.subr.bf16.mxu1 %v7271_v17  ;;  %v7355_v42 = vld [vmem:[#allocation14 + $0x44] ss:$8 sps:$4 sm:$0xff]   ;;  %v7353_v17 = vld [vmem:[#allocation14 + $0x40] ss:$8 sps:$4 sm:$0xff]  }
 0x5cb   :  { %5484 = vmatprep.subr.bf16.mxu0 %v7274_v45  ;;  %v7356_v45 = vld [vmem:[#allocation14 + $0x50] ss:$8 sps:$4 sm:$0xff]  }
 0x5cd   :  { %5321 = vmatpush1.bf16.msra.mxu1 %v7269_v55  ;;  %v7361_v55 = vld [vmem:[#allocation14 + $0x64] ss:$8 sps:$4 sm:$0xff]  }
 0x5ce   :  { %5485 = vmatpush1.bf16.msra.mxu0 %v7272_v58  ;;  %5322 = vmatprep.subr.bf16.mxu1 %v7277_v59  ;;  %v7359_v58 = vld [vmem:[#allocation14 + $0x60] ss:$8 sps:$4 sm:$0xff]   ;;  %v7364_v59 = vld [vmem:[#allocation14 + $0x74] ss:$8 sps:$4 sm:$0xff]  }
 0x5cf   :  { %5486 = vmatprep.subr.bf16.mxu0 %v7280_v61  ;;  %v7362_v61 = vld [vmem:[#allocation14 + $0x70] ss:$8 sps:$4 sm:$0xff]  }
 0x5d1   :  { %5323 = vmatpush1.bf16.msra.mxu1 %v7275_v9  ;;  %v7367_v9 = vld [vmem:[#allocation14 + $0x84] ss:$8 sps:$4 sm:$0xff]  }
 0x5d2   :  { %5487 = vmatpush1.bf16.msra.mxu0 %v7278_v7  ;;  %5324 = vmatprep.subr.bf16.mxu1 %v7283_v16  ;;  %v7365_v7 = vld [vmem:[#allocation14 + $0x80] ss:$8 sps:$4 sm:$0xff]   ;;  %v7370_v16 = vld [vmem:[#allocation14 + $0x94] ss:$8 sps:$4 sm:$0xff]  }
 0x5d3   :  { %5488 = vmatprep.subr.bf16.mxu0 %v7286_v47  ;;  %v7368_v47 = vld [vmem:[#allocation14 + $0x90] ss:$8 sps:$4 sm:$0xff]  }
 0x5d5   :  { %5325 = vmatpush1.bf16.msra.mxu1 %v7281_v8  ;;  %v7373_v8 = vld [vmem:[#allocation14 + $0xa4] ss:$8 sps:$4 sm:$0xff]  }
 0x5d6   :  { %5489 = vmatpush1.bf16.msra.mxu0 %v7284_v19  ;;  %5326 = vmatprep.subr.bf16.mxu1 %v7289_v10  ;;  %v7371_v19 = vld [vmem:[#allocation14 + $0xa0] ss:$8 sps:$4 sm:$0xff]   ;;  %v7376_v10 = vld [vmem:[#allocation14 + $0xb4] ss:$8 sps:$4 sm:$0xff]  }
 0x5d7   :  { %5490 = vmatprep.subr.bf16.mxu0 %v7292_v4  ;;  %v7374_v4 = vld [vmem:[#allocation14 + $0xb0] ss:$8 sps:$4 sm:$0xff]  }
 0x5d9   :  { %5327 = vmatpush1.bf16.msra.mxu1 %v7287_v48  ;;  %v7379_v48 = vld [vmem:[#allocation14 + $0xc4] ss:$8 sps:$4 sm:$0xff]  }
 0x5da   :  { %5491 = vmatpush1.bf16.msra.mxu0 %v7290_v51  ;;  %5328 = vmatprep.subr.bf16.mxu1 %v7295_v3  ;;  %v7377_v51 = vld [vmem:[#allocation14 + $0xc0] ss:$8 sps:$4 sm:$0xff]   ;;  %v7382_v3 = vld [vmem:[#allocation14 + $0xd4] ss:$8 sps:$4 sm:$0xff]  }
 0x5db   :  { %5492 = vmatprep.subr.bf16.mxu0 %v7298_v25  ;;  %v7380_v25 = vld [vmem:[#allocation14 + $0xd0] ss:$8 sps:$4 sm:$0xff]  }
 0x5dd   :  { %5329 = vmatpush1.bf16.msra.mxu1 %v7293_v41  ;;  %v7385_v41 = vld [vmem:[#allocation14 + $0xe4] ss:$8 sps:$4 sm:$0xff]  }
 0x5de   :  { %5493 = vmatpush1.bf16.msra.mxu0 %v7296_v12  ;;  %5330 = vmatprep.subr.bf16.mxu1 %v7301_v53  ;;  %v7383_v12 = vld [vmem:[#allocation14 + $0xe0] ss:$8 sps:$4 sm:$0xff]   ;;  %v7386_v53 = vld [vmem:[#allocation14 + $0xf0] ss:$8 sps:$4 sm:$0xff]  }
 0x5df   :  { %5494 = vmatprep.subr.bf16.mxu0 %v7304_v39  ;;  %v7388_v39 = vld [vmem:[#allocation14 + $0xf4] ss:$8 sps:$4 sm:$0xff]  }
 0x5e1   :  { %5331 = vmatpush1.bf16.msra.mxu1 %v7299_v18  ;;  %v7391_v18 = vld [vmem:[#allocation14 + $0x104] ss:$8 sps:$4 sm:$0xff]  }
 0x5e2   :  { %5495 = vmatpush1.bf16.msra.mxu0 %v7302_v5  ;;  %5332 = vmatprep.subr.bf16.mxu1 %v7307_v20  ;;  %v6033_v5 = vld [vmem:[%s9044_s13 + $0x80] sm:$0xff]  ;;  %v6034_v20 = vld [vmem:[%s9044_s13 + $0x88] sm:$0xff] }
 0x5e3   :  { %5496 = vmatprep.subr.bf16.mxu0 %v7310_v22  ;;  %v6017_v22 = vld [vmem:[%s9044_s13] sm:$0xff] }
 0x5e5   :  { %5333 = vmatpush1.bf16.msra.mxu1 %v7305_v23  ;;  %v6853_v23 = vpack.c.bf16 %v6034_v20, %v6033_v5  ;;  %v7394_v5 = vld [vmem:[#allocation14 + $0x114] ss:$8 sps:$4 sm:$0xff]  }
 0x5e6   :  { %5497 = vmatpush1.bf16.msra.mxu0 %v7308_v56  ;;  %5334 = vmatprep.subr.bf16.mxu1 %v7313_v24  ;;  %v6018_v56 = vld [vmem:[%s9044_s13 + $0x8] sm:$0xff]  ;;  %v6035_v24 = vld [vmem:[%s9044_s13 + $0x90] sm:$0xff] }
 0x5e7   :  { %5498 = vmatprep.subr.bf16.mxu0 %v7316_v37  ;;  %v6036_v37 = vld [vmem:[%s9044_s13 + $0x98] sm:$0xff] }
 0x5e9   :  { %5335 = vmatpush1.bf16.msra.mxu1 %v7311_v26  ;;  %v6855_v26 = vpack.c.bf16 %v6018_v56, %v6017_v22  ;;  %v7392_v22 = vld [vmem:[#allocation14 + $0x110] ss:$8 sps:$4 sm:$0xff]   ;;  %v7395_v56 = vld [vmem:[#allocation14 + $0x120] ss:$8 sps:$4 sm:$0xff]  }
 0x5ea   :  { %5499 = vmatpush1.bf16.msra.mxu0 %v7314_v2  ;;  %5336 = vmatprep.subr.bf16.mxu1 %v7319_v35  ;;  %v6857_v2 = vpack.c.bf16 %v6036_v37, %v6035_v24  ;;  %v6019_v35 = vld [vmem:[%s9044_s13 + $0x10] sm:$0xff]  ;;  %v7400_v24 = vld [vmem:[#allocation14 + $0x134] ss:$8 sps:$4 sm:$0xff]   ;;  %v7398_v37 = vld [vmem:[#allocation14 + $0x130] ss:$8 sps:$4 sm:$0xff]  }
 0x5eb   :  { %5500 = vmatprep.subr.bf16.mxu0 %v7322_v63  ;;  %v6020_v63 = vld [vmem:[%s9044_s13 + $0x18] sm:$0xff] }
 0x5ed   :  { %5337 = vmatpush1.bf16.msra.mxu1 %v7317_v43  ;;  %v6037_v43 = vld [vmem:[%s9044_s13 + $0xa0] sm:$0xff] }
 0x5ee   :  { %5501 = vmatpush1.bf16.msra.mxu0 %v7320_v38  ;;  %5338 = vmatprep.subr.bf16.mxu1 %v7325_v11  ;;  %v6038_v38 = vld [vmem:[%s9044_s13 + $0xa8] sm:$0xff]  ;;  %v6859_v11 = vpack.c.bf16 %v6020_v63, %v6019_v35 }
 0x5ef   :  { %5502 = vmatprep.subr.bf16.mxu0 %v7328_v49  ;;  %v6861_v49 = vpack.c.bf16 %v6038_v38, %v6037_v43  ;;  %v7406_v35 = vld [vmem:[#allocation14 + $0x154] ss:$8 sps:$4 sm:$0xff]   ;;  %v7404_v63 = vld [vmem:[#allocation14 + $0x150] ss:$8 sps:$4 sm:$0xff]   ;;  %v7409_v43 = vld [vmem:[#allocation14 + $0x164] ss:$8 sps:$4 sm:$0xff]  }
 0x5f0   :  { %v7407_v38 = vld [vmem:[#allocation14 + $0x160] ss:$8 sps:$4 sm:$0xff]  }
 0x5f1   :  { %5339 = vmatpush1.bf16.msra.mxu1 %v7323_v52  ;;  %v6021_v52 = vld [vmem:[%s9044_s13 + $0x20] sm:$0xff] }
 0x5f2   :  { %5503 = vmatpush1.bf16.msra.mxu0 %v7326_v34  ;;  %5340 = vmatprep.subr.bf16.mxu1 %v7331_v28  ;;  %v6022_v34 = vld [vmem:[%s9044_s13 + $0x28] sm:$0xff]  ;;  %v6039_v28 = vld [vmem:[%s9044_s13 + $0xb0] sm:$0xff] }
 0x5f3   :  { %5504 = vmatprep.subr.bf16.mxu0 %v7334_v31  ;;  %v6040_v31 = vld [vmem:[%s9044_s13 + $0xb8] sm:$0xff] }
 0x5f5   :  { %5341 = vmatpush1.bf16.msra.mxu1 %v7329_v13  ;;  %v6863_v13 = vpack.c.bf16 %v6022_v34, %v6021_v52  ;;  %v7415_v52 = vld [vmem:[#allocation14 + $0x184] ss:$8 sps:$4 sm:$0xff]   ;;  %v7413_v34 = vld [vmem:[#allocation14 + $0x180] ss:$8 sps:$4 sm:$0xff]  }
 0x5f6   :  { %5505 = vmatpush1.bf16.msra.mxu0 %v7332_v32  ;;  %5342 = vmatprep.subr.bf16.mxu1 %v7337_v6  ;;  %v6865_v32 = vpack.c.bf16 %v6040_v31, %v6039_v28  ;;  %v6023_v6 = vld [vmem:[%s9044_s13 + $0x30] sm:$0xff]  ;;  %v7418_v28 = vld [vmem:[#allocation14 + $0x194] ss:$8 sps:$4 sm:$0xff]   ;;  %v7416_v31 = vld [vmem:[#allocation14 + $0x190] ss:$8 sps:$4 sm:$0xff]  }
 0x5f7   :  { %5506 = vmatprep.subr.bf16.mxu0 %v7340_v21  ;;  %v6024_v21 = vld [vmem:[%s9044_s13 + $0x38] sm:$0xff] }
 0x5f9   :  { %5343 = vmatpush1.bf16.msra.mxu1 %v7335_v50  ;;  %v6041_v50 = vld [vmem:[%s9044_s13 + $0xc0] sm:$0xff] }
 0x5fa   :  { %5507 = vmatpush1.bf16.msra.mxu0 %v7338_v57  ;;  %5929 = vmatprep.subr.bf16.mxu1 %v7343_v15  ;;  %v6042_v57 = vld [vmem:[%s9044_s13 + $0xc8] sm:$0xff]  ;;  %v6867_v15 = vpack.c.bf16 %v6024_v21, %v6023_v6 }
 0x5fb   :  { %6854 = vmatprep.subr.bf16.mxu0 %v6853_v23  ;;  %v7397_v23 = vld [vmem:[#allocation14 + $0x124] ss:$8 sps:$4 sm:$0xff]   ;;  %v7424_v6 = vld [vmem:[#allocation14 + $0x1b4] ss:$8 sps:$4 sm:$0xff]   ;;  %v7422_v21 = vld [vmem:[#allocation14 + $0x1b0] ss:$8 sps:$4 sm:$0xff]  }
 0x5fc   :  { %5345 = vmatmul.mubr.bf16.vlgmr.msra.gmra.mrb[168].mxu1 %v3629_v62 }
 0x5fd   :  { %5509 = vmatmul.mubr.bf16.vlgmr.msra.gmra.mrb[220].mxu0 %v3629_v62  ;;  %5930 = vmatpush1.bf16.msra.mxu1 %v7341_v33  ;;  %v6869_v33 = vpack.c.bf16 %v6042_v57, %v6041_v50  ;;  %v6025_v62 = vld [vmem:[%s9044_s13 + $0x40] sm:$0xff]  ;;  %v7427_v50 = vld [vmem:[#allocation14 + $0x1c4] ss:$8 sps:$4 sm:$0xff]   ;;  %v7425_v57 = vld [vmem:[#allocation14 + $0x1c0] ss:$8 sps:$4 sm:$0xff]  }
 0x5fe   :  { %5931 = vmatprep.subr.bf16.mxu1 %v7346_v27  ;;  %6856 = vmatpush3.bf16.msra.mxu0 %v6855_v26  ;;  %v6026_v27 = vld [vmem:[%s9044_s13 + $0x48] sm:$0xff]  ;;  %v7403_v26 = vld [vmem:[#allocation14 + $0x144] ss:$8 sps:$4 sm:$0xff]  }
 0x5ff   :  { %6858 = vmatprep.subr.bf16.mxu0 %v6857_v2  ;;  %v7401_v2 = vld [vmem:[#allocation14 + $0x140] ss:$8 sps:$4 sm:$0xff]  }
 0x601   :  { %5932 = vmatpush1.bf16.msra.mxu1 %v7344_v29  ;;  %v6043_v29 = vld [vmem:[%s9044_s13 + $0xd0] sm:$0xff] }
 0x602   :  { %5933 = vmatprep.subr.bf16.mxu1 %v7349_v40  ;;  %6860 = vmatpush3.bf16.msra.mxu0 %v6859_v11  ;;  %v6044_v40 = vld [vmem:[%s9044_s13 + $0xd8] sm:$0xff]  ;;  %v7412_v11 = vld [vmem:[#allocation14 + $0x174] ss:$8 sps:$4 sm:$0xff]  }
 0x603   :  { %6862 = vmatprep.subr.bf16.mxu0 %v6861_v49  ;;  %v7410_v49 = vld [vmem:[#allocation14 + $0x170] ss:$8 sps:$4 sm:$0xff]  }
 0x605   :  { %5934 = vmatpush1.bf16.msra.mxu1 %v7347_v30  ;;  %v6871_v30 = vpack.c.bf16 %v6026_v27, %v6025_v62  ;;  %v7428_v62 = vld [vmem:[#allocation14 + $0x1d0] ss:$8 sps:$4 sm:$0xff]   ;;  %v7433_v27 = vld [vmem:[#allocation14 + $0x1e4] ss:$8 sps:$4 sm:$0xff]  }
 0x606   :  { %5935 = vmatprep.subr.bf16.mxu1 %v7352_v0  ;;  %6864 = vmatpush3.bf16.msra.mxu0 %v6863_v13  ;;  %v6873_v0 = vpack.c.bf16 %v6044_v40, %v6043_v29  ;;  %v7421_v13 = vld [vmem:[#allocation14 + $0x1a4] ss:$8 sps:$4 sm:$0xff]   ;;  %v7431_v40 = vld [vmem:[#allocation14 + $0x1e0] ss:$8 sps:$4 sm:$0xff]  }
 0x607   :  { %6866 = vmatprep.subr.bf16.mxu0 %v6865_v32  ;;  %v7419_v32 = vld [vmem:[#allocation14 + $0x1a0] ss:$8 sps:$4 sm:$0xff]  }
 0x609   :  { %5936 = vmatpush1.bf16.msra.mxu1 %v7350_v1  ;;  %v6027_v1 = vld [vmem:[%s9044_s13 + $0x50] sm:$0xff] }
 0x60a   :  { %5937 = vmatprep.subr.bf16.mxu1 %v7355_v42  ;;  %6868 = vmatpush3.bf16.msra.mxu0 %v6867_v15  ;;  %v6028_v42 = vld [vmem:[%s9044_s13 + $0x58] sm:$0xff]  ;;  %v7430_v15 = vld [vmem:[#allocation14 + $0x1d4] ss:$8 sps:$4 sm:$0xff]  }
 0x60b   :  { %6870 = vmatprep.subr.bf16.mxu0 %v6869_v33 }
 0x60d   :  { %5938 = vmatpush1.bf16.msra.mxu1 %v7353_v17  ;;  %v6875_v17 = vpack.c.bf16 %v6028_v42, %v6027_v1  ;;  %v7434_v1 = vld [vmem:[#allocation14 + $0x1f0] ss:$8 sps:$4 sm:$0xff]  }
 0x60e   :  { %5939 = vmatprep.subr.bf16.mxu1 %v7358_v44  ;;  %6872 = vmatpush3.bf16.msra.mxu0 %v6871_v30  ;;  %v8978_v44 = vld [vmem:[#allocation12] sm:$0xf] }
 0x60f   :  { %6874 = vmatprep.subr.bf16.mxu0 %v6873_v0  ;;  %v3900_v33 = vrot.slane %v8978_v44, %v1424_v14  ;;  %v7436_v30 = vld [vmem:[#allocation14 + $0x1f4] ss:$8 sps:$4 sm:$0xff]  }
 0x610   :  { %v6045_v14 = vld [vmem:[%s9044_s13 + $0xe0] sm:$0xff] }
 0x611   :  { %5940 = vmatpush1.bf16.msra.mxu1 %v7356_v45  ;;  %v3892_v45 = vrot.slane %v8978_v44, %v8286_v54 }
 0x612   :  { %5941 = vmatprep.subr.bf16.mxu1 %v7361_v55  ;;  %6876 = vmatpush3.bf16.msra.mxu0 %v6875_v17  ;;  %v3896_v55 = vrot.slane %v8978_v44, %v8292_v60  ;;  %v6046_v17 = vld [vmem:[%s9044_s13 + $0xe8] sm:$0xff] }
 0x615   :  { %5942 = vmatpush1.bf16.msra.mxu1 %v7359_v58  ;;  %v3904_v58 = vrot.slane %v8978_v44, %v1428_v36  ;;  %v6877_v44 = vpack.c.bf16 %v6046_v17, %v6045_v14 }
 0x616   :  { %5943 = vmatprep.subr.bf16.mxu1 %v7364_v59 }
 0x617   :  { %6878 = vmatprep.subr.bf16.mxu0 %v6877_v44 }
 0x619   :  { %5944 = vmatpush1.bf16.msra.mxu1 %v7362_v61 }
 0x61a   :  { %5945 = vmatprep.subr.bf16.mxu1 %v7367_v9 }
 0x61d   :  { %5946 = vmatpush1.bf16.msra.mxu1 %v7365_v7 }
 0x61e   :  { %5947 = vmatprep.subr.bf16.mxu1 %v7370_v16 }
 0x621   :  { %5948 = vmatpush1.bf16.msra.mxu1 %v7368_v47 }
 0x622   :  { %5949 = vmatprep.subr.bf16.mxu1 %v7373_v8 }
 0x625   :  { %5950 = vmatpush1.bf16.msra.mxu1 %v7371_v19 }
 0x626   :  { %5951 = vmatprep.subr.bf16.mxu1 %v7376_v10 }
 0x629   :  { %5952 = vmatpush1.bf16.msra.mxu1 %v7374_v4 }
 0x62a   :  { %5953 = vmatprep.subr.bf16.mxu1 %v7379_v48 }
 0x62d   :  { %5954 = vmatpush1.bf16.msra.mxu1 %v7377_v51 }
 0x62e   :  { %5955 = vmatprep.subr.bf16.mxu1 %v7382_v3 }
 0x631   :  { %5956 = vmatpush1.bf16.msra.mxu1 %v7380_v25 }
 0x632   :  { %5957 = vmatprep.subr.bf16.mxu1 %v7385_v41 }
 0x635   :  { %5958 = vmatpush1.bf16.msra.mxu1 %v7383_v12 }
 0x636   :  { %5959 = vmatprep.subr.bf16.mxu1 %v7388_v39 }
 0x639   :  { %5960 = vmatpush1.bf16.msra.mxu1 %v7386_v53  ;;  %v7389_v53 = vld [vmem:[#allocation14 + $0x100] ss:$8 sps:$4 sm:$0xff]  }
 0x63a   :  { %5970 = vmatprep.subr.bf16.mxu1 %v7391_v18 }
 0x6cf   :  { %v5346_v59 = vpop.f32.mrb[168].mxu1 }
 0x6d0   :  { %v6887_v61 = vadd.f32 %v5346_v59, %v3892_v45  ;;  %v8987_v9 = vpop.f32.mrb[220].mxu0  ;;  %v5348_v7 = vpop.f32.mrb[169].mxu1  ;;  %v6029_v45 = vld [vmem:[%s9044_s13 + $0x60] sm:$0xff]  ;;  %v6047_v59 = vld [vmem:[%s9044_s13 + $0xf0] sm:$0xff] }
 0x6d1   :  { %v6888_v16 = vadd.f32 %v5348_v7, %v3896_v55  ;;  %v5512_v47 = vpop.f32.mrb[221].mxu0  ;;  %v5350_v8 = vpop.f32.mrb[170].mxu1  ;;  %v6889_v29 = vadd.f32 %v8987_v9, %v3900_v33  ;;  %v6030_v55 = vld [vmem:[%s9044_s13 + $0x68] sm:$0xff]  ;;  %v6031_v9 = vld [vmem:[%s9044_s13 + $0x70] sm:$0xff] }
 0x6d2   :  { %vm5517_vm5 = vcmp.gt.f32.partialorder %v6887_v61, 0.0  ;;  %v5521_v19 = vmul.f32 0.2, %v6887_v61  ;;  %v6890_v10 = vadd.f32 %v5512_v47, %v3904_v58  ;;  %v5514_v4 = vpop.f32.mrb[222].mxu0  ;;  %v5351_v48 = vpop.f32.mrb[171].mxu1  ;;  %v6879_v58 = vpack.c.bf16 %v6030_v55, %v6029_v45 }
 0x6d3   :  { %vm5518_vm6 = vcmp.gt.f32.partialorder %v6888_v16, 0.0  ;;  %v5522_v51 = vmul.f32 0.2, %v6888_v16  ;;  %v5515_v41 = vpop.f32.mrb[223].mxu0  ;;  %v5523_v0 = vmul.f32 0.2, %v6889_v29 }
 0x6d4   :  { %v5525_v3 = vsel %vm5517_vm5, %v6887_v61, %v5521_v19  ;;  %vm5520_vm7 = vcmp.gt.f32.partialorder %v6890_v10, 0.0  ;;  %v5524_v25 = vmul.f32 0.2, %v6890_v10  ;;  %vm5519_vm8 = vcmp.gt.f32.partialorder %v6889_v29, 0.0  ;;  %6880 = vmatpush3.bf16.msra.mxu0 %v6879_v58  ;;  %v6048_v61 = vld [vmem:[%s9044_s13 + $0xf8] sm:$0xff] }
 0x6d5   :  { %v5526_v36 = vsel %vm5518_vm6, %v6888_v16, %v5522_v51  ;;  %v5529_v18 = vpack.c.bf16 %v5525_v3, %v5525_v3  ;;  %v5527_v42 = vsel %vm5519_vm8, %v6889_v29, %v5523_v0  ;;  %v6881_v7 = vpack.c.bf16 %v6048_v61, %v6047_v59  ;;  %v6032_v16 = vld [vmem:[%s9044_s13 + $0x78] sm:$0xff]  ;;  %v5597_v8 = vld [vmem:[#allocation15] sm:$0x3]  ;;  %s7694_s13 = smov [#allocation18]  }
 0x6d6   :  { %v5530_v12 = vpack.c.bf16 %v5526_v36, %v5526_v36  ;;  %v5528_v39 = vsel %vm5520_vm7, %v6890_v10, %v5524_v25  ;;  %v5531_v46 = vpack.c.bf16 %v5527_v42, %v5527_v42  ;;  %v6883_v47 = vpack.c.bf16 %v6032_v16, %v6031_v9  ;;  %s6146_s20 = sshll.u32 %s7694_s13, 4  ;;  %s6147_s20 = int_to_ptr.vmem [resolvable:$true] %s6146_s20 }
 0x6d7   :  { %v5532_v20 = vpack.c.bf16 %v5528_v39, %v5528_v39  ;;  %6882 = vmatprep.subr.bf16.mxu0 %v6881_v7  ;;  %v5602_v19 = vrot.slane %v5597_v8, %v8286_v54  ;;  %v5606_v10 = vrot.slane %v5597_v8, %v8292_v60  ;;  %s7640_s10 = scalar_lea.vmem %s6147_s20, 32  ;;  %p7645_p3 = scmp.lt.s32.totalorder %s6147_s20, %s6147_s20 }
 0x6d8   :  { %5961 = vmatprep.mubr.bf16.mxu1 %v5530_v12  ;;  %6884 = vmatpush3.bf16.msra.mxu0 %v6883_v47  ;;  %p7641_p2 = scmp.ne.s32.totalorder %s6147_s20, %s7640_s10  ;;  %p7646_p4 = scmp.lt.s32.totalorder %s7640_s10, %s7640_s10 }
 0x6d9   :  { %5962 = vmatmul.mubr.bf16.vlgmr.msra.gmra.mrb[172].mxu1 %v5529_v18 }
 0x6da   :  { %5971 = vmatpush1.bf16.msra.mxu1 %v7389_v53  ;;  %6002 = vmatprep.mubr.bf16.mxu1 %v5532_v20  ;;  %v6683_v20 = vld [vmem:[#allocation17] ss:$0 sm:$0xff]  ;;  %p7647_p5 = por %p7646_p4, %p7645_p3 }
 0x6db   :  { %5972 = vmatprep.subr.bf16.mxu1 %v7394_v5 }
 0x6dc   :  { %p7648_p6 = pnand %p7647_p5, %p7641_p2 }
 0x6de   :  { %5973 = vmatpush1.bf16.msra.mxu1 %v7392_v22 }
 0x6df   :  { %5974 = vmatprep.subr.bf16.mxu1 %v7397_v23 }
 0x6e2   :  { %5975 = vmatpush1.bf16.msra.mxu1 %v7395_v56 }
 0x6e3   :  { %5976 = vmatprep.subr.bf16.mxu1 %v7400_v24 }
 0x6e6   :  { %5977 = vmatpush1.bf16.msra.mxu1 %v7398_v37 }
 0x6e7   :  { %5978 = vmatprep.subr.bf16.mxu1 %v7403_v26 }
 0x6ea   :  { %5979 = vmatpush1.bf16.msra.mxu1 %v7401_v2 }
 0x6eb   :  { %5980 = vmatprep.subr.bf16.mxu1 %v7406_v35 }
 0x6ee   :  { %5981 = vmatpush1.bf16.msra.mxu1 %v7404_v63 }
 0x6ef   :  { %5982 = vmatprep.subr.bf16.mxu1 %v7409_v43 }
 0x6f2   :  { %5983 = vmatpush1.bf16.msra.mxu1 %v7407_v38 }
 0x6f3   :  { %5984 = vmatprep.subr.bf16.mxu1 %v7412_v11 }
 0x6f6   :  { %5985 = vmatpush1.bf16.msra.mxu1 %v7410_v49 }
 0x6f7   :  { %5986 = vmatprep.subr.bf16.mxu1 %v7415_v52 }
 0x6fa   :  { %5987 = vmatpush1.bf16.msra.mxu1 %v7413_v34 }
 0x6fb   :  { %5988 = vmatprep.subr.bf16.mxu1 %v7418_v28 }
 0x6fe   :  { %5989 = vmatpush1.bf16.msra.mxu1 %v7416_v31 }
 0x6ff   :  { %5990 = vmatprep.subr.bf16.mxu1 %v7421_v13 }
 0x702   :  { %5991 = vmatpush1.bf16.msra.mxu1 %v7419_v32 }
 0x703   :  { %5992 = vmatprep.subr.bf16.mxu1 %v7424_v6 }
 0x706   :  { %5993 = vmatpush1.bf16.msra.mxu1 %v7422_v21 }
 0x707   :  { %5994 = vmatprep.subr.bf16.mxu1 %v7427_v50 }
 0x70a   :  { %5995 = vmatpush1.bf16.msra.mxu1 %v7425_v57 }
 0x70b   :  { %5996 = vmatprep.subr.bf16.mxu1 %v7430_v15 }
 0x70e   :  { %5997 = vmatpush1.bf16.msra.mxu1 %v7428_v62 }
 0x70f   :  { %5998 = vmatprep.subr.bf16.mxu1 %v7433_v27 }
 0x712   :  { %5999 = vmatpush1.bf16.msra.mxu1 %v7431_v40 }
 0x713   :  { %6000 = vmatprep.subr.bf16.mxu1 %v7436_v30 }
 0x716   :  { %6001 = vmatpush1.bf16.msra.mxu1 %v7434_v1 }
 0x719   :  { %6003 = vmatmul.mubr.bf16.vlgmr.msra.gmra.mrb[172].mxu1 %v5531_v46 }
 0x7ec   :  { %v6004_v4 = vpop.f32.mrb[172].mxu1 }
 0x7ed   :  { %v6891_v48 = vadd.f32 %v6004_v4, %v5602_v19  ;;  %v6006_v51 = vpop.f32.mrb[173].mxu1 }
 0x7ee   :  { %v6892_v3 = vadd.f32 %v6006_v51, %v5606_v10  ;;  %v6008_v25 = vpop.f32.mrb[174].mxu1 }
 0x7ef   :  { %v6013_v41 = vmul.f32 0.2, %v6891_v48  ;;  %v6009_v36 = vpop.f32.mrb[175].mxu1  ;;  %vm6011_vm9 = vcmp.gt.f32.partialorder %v6891_v48, 0.0 }
 0x7f0   :  { %v6014_v12 = vmul.f32 0.2, %v6892_v3  ;;  %vm6012_vm10 = vcmp.gt.f32.partialorder %v6892_v3, 0.0 }
 0x7f1   :  { %v6015_v39 = vsel %vm6011_vm9, %v6891_v48, %v6013_v41 }
 0x7f2   :  { %v6016_v53 = vsel %vm6012_vm10, %v6892_v3, %v6014_v12 }
 0x7f3   :  { %6120 = vmatprep.mubr.f32.mxu0 %v6016_v53 }
 0x7f4   :  { %6121 = vmatmul.mubr.f32.vlgmr.msra.gmra.mrb[26].mxu0 %v6015_v39 }
 0x8c7   :  { %v6766_v18 = vpop.f32.mrb[26].mxu0 }
 0x8c8   :  { %v6767_v5 = vpop.f32.mrb[27].mxu0 }
 0x8c9   :  { %v6768_v54 = vadd.f32 %v6767_v5, %v6766_v18 }
 0x8cb   :  { %v6123_v60 = vadd.f32 %v6768_v54, %v6683_v20 }
 0x8cd   :  { %v6127_v22 = vsel %vm6126_vm11, %v6123_v60, -inf }
 0x8ce   :  { %6128 = vmax.xlane.f32.xlu0 %v6127_v22 }
 0x95b   :  { %v6129_v23 = vpop.xlane.xlu0 %6128 }
 0x95c   :  { %v6130_v56 = vsub.f32 %v6123_v60, %v6129_v23 }
 0x95e   :  { %v6131_v24 = vmul.f32 1.442695, %v6130_v56 }
 0x960   :  { %7437 = vpow2.f32 %v6131_v24 }
 0x96a   :  { %v7438_v37 = vpop.eup %7437 }
 0x96b   :  { %v6133_v26 = vsel %vm6126_vm11, %v7438_v37, 0.0 }
 0x96c   :  { %6134 = vadd.xlane.f32.xlu0 %v6133_v26 }
 0x9f9   :  { %v6135_v2 = vpop.xlane.xlu0 %6134 }
 0x9fa   :  { %7439 = vlog2.f32 %v6135_v2 }
 0xa04   :  { %v7440_v35 = vpop.eup %7439 }
 0xa05   :  { %v6137_v63 = vmul.f32 0.6931472, %v7440_v35 }
 0xa07   :  { %v6138_v43 = vsub.f32 %v6130_v56, %v6137_v63 }
 0xa09   :  { %6139 = vst [vmem:[#allocation18] sm:$0x3] %v6138_v43 }
 0xa0a   :  { %7651 = shalt.err (!%p7648_p6)
}
 0xa0b   :  { %s7652_s18 = scalar_lea.hbm %s9046_s15, 32 }
 0xa0c   :  { %p7653_p7 = scmp.ne.s32.totalorder %s9046_s15, %s7652_s18  ;;  %p7656_p8 = scmp.lt.u32.totalorder %s7652_s18, %s9046_s15 }
 0xa0e   :  { %p7658_p9 = pnand %p7656_p8, %p7653_p7 }
 0xa10   :  { %7661 = shalt.err (!%p7658_p9)
}
 0xa11   :  { %6149 = dma.vmem_to_hbm [thread:$0]  %s6147_s20, 32, %s9046_s15, [#allocation5]  }
 0xa12   :  { %7672 = dma.done.wait [#allocation5], 32  }
 0xa13   :  { %7673 = vsyncadd [#allocation5], 4294967264 }
 0xa14   :  { %6153 = vsyncpa [#allocation4], 1 }
 0xa15   :  { %6154 = vsyncpa [#allocation7], 1 }
 0xa16   :  { %6155 = vsyncpa [#allocation10], 1 }
 0xa17   :  { %6156 = vsyncpa [#allocation13], 1 }
 0xa18   :  { %6157 = vsyncpa [#allocation16], 1 }
 0xa19   :  { %6158 = vsyncpa [#allocation5], 1 }

</bundles_post_ra>
